<compile_context>
chip_gen: v7x
topology: tpu7x:2x2x1
jax: 0.10.0
libtpu: 0.0.40
codegen_flags: <defaults>
</compile_context>

<pallas_src>
import jax
import jax.numpy as jnp
import numpy as np
from jax.experimental import pallas as pl
from jax.experimental.pallas import tpu as pltpu


def _silu(v):
    # SiLU / swish: v * sigmoid(v); reciprocal rides the EUP slot (free-ish).
    return v * pl.reciprocal(1.0 + jnp.exp(-v), approx=True)


# --------------------------------------------------------------------------
# Fused PPGN block kernel (one batch element per grid step).
#   s  = silu(mlp12(x)) * mask            ([x1 ; x2] stacked, (2C, P))
#   xm = per-channel (N,N)@(N,N) of x1,x2 (batched MXU matmul)
#   xr = linear(xm) * mask + x
#   o  = mlp3(xr) * mask + xr
# --------------------------------------------------------------------------
def _ppgn_fused_kernel(x_ref, m_ref,
                       wa12_ref, ba12_ref, wb12_ref, bb12_ref,
                       wl_ref, bl_ref,
                       w3a_ref, b3a_ref, w3b_ref, b3b_ref,
                       o_ref,
                       s_flat_ref, s3_ref, xm3_ref, xm_flat_ref):
    C = o_ref.shape[1]
    N = s3_ref.shape[1]
    bf16 = jnp.bfloat16

    x = x_ref[0]                                   # (C, P) f32
    m = m_ref[0]                                   # (1, P) f32
    xb = x.astype(bf16)

    # ---- stacked mlp1 / mlp2 (norm='none' inside the MLP) ----
    h = _silu(jnp.dot(wa12_ref[...], xb,
                      preferred_element_type=jnp.float32) + ba12_ref[...])
    s = _silu(jnp.dot(wb12_ref[...], h.astype(bf16),
                      preferred_element_type=jnp.float32) + bb12_ref[...]) * m
    s_flat_ref[...] = s.astype(bf16)               # [x1 ; x2], (2C, P)

    # ---- relayout (2C, P) -> (2C, N, N) through VMEM scratch (static offsets,
    #      unrolled at trace time) ----
    for i in range(N):
        s3_ref[:, i, :] = s_flat_ref[:, pl.ds(i * N, N)]

    # ---- per-channel pairwise product x1 @ x2 (batched MXU matmul, f32 acc) ----
    xm3_ref[...] = jnp.einsum(
        'cik,ckj->cij', s3_ref[pl.ds(0, C)], s3_ref[pl.ds(C, C)],
        preferred_element_type=jnp.float32).astype(bf16)

    # ---- relayout back (C, N, N) -> (C, P) ----
    for i in range(N):
        xm_flat_ref[:, pl.ds(i * N, N)] = xm3_ref[:, i, :]

    # ---- linear + residual with xin (norm1 identity, prenorm=False) ----
    xlin = (jnp.dot(wl_ref[...], xm_flat_ref[...],
                    preferred_element_type=jnp.float32) + bl_ref[...])
    xres = xlin * m + x

    # ---- mlp3 (hdim = 2C) + residual with norm2(x) = x ----
    h3 = _silu(jnp.dot(w3a_ref[...], xres.astype(bf16),
                       preferred_element_type=jnp.float32) + b3a_ref[...])
    y = (jnp.dot(w3b_ref[...], h3.astype(bf16),
                 preferred_element_type=jnp.float32) + b3b_ref[...])
    o_ref[0] = y * m + xres


# --------------------------------------------------------------------------
# Wrapper
# --------------------------------------------------------------------------
def ppgn_block_pallas(x, mask, params):
    B, C, N, _ = x.shape
    P = N * N
    f32, bf16 = jnp.float32, jnp.bfloat16

    # Lane-dense (C, P) layout in HBM (pure-metadata reshape).
    xf = x.reshape(B, C, P).astype(f32)
    mf = mask.reshape(B, 1, P).astype(f32)

    # ---- pack / pre-cast the small channel-mixing weights (done once, in XLA) ----
    zc = jnp.zeros((C, C), f32)
    wa12 = jnp.concatenate([params['w1a'], params['w2a']], 0).astype(bf16)   # (2C, C)
    ba12 = jnp.concatenate([params['b1a'], params['b2a']], 0).astype(f32)    # (2C, 1)
    wb12 = jnp.concatenate(
        [jnp.concatenate([params['w1b'], zc], 1),
         jnp.concatenate([zc, params['w2b']], 1)], 0).astype(bf16)           # (2C, 2C)
    bb12 = jnp.concatenate([params['b1b'], params['b2b']], 0).astype(f32)    # (2C, 1)

    wl = params['wl'].astype(bf16);   bl = params['bl'].astype(f32)
    w3a = params['w3a'].astype(bf16); b3a = params['b3a'].astype(f32)
    w3b = params['w3b'].astype(bf16); b3b = params['b3b'].astype(f32)
    weights = [wa12, ba12, wb12, bb12, wl, bl, w3a, b3a, w3b, b3b]

    def full_spec(arr):
        nd = arr.ndim
        return pl.BlockSpec(arr.shape, lambda b, _n=nd: (0,) * _n)

    x_spec = pl.BlockSpec((1, C, P), lambda b: (b, 0, 0))
    m_spec = pl.BlockSpec((1, 1, P), lambda b: (b, 0, 0))

    # Per-step working set: double-buffered x/out/mask blocks + bf16 scratch.
    blk_bytes = 4 * (2 * C * P + P)
    scratch_bytes = 2 * (2 * C * P + 2 * C * N * N + C * N * N + C * P)
    vmem_limit = int(min(48 * 2**20,
                         max(32 * 2**20, 8 * (blk_bytes + scratch_bytes))))

    cp = pltpu.CompilerParams(
        dimension_semantics=("parallel",),      # B grid steps shard across TCs
        vmem_limit_bytes=vmem_limit)

    out_f = pl.pallas_call(
        _ppgn_fused_kernel,
        out_shape=jax.ShapeDtypeStruct((B, C, P), f32),
        grid=(B,),
        in_specs=[x_spec, m_spec] + [full_spec(w) for w in weights],
        out_specs=x_spec,
        scratch_shapes=[
            pltpu.VMEM((2 * C, P), bf16),      # s_flat : [x1;x2] lane-dense
            pltpu.VMEM((2 * C, N, N), bf16),   # s3     : [x1;x2] as (.,N,N)
            pltpu.VMEM((C, N, N), bf16),       # xm3    : pairwise product
            pltpu.VMEM((C, P), bf16),          # xm_flat
        ],
        compiler_params=cp,
    )(xf, mf, *weights)

    return out_f.reshape(B, C, N, N)


# --------------------------------------------------------------------------
# Pure-JAX reference (same semantics as the PyTorch forward with norm='none')
# --------------------------------------------------------------------------
def ppgn_block_ref(x, mask, p):
    m = mask[:, None, :, :]

    def conv1x1(w, b, v):
        return jnp.einsum('oc,bcij->boij', w, v) + b[None, :, :, None]

    def mlp(wa, ba, wb, bb, v):
        return conv1x1(wb, bb, jax.nn.silu(conv1x1(wa, ba, v)))

    xin = x
    x1 = jax.nn.silu(mlp(p['w1a'], p['b1a'], p['w1b'], p['b1b'], xin)) * m
    x2 = jax.nn.silu(mlp(p['w2a'], p['b2a'], p['w2b'], p['b2b'], xin)) * m
    xm = jnp.einsum('bcik,bckj->bcij', x1, x2)
    xr = conv1x1(p['wl'], p['bl'], xm) * m + xin
    return mlp(p['w3a'], p['b3a'], p['w3b'], p['b3b'], xr) * m + xr


if __name__ == "__main__":
    B, C, N = 2, 8, 16      # batch, channel (D), nodes
    key = jax.random.PRNGKey(0)
    ks = jax.random.split(key, 16)

    def w_init(k, o, i):
        return jax.random.normal(k, (o, i), jnp.float32) / np.sqrt(i)

    def b_init(k, o):
        return jax.random.normal(k, (o, 1), jnp.float32) * 0.1

    params = {
        'w1a': w_init(ks[0], C, C),       'b1a': b_init(ks[1], C),
        'w1b': w_init(ks[2], C, C),       'b1b': b_init(ks[3], C),
        'w2a': w_init(ks[4], C, C),       'b2a': b_init(ks[5], C),
        'w2b': w_init(ks[6], C, C),       'b2b': b_init(ks[7], C),
        'wl':  w_init(ks[8], C, C),       'bl':  b_init(ks[9], C),
        'w3a': w_init(ks[10], 2 * C, C),  'b3a': b_init(ks[11], 2 * C),
        'w3b': w_init(ks[12], C, 2 * C),  'b3b': b_init(ks[13], C),
    }

    x = jax.random.normal(ks[14], (B, C, N, N), jnp.float32)
    n_valid = jnp.array([12, 9])
    node_mask = (jnp.arange(N)[None, :] < n_valid[:, None]).astype(jnp.float32)
    mask = node_mask[:, :, None] * node_mask[:, None, :]     # (B, N, N)

    out = ppgn_block_pallas(x, mask, params)
    out = jax.block_until_ready(out)

    ref = ppgn_block_ref(x, mask, params)
    rel_err = float(jnp.max(jnp.abs(out - ref)) / (jnp.max(jnp.abs(ref)) + 1e-6))
    assert out.shape == (B, C, N, N)
    # Tolerance accounts for bf16 MXU operands (f32 accumulation) + approx reciprocal.
    assert rel_err < 2e-2, f"mismatch vs reference: rel err {rel_err}"
    print("KERNEL_OK")
</pallas_src>

<mosaic_0001>
module attributes {stable_mosaic.version = 11 : i64} {
  func.func @_ppgn_fused_kernel(%arg0: i32, %arg1: memref<1x8x256xf32, #tpu.memory_space<vmem>>, %arg2: memref<1x1x256xf32, #tpu.memory_space<vmem>>, %arg3: memref<16x8xbf16, #tpu.memory_space<vmem>>, %arg4: memref<16x1xf32, #tpu.memory_space<vmem>>, %arg5: memref<16x16xbf16, #tpu.memory_space<vmem>>, %arg6: memref<16x1xf32, #tpu.memory_space<vmem>>, %arg7: memref<8x8xbf16, #tpu.memory_space<vmem>>, %arg8: memref<8x1xf32, #tpu.memory_space<vmem>>, %arg9: memref<16x8xbf16, #tpu.memory_space<vmem>>, %arg10: memref<16x1xf32, #tpu.memory_space<vmem>>, %arg11: memref<8x16xbf16, #tpu.memory_space<vmem>>, %arg12: memref<8x1xf32, #tpu.memory_space<vmem>>, %arg13: memref<1x8x256xf32, #tpu.memory_space<vmem>>, %arg14: memref<16x256xbf16, #tpu.memory_space<vmem>>, %arg15: memref<16x16x16xbf16, #tpu.memory_space<vmem>>, %arg16: memref<8x16x16xbf16, #tpu.memory_space<vmem>>, %arg17: memref<8x256xbf16, #tpu.memory_space<vmem>>) attributes {dimension_semantics = [#tpu.dimension_semantics<parallel>], iteration_bounds = array<i64: 2>, scalar_prefetch = 0 : i64, scratch_operands = 4 : i64, tpu.core_type = #tpu.core_type<tc>, window_params = [{transform_indices = @transform_0, window_bounds = array<i64: 1, 8, 256>}, {transform_indices = @transform_1, window_bounds = array<i64: 1, 1, 256>}, {pipeline_mode = #tpu.pipeline_mode<synchronous>, transform_indices = @transform_2, window_bounds = array<i64: 16, 8>}, {pipeline_mode = #tpu.pipeline_mode<synchronous>, transform_indices = @transform_3, window_bounds = array<i64: 16, 1>}, {pipeline_mode = #tpu.pipeline_mode<synchronous>, transform_indices = @transform_4, window_bounds = array<i64: 16, 16>}, {pipeline_mode = #tpu.pipeline_mode<synchronous>, transform_indices = @transform_5, window_bounds = array<i64: 16, 1>}, {pipeline_mode = #tpu.pipeline_mode<synchronous>, transform_indices = @transform_6, window_bounds = array<i64: 8, 8>}, {pipeline_mode = #tpu.pipeline_mode<synchronous>, transform_indices = @transform_7, window_bounds = array<i64: 8, 1>}, {pipeline_mode = #tpu.pipeline_mode<synchronous>, transform_indices = @transform_8, window_bounds = array<i64: 16, 8>}, {pipeline_mode = #tpu.pipeline_mode<synchronous>, transform_indices = @transform_9, window_bounds = array<i64: 16, 1>}, {pipeline_mode = #tpu.pipeline_mode<synchronous>, transform_indices = @transform_10, window_bounds = array<i64: 8, 16>}, {pipeline_mode = #tpu.pipeline_mode<synchronous>, transform_indices = @transform_11, window_bounds = array<i64: 8, 1>}, {transform_indices = @transform_12, window_bounds = array<i64: 1, 8, 256>}]} {
    %c0 = arith.constant 0 : index
    %c0_0 = arith.constant 0 : index
    %c0_1 = arith.constant 0 : index
    %0 = vector.load %arg1[%c0, %c0_0, %c0_1] : memref<1x8x256xf32, #tpu.memory_space<vmem>>, vector<1x8x256xf32>
    %1 = vector.shape_cast %0 : vector<1x8x256xf32> to vector<8x256xf32>
    %c0_2 = arith.constant 0 : index
    %c0_3 = arith.constant 0 : index
    %c0_4 = arith.constant 0 : index
    %2 = vector.load %arg2[%c0_2, %c0_3, %c0_4] : memref<1x1x256xf32, #tpu.memory_space<vmem>>, vector<1x1x256xf32>
    %3 = vector.shape_cast %2 : vector<1x1x256xf32> to vector<1x256xf32>
    %4 = arith.truncf %1 : vector<8x256xf32> to vector<8x256xbf16>
    %c0_5 = arith.constant 0 : index
    %c0_6 = arith.constant 0 : index
    %5 = vector.load %arg3[%c0_5, %c0_6] : memref<16x8xbf16, #tpu.memory_space<vmem>>, vector<16x8xbf16>
    %cst = arith.constant dense<0.000000e+00> : vector<16x256xf32>
    %6 = tpu.matmul %5, %4, %cst {dimension_numbers = #tpu.dot_dimension_numbers<[1], [0], [0], [1], [0, 0, 1, 1], [], []>} : vector<16x8xbf16>, vector<8x256xbf16>, vector<16x256xf32> -> vector<16x256xf32>
    %c0_7 = arith.constant 0 : index
    %c0_8 = arith.constant 0 : index
    %7 = vector.load %arg4[%c0_7, %c0_8] : memref<16x1xf32, #tpu.memory_space<vmem>>, vector<16x1xf32>
    %8 = vector.broadcast %7 : vector<16x1xf32> to vector<16x256xf32>
    %9 = arith.addf %6, %8 : vector<16x256xf32>
    %cst_9 = arith.constant 0.000000e+00 : f32
    %10 = vector.broadcast %cst_9 : f32 to vector<16x256xf32>
    %11 = arith.subf %10, %9 : vector<16x256xf32>
    %12 = math.exp %11 : vector<16x256xf32>
    %cst_10 = arith.constant 1.000000e+00 : f32
    %13 = vector.broadcast %cst_10 : f32 to vector<16x256xf32>
    %14 = arith.addf %13, %12 : vector<16x256xf32>
    %15 = tpu.reciprocal %14 {approx = true} : vector<16x256xf32> -> vector<16x256xf32>
    %16 = arith.mulf %9, %15 : vector<16x256xf32>
    %c0_11 = arith.constant 0 : index
    %c0_12 = arith.constant 0 : index
    %17 = vector.load %arg5[%c0_11, %c0_12] : memref<16x16xbf16, #tpu.memory_space<vmem>>, vector<16x16xbf16>
    %18 = arith.truncf %16 : vector<16x256xf32> to vector<16x256xbf16>
    %cst_13 = arith.constant dense<0.000000e+00> : vector<16x256xf32>
    %19 = tpu.matmul %17, %18, %cst_13 {dimension_numbers = #tpu.dot_dimension_numbers<[1], [0], [0], [1], [0, 0, 1, 1], [], []>} : vector<16x16xbf16>, vector<16x256xbf16>, vector<16x256xf32> -> vector<16x256xf32>
    %c0_14 = arith.constant 0 : index
    %c0_15 = arith.constant 0 : index
    %20 = vector.load %arg6[%c0_14, %c0_15] : memref<16x1xf32, #tpu.memory_space<vmem>>, vector<16x1xf32>
    %21 = vector.broadcast %20 : vector<16x1xf32> to vector<16x256xf32>
    %22 = arith.addf %19, %21 : vector<16x256xf32>
    %cst_16 = arith.constant 0.000000e+00 : f32
    %23 = vector.broadcast %cst_16 : f32 to vector<16x256xf32>
    %24 = arith.subf %23, %22 : vector<16x256xf32>
    %25 = math.exp %24 : vector<16x256xf32>
    %cst_17 = arith.constant 1.000000e+00 : f32
    %26 = vector.broadcast %cst_17 : f32 to vector<16x256xf32>
    %27 = arith.addf %26, %25 : vector<16x256xf32>
    %28 = tpu.reciprocal %27 {approx = true} : vector<16x256xf32> -> vector<16x256xf32>
    %29 = arith.mulf %22, %28 : vector<16x256xf32>
    %30 = vector.broadcast %3 : vector<1x256xf32> to vector<16x256xf32>
    %31 = arith.mulf %29, %30 : vector<16x256xf32>
    %32 = arith.truncf %31 : vector<16x256xf32> to vector<16x256xbf16>
    %c0_18 = arith.constant 0 : index
    %c0_19 = arith.constant 0 : index
    %33 = vector.load %arg14[%c0_18, %c0_19] : memref<16x256xbf16, #tpu.memory_space<vmem>>, vector<16x256xbf16>
    tpu.vector_store %arg14[%c0_18, %c0_19], %32 {strides = array<i32>} : memref<16x256xbf16, #tpu.memory_space<vmem>>, vector<16x256xbf16>,
    %c0_20 = arith.constant 0 : index
    %c0_21 = arith.constant 0 : index
    %34 = vector.load %arg14[%c0_20, %c0_21] : memref<16x256xbf16, #tpu.memory_space<vmem>>, vector<16x16xbf16>
    %c0_22 = arith.constant 0 : index
    %c0_23 = arith.constant 0 : index
    %c0_24 = arith.constant 0 : index
    %35 = vector.load %arg15[%c0_22, %c0_23, %c0_24] : memref<16x16x16xbf16, #tpu.memory_space<vmem>>, vector<16x1x16xbf16>
    %36 = vector.shape_cast %35 : vector<16x1x16xbf16> to vector<16x16xbf16>
    %37 = vector.shape_cast %34 : vector<16x16xbf16> to vector<16x1x16xbf16>
    tpu.vector_store %arg15[%c0_22, %c0_23, %c0_24], %37 {strides = array<i32>} : memref<16x16x16xbf16, #tpu.memory_space<vmem>>, vector<16x1x16xbf16>,
    %c0_25 = arith.constant 0 : index
    %c16 = arith.constant 16 : index
    %38 = vector.load %arg14[%c0_25, %c16] : memref<16x256xbf16, #tpu.memory_space<vmem>>, vector<16x16xbf16>
    %c0_26 = arith.constant 0 : index
    %c1 = arith.constant 1 : index
    %c0_27 = arith.constant 0 : index
    %39 = vector.load %arg15[%c0_26, %c1, %c0_27] : memref<16x16x16xbf16, #tpu.memory_space<vmem>>, vector<16x1x16xbf16>
    %40 = vector.shape_cast %39 : vector<16x1x16xbf16> to vector<16x16xbf16>
    %41 = vector.shape_cast %38 : vector<16x16xbf16> to vector<16x1x16xbf16>
    tpu.vector_store %arg15[%c0_26, %c1, %c0_27], %41 {strides = array<i32>} : memref<16x16x16xbf16, #tpu.memory_space<vmem>>, vector<16x1x16xbf16>,
    %c0_28 = arith.constant 0 : index
    %c32 = arith.constant 32 : index
    %42 = vector.load %arg14[%c0_28, %c32] : memref<16x256xbf16, #tpu.memory_space<vmem>>, vector<16x16xbf16>
    %c0_29 = arith.constant 0 : index
    %c2 = arith.constant 2 : index
    %c0_30 = arith.constant 0 : index
    %43 = vector.load %arg15[%c0_29, %c2, %c0_30] : memref<16x16x16xbf16, #tpu.memory_space<vmem>>, vector<16x1x16xbf16>
    %44 = vector.shape_cast %43 : vector<16x1x16xbf16> to vector<16x16xbf16>
    %45 = vector.shape_cast %42 : vector<16x16xbf16> to vector<16x1x16xbf16>
    tpu.vector_store %arg15[%c0_29, %c2, %c0_30], %45 {strides = array<i32>} : memref<16x16x16xbf16, #tpu.memory_space<vmem>>, vector<16x1x16xbf16>,
    %c0_31 = arith.constant 0 : index
    %c48 = arith.constant 48 : index
    %46 = vector.load %arg14[%c0_31, %c48] : memref<16x256xbf16, #tpu.memory_space<vmem>>, vector<16x16xbf16>
    %c0_32 = arith.constant 0 : index
    %c3 = arith.constant 3 : index
    %c0_33 = arith.constant 0 : index
    %47 = vector.load %arg15[%c0_32, %c3, %c0_33] : memref<16x16x16xbf16, #tpu.memory_space<vmem>>, vector<16x1x16xbf16>
    %48 = vector.shape_cast %47 : vector<16x1x16xbf16> to vector<16x16xbf16>
    %49 = vector.shape_cast %46 : vector<16x16xbf16> to vector<16x1x16xbf16>
    tpu.vector_store %arg15[%c0_32, %c3, %c0_33], %49 {strides = array<i32>} : memref<16x16x16xbf16, #tpu.memory_space<vmem>>, vector<16x1x16xbf16>,
    %c0_34 = arith.constant 0 : index
    %c64 = arith.constant 64 : index
    %50 = vector.load %arg14[%c0_34, %c64] : memref<16x256xbf16, #tpu.memory_space<vmem>>, vector<16x16xbf16>
    %c0_35 = arith.constant 0 : index
    %c4 = arith.constant 4 : index
    %c0_36 = arith.constant 0 : index
    %51 = vector.load %arg15[%c0_35, %c4, %c0_36] : memref<16x16x16xbf16, #tpu.memory_space<vmem>>, vector<16x1x16xbf16>
    %52 = vector.shape_cast %51 : vector<16x1x16xbf16> to vector<16x16xbf16>
    %53 = vector.shape_cast %50 : vector<16x16xbf16> to vector<16x1x16xbf16>
    tpu.vector_store %arg15[%c0_35, %c4, %c0_36], %53 {strides = array<i32>} : memref<16x16x16xbf16, #tpu.memory_space<vmem>>, vector<16x1x16xbf16>,
    %c0_37 = arith.constant 0 : index
    %c80 = arith.constant 80 : index
    %54 = vector.load %arg14[%c0_37, %c80] : memref<16x256xbf16, #tpu.memory_space<vmem>>, vector<16x16xbf16>
    %c0_38 = arith.constant 0 : index
    %c5 = arith.constant 5 : index
    %c0_39 = arith.constant 0 : index
    %55 = vector.load %arg15[%c0_38, %c5, %c0_39] : memref<16x16x16xbf16, #tpu.memory_space<vmem>>, vector<16x1x16xbf16>
    %56 = vector.shape_cast %55 : vector<16x1x16xbf16> to vector<16x16xbf16>
    %57 = vector.shape_cast %54 : vector<16x16xbf16> to vector<16x1x16xbf16>
    tpu.vector_store %arg15[%c0_38, %c5, %c0_39], %57 {strides = array<i32>} : memref<16x16x16xbf16, #tpu.memory_space<vmem>>, vector<16x1x16xbf16>,
    %c0_40 = arith.constant 0 : index
    %c96 = arith.constant 96 : index
    %58 = vector.load %arg14[%c0_40, %c96] : memref<16x256xbf16, #tpu.memory_space<vmem>>, vector<16x16xbf16>
    %c0_41 = arith.constant 0 : index
    %c6 = arith.constant 6 : index
    %c0_42 = arith.constant 0 : index
    %59 = vector.load %arg15[%c0_41, %c6, %c0_42] : memref<16x16x16xbf16, #tpu.memory_space<vmem>>, vector<16x1x16xbf16>
    %60 = vector.shape_cast %59 : vector<16x1x16xbf16> to vector<16x16xbf16>
    %61 = vector.shape_cast %58 : vector<16x16xbf16> to vector<16x1x16xbf16>
    tpu.vector_store %arg15[%c0_41, %c6, %c0_42], %61 {strides = array<i32>} : memref<16x16x16xbf16, #tpu.memory_space<vmem>>, vector<16x1x16xbf16>,
    %c0_43 = arith.constant 0 : index
    %c112 = arith.constant 112 : index
    %62 = vector.load %arg14[%c0_43, %c112] : memref<16x256xbf16, #tpu.memory_space<vmem>>, vector<16x16xbf16>
    %c0_44 = arith.constant 0 : index
    %c7 = arith.constant 7 : index
    %c0_45 = arith.constant 0 : index
    %63 = vector.load %arg15[%c0_44, %c7, %c0_45] : memref<16x16x16xbf16, #tpu.memory_space<vmem>>, vector<16x1x16xbf16>
    %64 = vector.shape_cast %63 : vector<16x1x16xbf16> to vector<16x16xbf16>
    %65 = vector.shape_cast %62 : vector<16x16xbf16> to vector<16x1x16xbf16>
    tpu.vector_store %arg15[%c0_44, %c7, %c0_45], %65 {strides = array<i32>} : memref<16x16x16xbf16, #tpu.memory_space<vmem>>, vector<16x1x16xbf16>,
    %c0_46 = arith.constant 0 : index
    %c128 = arith.constant 128 : index
    %66 = vector.load %arg14[%c0_46, %c128] : memref<16x256xbf16, #tpu.memory_space<vmem>>, vector<16x16xbf16>
    %c0_47 = arith.constant 0 : index
    %c8 = arith.constant 8 : index
    %c0_48 = arith.constant 0 : index
    %67 = vector.load %arg15[%c0_47, %c8, %c0_48] : memref<16x16x16xbf16, #tpu.memory_space<vmem>>, vector<16x1x16xbf16>
    %68 = vector.shape_cast %67 : vector<16x1x16xbf16> to vector<16x16xbf16>
    %69 = vector.shape_cast %66 : vector<16x16xbf16> to vector<16x1x16xbf16>
    tpu.vector_store %arg15[%c0_47, %c8, %c0_48], %69 {strides = array<i32>} : memref<16x16x16xbf16, #tpu.memory_space<vmem>>, vector<16x1x16xbf16>,
    %c0_49 = arith.constant 0 : index
    %c144 = arith.constant 144 : index
    %70 = vector.load %arg14[%c0_49, %c144] : memref<16x256xbf16, #tpu.memory_space<vmem>>, vector<16x16xbf16>
    %c0_50 = arith.constant 0 : index
    %c9 = arith.constant 9 : index
    %c0_51 = arith.constant 0 : index
    %71 = vector.load %arg15[%c0_50, %c9, %c0_51] : memref<16x16x16xbf16, #tpu.memory_space<vmem>>, vector<16x1x16xbf16>
    %72 = vector.shape_cast %71 : vector<16x1x16xbf16> to vector<16x16xbf16>
    %73 = vector.shape_cast %70 : vector<16x16xbf16> to vector<16x1x16xbf16>
    tpu.vector_store %arg15[%c0_50, %c9, %c0_51], %73 {strides = array<i32>} : memref<16x16x16xbf16, #tpu.memory_space<vmem>>, vector<16x1x16xbf16>,
    %c0_52 = arith.constant 0 : index
    %c160 = arith.constant 160 : index
    %74 = vector.load %arg14[%c0_52, %c160] : memref<16x256xbf16, #tpu.memory_space<vmem>>, vector<16x16xbf16>
    %c0_53 = arith.constant 0 : index
    %c10 = arith.constant 10 : index
    %c0_54 = arith.constant 0 : index
    %75 = vector.load %arg15[%c0_53, %c10, %c0_54] : memref<16x16x16xbf16, #tpu.memory_space<vmem>>, vector<16x1x16xbf16>
    %76 = vector.shape_cast %75 : vector<16x1x16xbf16> to vector<16x16xbf16>
    %77 = vector.shape_cast %74 : vector<16x16xbf16> to vector<16x1x16xbf16>
    tpu.vector_store %arg15[%c0_53, %c10, %c0_54], %77 {strides = array<i32>} : memref<16x16x16xbf16, #tpu.memory_space<vmem>>, vector<16x1x16xbf16>,
    %c0_55 = arith.constant 0 : index
    %c176 = arith.constant 176 : index
    %78 = vector.load %arg14[%c0_55, %c176] : memref<16x256xbf16, #tpu.memory_space<vmem>>, vector<16x16xbf16>
    %c0_56 = arith.constant 0 : index
    %c11 = arith.constant 11 : index
    %c0_57 = arith.constant 0 : index
    %79 = vector.load %arg15[%c0_56, %c11, %c0_57] : memref<16x16x16xbf16, #tpu.memory_space<vmem>>, vector<16x1x16xbf16>
    %80 = vector.shape_cast %79 : vector<16x1x16xbf16> to vector<16x16xbf16>
    %81 = vector.shape_cast %78 : vector<16x16xbf16> to vector<16x1x16xbf16>
    tpu.vector_store %arg15[%c0_56, %c11, %c0_57], %81 {strides = array<i32>} : memref<16x16x16xbf16, #tpu.memory_space<vmem>>, vector<16x1x16xbf16>,
    %c0_58 = arith.constant 0 : index
    %c192 = arith.constant 192 : index
    %82 = vector.load %arg14[%c0_58, %c192] : memref<16x256xbf16, #tpu.memory_space<vmem>>, vector<16x16xbf16>
    %c0_59 = arith.constant 0 : index
    %c12 = arith.constant 12 : index
    %c0_60 = arith.constant 0 : index
    %83 = vector.load %arg15[%c0_59, %c12, %c0_60] : memref<16x16x16xbf16, #tpu.memory_space<vmem>>, vector<16x1x16xbf16>
    %84 = vector.shape_cast %83 : vector<16x1x16xbf16> to vector<16x16xbf16>
    %85 = vector.shape_cast %82 : vector<16x16xbf16> to vector<16x1x16xbf16>
    tpu.vector_store %arg15[%c0_59, %c12, %c0_60], %85 {strides = array<i32>} : memref<16x16x16xbf16, #tpu.memory_space<vmem>>, vector<16x1x16xbf16>,
    %c0_61 = arith.constant 0 : index
    %c208 = arith.constant 208 : index
    %86 = vector.load %arg14[%c0_61, %c208] : memref<16x256xbf16, #tpu.memory_space<vmem>>, vector<16x16xbf16>
    %c0_62 = arith.constant 0 : index
    %c13 = arith.constant 13 : index
    %c0_63 = arith.constant 0 : index
    %87 = vector.load %arg15[%c0_62, %c13, %c0_63] : memref<16x16x16xbf16, #tpu.memory_space<vmem>>, vector<16x1x16xbf16>
    %88 = vector.shape_cast %87 : vector<16x1x16xbf16> to vector<16x16xbf16>
    %89 = vector.shape_cast %86 : vector<16x16xbf16> to vector<16x1x16xbf16>
    tpu.vector_store %arg15[%c0_62, %c13, %c0_63], %89 {strides = array<i32>} : memref<16x16x16xbf16, #tpu.memory_space<vmem>>, vector<16x1x16xbf16>,
    %c0_64 = arith.constant 0 : index
    %c224 = arith.constant 224 : index
    %90 = vector.load %arg14[%c0_64, %c224] : memref<16x256xbf16, #tpu.memory_space<vmem>>, vector<16x16xbf16>
    %c0_65 = arith.constant 0 : index
    %c14 = arith.constant 14 : index
    %c0_66 = arith.constant 0 : index
    %91 = vector.load %arg15[%c0_65, %c14, %c0_66] : memref<16x16x16xbf16, #tpu.memory_space<vmem>>, vector<16x1x16xbf16>
    %92 = vector.shape_cast %91 : vector<16x1x16xbf16> to vector<16x16xbf16>
    %93 = vector.shape_cast %90 : vector<16x16xbf16> to vector<16x1x16xbf16>
    tpu.vector_store %arg15[%c0_65, %c14, %c0_66], %93 {strides = array<i32>} : memref<16x16x16xbf16, #tpu.memory_space<vmem>>, vector<16x1x16xbf16>,
    %c0_67 = arith.constant 0 : index
    %c240 = arith.constant 240 : index
    %94 = vector.load %arg14[%c0_67, %c240] : memref<16x256xbf16, #tpu.memory_space<vmem>>, vector<16x16xbf16>
    %c0_68 = arith.constant 0 : index
    %c15 = arith.constant 15 : index
    %c0_69 = arith.constant 0 : index
    %95 = vector.load %arg15[%c0_68, %c15, %c0_69] : memref<16x16x16xbf16, #tpu.memory_space<vmem>>, vector<16x1x16xbf16>
    %96 = vector.shape_cast %95 : vector<16x1x16xbf16> to vector<16x16xbf16>
    %97 = vector.shape_cast %94 : vector<16x16xbf16> to vector<16x1x16xbf16>
    tpu.vector_store %arg15[%c0_68, %c15, %c0_69], %97 {strides = array<i32>} : memref<16x16x16xbf16, #tpu.memory_space<vmem>>, vector<16x1x16xbf16>,
    %c0_70 = arith.constant 0 : index
    %c0_71 = arith.constant 0 : index
    %c0_72 = arith.constant 0 : index
    %98 = vector.load %arg15[%c0_70, %c0_71, %c0_72] : memref<16x16x16xbf16, #tpu.memory_space<vmem>>, vector<8x16x16xbf16>
    %c8_73 = arith.constant 8 : index
    %c0_74 = arith.constant 0 : index
    %c0_75 = arith.constant 0 : index
    %99 = vector.load %arg15[%c8_73, %c0_74, %c0_75] : memref<16x16x16xbf16, #tpu.memory_space<vmem>>, vector<8x16x16xbf16>
    "tpu.trace_start"() <{level = 10 : i32, message = "cik,ckj->cij"}> : () -> ()
    %cst_76 = arith.constant dense<0.000000e+00> : vector<8x16x16xf32>
    %100 = tpu.matmul %98, %99, %cst_76 {dimension_numbers = #tpu.dot_dimension_numbers<[2], [1], [1], [2], [0, 0, 0, 1, 1, 2], [0], [0]>} : vector<8x16x16xbf16>, vector<8x16x16xbf16>, vector<8x16x16xf32> -> vector<8x16x16xf32>
    "tpu.trace_stop"() : () -> ()
    %101 = arith.truncf %100 : vector<8x16x16xf32> to vector<8x16x16xbf16>
    %c0_77 = arith.constant 0 : index
    %c0_78 = arith.constant 0 : index
    %c0_79 = arith.constant 0 : index
    %102 = vector.load %arg16[%c0_77, %c0_78, %c0_79] : memref<8x16x16xbf16, #tpu.memory_space<vmem>>, vector<8x16x16xbf16>
    tpu.vector_store %arg16[%c0_77, %c0_78, %c0_79], %101 {strides = array<i32>} : memref<8x16x16xbf16, #tpu.memory_space<vmem>>, vector<8x16x16xbf16>,
    %c0_80 = arith.constant 0 : index
    %c0_81 = arith.constant 0 : index
    %c0_82 = arith.constant 0 : index
    %103 = vector.load %arg16[%c0_80, %c0_81, %c0_82] : memref<8x16x16xbf16, #tpu.memory_space<vmem>>, vector<8x1x16xbf16>
    %104 = vector.shape_cast %103 : vector<8x1x16xbf16> to vector<8x16xbf16>
    %c0_83 = arith.constant 0 : index
    %c0_84 = arith.constant 0 : index
    %105 = vector.load %arg17[%c0_83, %c0_84] : memref<8x256xbf16, #tpu.memory_space<vmem>>, vector<8x16xbf16>
    tpu.vector_store %arg17[%c0_83, %c0_84], %104 {strides = array<i32>} : memref<8x256xbf16, #tpu.memory_space<vmem>>, vector<8x16xbf16>,
    %c0_85 = arith.constant 0 : index
    %c1_86 = arith.constant 1 : index
    %c0_87 = arith.constant 0 : index
    %106 = vector.load %arg16[%c0_85, %c1_86, %c0_87] : memref<8x16x16xbf16, #tpu.memory_space<vmem>>, vector<8x1x16xbf16>
    %107 = vector.shape_cast %106 : vector<8x1x16xbf16> to vector<8x16xbf16>
    %c0_88 = arith.constant 0 : index
    %c16_89 = arith.constant 16 : index
    %108 = vector.load %arg17[%c0_88, %c16_89] : memref<8x256xbf16, #tpu.memory_space<vmem>>, vector<8x16xbf16>
    tpu.vector_store %arg17[%c0_88, %c16_89], %107 {strides = array<i32>} : memref<8x256xbf16, #tpu.memory_space<vmem>>, vector<8x16xbf16>,
    %c0_90 = arith.constant 0 : index
    %c2_91 = arith.constant 2 : index
    %c0_92 = arith.constant 0 : index
    %109 = vector.load %arg16[%c0_90, %c2_91, %c0_92] : memref<8x16x16xbf16, #tpu.memory_space<vmem>>, vector<8x1x16xbf16>
    %110 = vector.shape_cast %109 : vector<8x1x16xbf16> to vector<8x16xbf16>
    %c0_93 = arith.constant 0 : index
    %c32_94 = arith.constant 32 : index
    %111 = vector.load %arg17[%c0_93, %c32_94] : memref<8x256xbf16, #tpu.memory_space<vmem>>, vector<8x16xbf16>
    tpu.vector_store %arg17[%c0_93, %c32_94], %110 {strides = array<i32>} : memref<8x256xbf16, #tpu.memory_space<vmem>>, vector<8x16xbf16>,
    %c0_95 = arith.constant 0 : index
    %c3_96 = arith.constant 3 : index
    %c0_97 = arith.constant 0 : index
    %112 = vector.load %arg16[%c0_95, %c3_96, %c0_97] : memref<8x16x16xbf16, #tpu.memory_space<vmem>>, vector<8x1x16xbf16>
    %113 = vector.shape_cast %112 : vector<8x1x16xbf16> to vector<8x16xbf16>
    %c0_98 = arith.constant 0 : index
    %c48_99 = arith.constant 48 : index
    %114 = vector.load %arg17[%c0_98, %c48_99] : memref<8x256xbf16, #tpu.memory_space<vmem>>, vector<8x16xbf16>
    tpu.vector_store %arg17[%c0_98, %c48_99], %113 {strides = array<i32>} : memref<8x256xbf16, #tpu.memory_space<vmem>>, vector<8x16xbf16>,
    %c0_100 = arith.constant 0 : index
    %c4_101 = arith.constant 4 : index
    %c0_102 = arith.constant 0 : index
    %115 = vector.load %arg16[%c0_100, %c4_101, %c0_102] : memref<8x16x16xbf16, #tpu.memory_space<vmem>>, vector<8x1x16xbf16>
    %116 = vector.shape_cast %115 : vector<8x1x16xbf16> to vector<8x16xbf16>
    %c0_103 = arith.constant 0 : index
    %c64_104 = arith.constant 64 : index
    %117 = vector.load %arg17[%c0_103, %c64_104] : memref<8x256xbf16, #tpu.memory_space<vmem>>, vector<8x16xbf16>
    tpu.vector_store %arg17[%c0_103, %c64_104], %116 {strides = array<i32>} : memref<8x256xbf16, #tpu.memory_space<vmem>>, vector<8x16xbf16>,
    %c0_105 = arith.constant 0 : index
    %c5_106 = arith.constant 5 : index
    %c0_107 = arith.constant 0 : index
    %118 = vector.load %arg16[%c0_105, %c5_106, %c0_107] : memref<8x16x16xbf16, #tpu.memory_space<vmem>>, vector<8x1x16xbf16>
    %119 = vector.shape_cast %118 : vector<8x1x16xbf16> to vector<8x16xbf16>
    %c0_108 = arith.constant 0 : index
    %c80_109 = arith.constant 80 : index
    %120 = vector.load %arg17[%c0_108, %c80_109] : memref<8x256xbf16, #tpu.memory_space<vmem>>, vector<8x16xbf16>
    tpu.vector_store %arg17[%c0_108, %c80_109], %119 {strides = array<i32>} : memref<8x256xbf16, #tpu.memory_space<vmem>>, vector<8x16xbf16>,
    %c0_110 = arith.constant 0 : index
    %c6_111 = arith.constant 6 : index
    %c0_112 = arith.constant 0 : index
    %121 = vector.load %arg16[%c0_110, %c6_111, %c0_112] : memref<8x16x16xbf16, #tpu.memory_space<vmem>>, vector<8x1x16xbf16>
    %122 = vector.shape_cast %121 : vector<8x1x16xbf16> to vector<8x16xbf16>
    %c0_113 = arith.constant 0 : index
    %c96_114 = arith.constant 96 : index
    %123 = vector.load %arg17[%c0_113, %c96_114] : memref<8x256xbf16, #tpu.memory_space<vmem>>, vector<8x16xbf16>
    tpu.vector_store %arg17[%c0_113, %c96_114], %122 {strides = array<i32>} : memref<8x256xbf16, #tpu.memory_space<vmem>>, vector<8x16xbf16>,
    %c0_115 = arith.constant 0 : index
    %c7_116 = arith.constant 7 : index
    %c0_117 = arith.constant 0 : index
    %124 = vector.load %arg16[%c0_115, %c7_116, %c0_117] : memref<8x16x16xbf16, #tpu.memory_space<vmem>>, vector<8x1x16xbf16>
    %125 = vector.shape_cast %124 : vector<8x1x16xbf16> to vector<8x16xbf16>
    %c0_118 = arith.constant 0 : index
    %c112_119 = arith.constant 112 : index
    %126 = vector.load %arg17[%c0_118, %c112_119] : memref<8x256xbf16, #tpu.memory_space<vmem>>, vector<8x16xbf16>
    tpu.vector_store %arg17[%c0_118, %c112_119], %125 {strides = array<i32>} : memref<8x256xbf16, #tpu.memory_space<vmem>>, vector<8x16xbf16>,
    %c0_120 = arith.constant 0 : index
    %c8_121 = arith.constant 8 : index
    %c0_122 = arith.constant 0 : index
    %127 = vector.load %arg16[%c0_120, %c8_121, %c0_122] : memref<8x16x16xbf16, #tpu.memory_space<vmem>>, vector<8x1x16xbf16>
    %128 = vector.shape_cast %127 : vector<8x1x16xbf16> to vector<8x16xbf16>
    %c0_123 = arith.constant 0 : index
    %c128_124 = arith.constant 128 : index
    %129 = vector.load %arg17[%c0_123, %c128_124] : memref<8x256xbf16, #tpu.memory_space<vmem>>, vector<8x16xbf16>
    tpu.vector_store %arg17[%c0_123, %c128_124], %128 {strides = array<i32>} : memref<8x256xbf16, #tpu.memory_space<vmem>>, vector<8x16xbf16>,
    %c0_125 = arith.constant 0 : index
    %c9_126 = arith.constant 9 : index
    %c0_127 = arith.constant 0 : index
    %130 = vector.load %arg16[%c0_125, %c9_126, %c0_127] : memref<8x16x16xbf16, #tpu.memory_space<vmem>>, vector<8x1x16xbf16>
    %131 = vector.shape_cast %130 : vector<8x1x16xbf16> to vector<8x16xbf16>
    %c0_128 = arith.constant 0 : index
    %c144_129 = arith.constant 144 : index
    %132 = vector.load %arg17[%c0_128, %c144_129] : memref<8x256xbf16, #tpu.memory_space<vmem>>, vector<8x16xbf16>
    tpu.vector_store %arg17[%c0_128, %c144_129], %131 {strides = array<i32>} : memref<8x256xbf16, #tpu.memory_space<vmem>>, vector<8x16xbf16>,
    %c0_130 = arith.constant 0 : index
    %c10_131 = arith.constant 10 : index
    %c0_132 = arith.constant 0 : index
    %133 = vector.load %arg16[%c0_130, %c10_131, %c0_132] : memref<8x16x16xbf16, #tpu.memory_space<vmem>>, vector<8x1x16xbf16>
    %134 = vector.shape_cast %133 : vector<8x1x16xbf16> to vector<8x16xbf16>
    %c0_133 = arith.constant 0 : index
    %c160_134 = arith.constant 160 : index
    %135 = vector.load %arg17[%c0_133, %c160_134] : memref<8x256xbf16, #tpu.memory_space<vmem>>, vector<8x16xbf16>
    tpu.vector_store %arg17[%c0_133, %c160_134], %134 {strides = array<i32>} : memref<8x256xbf16, #tpu.memory_space<vmem>>, vector<8x16xbf16>,
    %c0_135 = arith.constant 0 : index
    %c11_136 = arith.constant 11 : index
    %c0_137 = arith.constant 0 : index
    %136 = vector.load %arg16[%c0_135, %c11_136, %c0_137] : memref<8x16x16xbf16, #tpu.memory_space<vmem>>, vector<8x1x16xbf16>
    %137 = vector.shape_cast %136 : vector<8x1x16xbf16> to vector<8x16xbf16>
    %c0_138 = arith.constant 0 : index
    %c176_139 = arith.constant 176 : index
    %138 = vector.load %arg17[%c0_138, %c176_139] : memref<8x256xbf16, #tpu.memory_space<vmem>>, vector<8x16xbf16>
    tpu.vector_store %arg17[%c0_138, %c176_139], %137 {strides = array<i32>} : memref<8x256xbf16, #tpu.memory_space<vmem>>, vector<8x16xbf16>,
    %c0_140 = arith.constant 0 : index
    %c12_141 = arith.constant 12 : index
    %c0_142 = arith.constant 0 : index
    %139 = vector.load %arg16[%c0_140, %c12_141, %c0_142] : memref<8x16x16xbf16, #tpu.memory_space<vmem>>, vector<8x1x16xbf16>
    %140 = vector.shape_cast %139 : vector<8x1x16xbf16> to vector<8x16xbf16>
    %c0_143 = arith.constant 0 : index
    %c192_144 = arith.constant 192 : index
    %141 = vector.load %arg17[%c0_143, %c192_144] : memref<8x256xbf16, #tpu.memory_space<vmem>>, vector<8x16xbf16>
    tpu.vector_store %arg17[%c0_143, %c192_144], %140 {strides = array<i32>} : memref<8x256xbf16, #tpu.memory_space<vmem>>, vector<8x16xbf16>,
    %c0_145 = arith.constant 0 : index
    %c13_146 = arith.constant 13 : index
    %c0_147 = arith.constant 0 : index
    %142 = vector.load %arg16[%c0_145, %c13_146, %c0_147] : memref<8x16x16xbf16, #tpu.memory_space<vmem>>, vector<8x1x16xbf16>
    %143 = vector.shape_cast %142 : vector<8x1x16xbf16> to vector<8x16xbf16>
    %c0_148 = arith.constant 0 : index
    %c208_149 = arith.constant 208 : index
    %144 = vector.load %arg17[%c0_148, %c208_149] : memref<8x256xbf16, #tpu.memory_space<vmem>>, vector<8x16xbf16>
    tpu.vector_store %arg17[%c0_148, %c208_149], %143 {strides = array<i32>} : memref<8x256xbf16, #tpu.memory_space<vmem>>, vector<8x16xbf16>,
    %c0_150 = arith.constant 0 : index
    %c14_151 = arith.constant 14 : index
    %c0_152 = arith.constant 0 : index
    %145 = vector.load %arg16[%c0_150, %c14_151, %c0_152] : memref<8x16x16xbf16, #tpu.memory_space<vmem>>, vector<8x1x16xbf16>
    %146 = vector.shape_cast %145 : vector<8x1x16xbf16> to vector<8x16xbf16>
    %c0_153 = arith.constant 0 : index
    %c224_154 = arith.constant 224 : index
    %147 = vector.load %arg17[%c0_153, %c224_154] : memref<8x256xbf16, #tpu.memory_space<vmem>>, vector<8x16xbf16>
    tpu.vector_store %arg17[%c0_153, %c224_154], %146 {strides = array<i32>} : memref<8x256xbf16, #tpu.memory_space<vmem>>, vector<8x16xbf16>,
    %c0_155 = arith.constant 0 : index
    %c15_156 = arith.constant 15 : index
    %c0_157 = arith.constant 0 : index
    %148 = vector.load %arg16[%c0_155, %c15_156, %c0_157] : memref<8x16x16xbf16, #tpu.memory_space<vmem>>, vector<8x1x16xbf16>
    %149 = vector.shape_cast %148 : vector<8x1x16xbf16> to vector<8x16xbf16>
    %c0_158 = arith.constant 0 : index
    %c240_159 = arith.constant 240 : index
    %150 = vector.load %arg17[%c0_158, %c240_159] : memref<8x256xbf16, #tpu.memory_space<vmem>>, vector<8x16xbf16>
    tpu.vector_store %arg17[%c0_158, %c240_159], %149 {strides = array<i32>} : memref<8x256xbf16, #tpu.memory_space<vmem>>, vector<8x16xbf16>,
    %c0_160 = arith.constant 0 : index
    %c0_161 = arith.constant 0 : index
    %151 = vector.load %arg7[%c0_160, %c0_161] : memref<8x8xbf16, #tpu.memory_space<vmem>>, vector<8x8xbf16>
    %c0_162 = arith.constant 0 : index
    %c0_163 = arith.constant 0 : index
    %152 = vector.load %arg17[%c0_162, %c0_163] : memref<8x256xbf16, #tpu.memory_space<vmem>>, vector<8x256xbf16>
    %cst_164 = arith.constant dense<0.000000e+00> : vector<8x256xf32>
    %153 = tpu.matmul %151, %152, %cst_164 {dimension_numbers = #tpu.dot_dimension_numbers<[1], [0], [0], [1], [0, 0, 1, 1], [], []>} : vector<8x8xbf16>, vector<8x256xbf16>, vector<8x256xf32> -> vector<8x256xf32>
    %c0_165 = arith.constant 0 : index
    %c0_166 = arith.constant 0 : index
    %154 = vector.load %arg8[%c0_165, %c0_166] : memref<8x1xf32, #tpu.memory_space<vmem>>, vector<8x1xf32>
    %155 = vector.broadcast %154 : vector<8x1xf32> to vector<8x256xf32>
    %156 = arith.addf %153, %155 : vector<8x256xf32>
    %157 = vector.broadcast %3 : vector<1x256xf32> to vector<8x256xf32>
    %158 = arith.mulf %156, %157 : vector<8x256xf32>
    %159 = arith.addf %158, %1 : vector<8x256xf32>
    %c0_167 = arith.constant 0 : index
    %c0_168 = arith.constant 0 : index
    %160 = vector.load %arg9[%c0_167, %c0_168] : memref<16x8xbf16, #tpu.memory_space<vmem>>, vector<16x8xbf16>
    %161 = arith.truncf %159 : vector<8x256xf32> to vector<8x256xbf16>
    %cst_169 = arith.constant dense<0.000000e+00> : vector<16x256xf32>
    %162 = tpu.matmul %160, %161, %cst_169 {dimension_numbers = #tpu.dot_dimension_numbers<[1], [0], [0], [1], [0, 0, 1, 1], [], []>} : vector<16x8xbf16>, vector<8x256xbf16>, vector<16x256xf32> -> vector<16x256xf32>
    %c0_170 = arith.constant 0 : index
    %c0_171 = arith.constant 0 : index
    %163 = vector.load %arg10[%c0_170, %c0_171] : memref<16x1xf32, #tpu.memory_space<vmem>>, vector<16x1xf32>
    %164 = vector.broadcast %163 : vector<16x1xf32> to vector<16x256xf32>
    %165 = arith.addf %162, %164 : vector<16x256xf32>
    %cst_172 = arith.constant 0.000000e+00 : f32
    %166 = vector.broadcast %cst_172 : f32 to vector<16x256xf32>
    %167 = arith.subf %166, %165 : vector<16x256xf32>
    %168 = math.exp %167 : vector<16x256xf32>
    %cst_173 = arith.constant 1.000000e+00 : f32
    %169 = vector.broadcast %cst_173 : f32 to vector<16x256xf32>
    %170 = arith.addf %169, %168 : vector<16x256xf32>
    %171 = tpu.reciprocal %170 {approx = true} : vector<16x256xf32> -> vector<16x256xf32>
    %172 = arith.mulf %165, %171 : vector<16x256xf32>
    %c0_174 = arith.constant 0 : index
    %c0_175 = arith.constant 0 : index
    %173 = vector.load %arg11[%c0_174, %c0_175] : memref<8x16xbf16, #tpu.memory_space<vmem>>, vector<8x16xbf16>
    %174 = arith.truncf %172 : vector<16x256xf32> to vector<16x256xbf16>
    %cst_176 = arith.constant dense<0.000000e+00> : vector<8x256xf32>
    %175 = tpu.matmul %173, %174, %cst_176 {dimension_numbers = #tpu.dot_dimension_numbers<[1], [0], [0], [1], [0, 0, 1, 1], [], []>} : vector<8x16xbf16>, vector<16x256xbf16>, vector<8x256xf32> -> vector<8x256xf32>
    %c0_177 = arith.constant 0 : index
    %c0_178 = arith.constant 0 : index
    %176 = vector.load %arg12[%c0_177, %c0_178] : memref<8x1xf32, #tpu.memory_space<vmem>>, vector<8x1xf32>
    %177 = vector.broadcast %176 : vector<8x1xf32> to vector<8x256xf32>
    %178 = arith.addf %175, %177 : vector<8x256xf32>
    %179 = vector.broadcast %3 : vector<1x256xf32> to vector<8x256xf32>
    %180 = arith.mulf %178, %179 : vector<8x256xf32>
    %181 = arith.addf %180, %159 : vector<8x256xf32>
    %c0_179 = arith.constant 0 : index
    %c0_180 = arith.constant 0 : index
    %c0_181 = arith.constant 0 : index
    %182 = vector.load %arg13[%c0_179, %c0_180, %c0_181] : memref<1x8x256xf32, #tpu.memory_space<vmem>>, vector<1x8x256xf32>
    %183 = vector.shape_cast %182 : vector<1x8x256xf32> to vector<8x256xf32>
    %184 = vector.shape_cast %181 : vector<8x256xf32> to vector<1x8x256xf32>
    tpu.vector_store %arg13[%c0_179, %c0_180, %c0_181], %184 {strides = array<i32>} : memref<1x8x256xf32, #tpu.memory_space<vmem>>, vector<1x8x256xf32>,
    return
  }
  func.func @transform_0(%arg0: i32) -> (i32, i32, i32) {
    %c0_i32 = arith.constant 0 : i32
    %c0_i32_0 = arith.constant 0 : i32
    %c0_i32_1 = arith.constant 0 : i32
    return %arg0, %c0_i32, %c0_i32_0 : i32, i32, i32
  }
  func.func @transform_1(%arg0: i32) -> (i32, i32, i32) {
    %c0_i32 = arith.constant 0 : i32
    %c0_i32_0 = arith.constant 0 : i32
    %c0_i32_1 = arith.constant 0 : i32
    return %arg0, %c0_i32, %c0_i32_0 : i32, i32, i32
  }
  func.func @transform_2(%arg0: i32) -> (i32, i32) {
    %c0_i32 = arith.constant 0 : i32
    %c0_i32_0 = arith.constant 0 : i32
    %c0_i32_1 = arith.constant 0 : i32
    return %c0_i32, %c0_i32_0 : i32, i32
  }
  func.func @transform_3(%arg0: i32) -> (i32, i32) {
    %c0_i32 = arith.constant 0 : i32
    %c0_i32_0 = arith.constant 0 : i32
    %c0_i32_1 = arith.constant 0 : i32
    return %c0_i32, %c0_i32_0 : i32, i32
  }
  func.func @transform_4(%arg0: i32) -> (i32, i32) {
    %c0_i32 = arith.constant 0 : i32
    %c0_i32_0 = arith.constant 0 : i32
    %c0_i32_1 = arith.constant 0 : i32
    return %c0_i32, %c0_i32_0 : i32, i32
  }
  func.func @transform_5(%arg0: i32) -> (i32, i32) {
    %c0_i32 = arith.constant 0 : i32
    %c0_i32_0 = arith.constant 0 : i32
    %c0_i32_1 = arith.constant 0 : i32
    return %c0_i32, %c0_i32_0 : i32, i32
  }
  func.func @transform_6(%arg0: i32) -> (i32, i32) {
    %c0_i32 = arith.constant 0 : i32
    %c0_i32_0 = arith.constant 0 : i32
    %c0_i32_1 = arith.constant 0 : i32
    return %c0_i32, %c0_i32_0 : i32, i32
  }
  func.func @transform_7(%arg0: i32) -> (i32, i32) {
    %c0_i32 = arith.constant 0 : i32
    %c0_i32_0 = arith.constant 0 : i32
    %c0_i32_1 = arith.constant 0 : i32
    return %c0_i32, %c0_i32_0 : i32, i32
  }
  func.func @transform_8(%arg0: i32) -> (i32, i32) {
    %c0_i32 = arith.constant 0 : i32
    %c0_i32_0 = arith.constant 0 : i32
    %c0_i32_1 = arith.constant 0 : i32
    return %c0_i32, %c0_i32_0 : i32, i32
  }
  func.func @transform_9(%arg0: i32) -> (i32, i32) {
    %c0_i32 = arith.constant 0 : i32
    %c0_i32_0 = arith.constant 0 : i32
    %c0_i32_1 = arith.constant 0 : i32
    return %c0_i32, %c0_i32_0 : i32, i32
  }
  func.func @transform_10(%arg0: i32) -> (i32, i32) {
    %c0_i32 = arith.constant 0 : i32
    %c0_i32_0 = arith.constant 0 : i32
    %c0_i32_1 = arith.constant 0 : i32
    return %c0_i32, %c0_i32_0 : i32, i32
  }
  func.func @transform_11(%arg0: i32) -> (i32, i32) {
    %c0_i32 = arith.constant 0 : i32
    %c0_i32_0 = arith.constant 0 : i32
    %c0_i32_1 = arith.constant 0 : i32
    return %c0_i32, %c0_i32_0 : i32, i32
  }
  func.func @transform_12(%arg0: i32) -> (i32, i32, i32) {
    %c0_i32 = arith.constant 0 : i32
    %c0_i32_0 = arith.constant 0 : i32
    %c0_i32_1 = arith.constant 0 : i32
    return %arg0, %c0_i32, %c0_i32_0 : i32, i32, i32
  }
}

</mosaic_0001>

<bundles_post_ra>
// kernel: tpu_custom_call.1
= control target key start
LH: loop header
LB: loop body
LE: loop exit
PB: predicated region body
PF: predicated region fallthrough
CT: control target
= control target key end

     0   :  { %s8778_s0 = inlined_call_operand.vmem [shape: f32[2,8,256], index: 0, kind: input, shape index: {}]   ;;  %s8779_s1 = inlined_call_operand.vmem [shape: f32[2,1,256], index: 1, kind: input, shape index: {}]   ;;  %s8780_s2 = inlined_call_operand.vmem [shape: bf16[16,8], index: 2, kind: input, shape index: {}]   ;;  %s8781_s3 = inlined_call_operand.vmem [shape: f32[16,1], index: 3, kind: input, shape index: {}]   ;;  %s8782_s4 = inlined_call_operand.vmem [shape: bf16[16,16], index: 4, kind: input, shape index: {}]   ;;  %s8783_s5 = inlined_call_operand.vmem [shape: f32[16,1], index: 5, kind: input, shape index: {}]   ;;  %s8784_s6 = inlined_call_operand.vmem [shape: bf16[8,8], index: 6, kind: input, shape index: {}]   ;;  %s8785_s7 = inlined_call_operand.vmem [shape: f32[8,1], index: 7, kind: input, shape index: {}]   ;;  %s8786_s8 = inlined_call_operand.vmem [shape: bf16[16,8], index: 8, kind: input, shape index: {}]   ;;  %s8787_s9 = inlined_call_operand.vmem [shape: f32[16,1], index: 9, kind: input, shape index: {}]   ;;  %s8788_s10 = inlined_call_operand.vmem [shape: bf16[8,16], index: 10, kind: input, shape index: {}]   ;;  %s8789_s11 = inlined_call_operand.vmem [shape: f32[8,1], index: 11, kind: input, shape index: {}]   ;;  %s8790_s12 = inlined_call_operand.hbm [shape: f32[2,8,256], index: 12, kind: output, shape index: {}]  }
   0x1   :  { %8804 = sst [smem:[#allocation15_spill]] %s8778_s0 }
   0x2   :  { %8805 = sst [smem:[#allocation16_spill]] %s8779_s1 }
   0x3   :  { %17 = vsyncpa [#allocation7], 0 }
   0x4   :  { %19 = vsyncpa [#allocation7 + $0x1], 0  ;;  %s6890_s21 = smov 0   ;;  %s6892_s22 = smov 0  }
   0x5   :  { %s6894_s23 = smov 0   ;;  %s6896_s24 = smov 0  }
   0x6 LB: > { %s6911_s25 = sadd.s32 4294967295, %s6811_s24   ;;  %s6156_s26 = sadd.s32 4294967294, %s6811_s24   ;;  %s6811_s24 = sphi %s6896_s24, %s8883_s24   ;;  %s6807_s23 = sphi %s6894_s23, %s8882_s23   ;;  %s6803_s22 = sphi %s6892_s22, %s8881_s22   ;;  %s6799_s21 = sphi %s6890_s21, %s8880_s21  }
   0x7   : > { %s6915_s27 = sadd.s32 1, %s6811_s24   ;;  %s294_s28 = sadd.s32 1, %s6807_s23 }
   0x8   : > { %s291_s29 = ssub.s32 %s6811_s24, %s6915_s27  ;;  %p304_p0 = scmp.ne.s32.totalorder %s6807_s23, %s6803_s22 }
   0x9   : > { %p292_p1 = scmp.eq.s32.totalorder %s291_s29, 0  ;;  %p305_p2 = scmp.eq.s32.totalorder %s6911_s25, 1 }
   0xa   : > { %p310_p3 = scmp.ne.s32.totalorder %s6803_s22, %s6799_s21  ;;  %p311_p4 = scmp.eq.s32.totalorder %s6156_s26, 1 }
   0xb   : > { %s6926_s30 = scalar_select %p292_p1, %s6807_s23, %s294_s28  }
   0xc   : > { %p6928_p5 = por %p305_p2, %p304_p0  ;;  %p6932_p6 = por %p311_p4, %p310_p3 }
   0xd   : > { %p6159_p7 = scmp.ge.s32.totalorder %s6811_s24, 1  ;;  %p374_p8 = scmp.lt.s32.totalorder %s6811_s24, 3 }
   0xf   : > { %p375_p9 = pnand %p6159_p7, %p374_p8 }
  0x11   : > { %378 = sbr.rel (%p375_p9) target bundleno = 2220 (0x8ac), region = 68 }
  0x18   : > { %p420_p10 = scmp.lt.s32.totalorder %s6911_s25, 1  ;;  %v8799_v0 = vmov 0   ;;  %v437_v1 = vld [vmem:[%s8781_s3] sm:$0xff]  ;;  %v438_v2 = vld [vmem:[%s8781_s3 + $0x8] sm:$0xff]  ;;  %s8808_s0 = sld [smem:[#allocation15_spill]]  ;;  %vm8792_vm0 = vcmask 1043456  }
  0x19   : > { %497 = vmatprep.mubr.bf16.mxu0 %v8799_v0  ;;  %6564 = vset.pattern.permute.xlu0 %v8799_v0  ;;  %v6566_v8 = vld [vmem:[%s8780_s2] sm:$0xff]   ;;  %vm8791_vm1 = vcmask 64512   ;;  %v537_v9 = vld [vmem:[%s8783_s5 + $0x8] sm:$0xff]  ;;  %vm8795_vm2 = vcmask 130048   ;;  %s8809_s1 = sld [smem:[#allocation16_spill]]  ;;  %vm806_vm3 = vcmask 122880  }
  0x1a   : > { %s6945_s17 = scalar_select %p420_p10, %s6911_s25, 1  ;;  %441 = vperm.xlu0 %6564, %v437_v1   ;;  %589 = vmatprep.mubr.bf16.mxu1 %v8799_v0  ;;  %v536_v10 = vld [vmem:[%s8783_s5] sm:$0xff]  ;;  %vm807_vm4 = vsmask.f32 256  ;;  %vm2738_vm5 = vcmask 126980   ;;  %vm8793_vm9 = vmmov 0  }
  0x1b   : > { %6565 = vset.pattern.permute.xlu1 %v8799_v0  ;;  %v6567_v47 = vld [vmem:[%s8782_s4] sm:$0xff]   ;;  %vm2739_vm6 = vsmask.f32 4352  ;;  %s6816_s26 = smov 96   ;;  %s6817_s28 = smov 32   ;;  %vm7095_vm7 = vmand %vm806_vm3, %vm807_vm4  ;;  %vm1788_vm10 = vcmask 124930  }
  0x1c   : > { %s6446_s20 = sshll.u32 %s6945_s17, 4  ;;  %545 = vperm.xlu1 %6565, %v537_v9   ;;  %s6163_s16 = sshll.u32 %s6945_s17, 1  ;;  %vm7106_vm8 = vmand %vm2738_vm5, %vm2739_vm6  ;;  %vm1789_vm11 = vsmask.f32 2304  ;;  %vm1297_vm12 = vcmask 123905   ;;  %vm2279_vm4 = vcmask 125955  }
  0x1d   : > { %s6815_s17 = smov 64   ;;  %s6818_s15 = smov 112   ;;  %vm1298_vm13 = vsmask.f32 1280  ;;  %vm7362_vm14 = vmand %vm1788_vm10, %vm1789_vm11  ;;  %vm2280_vm6 = vsmask.f32 3328 }
  0x1e   : > { %s6956_s29 = scalar_lea.vmem %s8808_s0, %s6446_s20  ;;  %446 = vperm.xlu0 %6564, %v438_v2   ;;  %s6820_s18 = smov 48   ;;  %vm7369_vm15 = vmand %vm1297_vm12, %vm1298_vm13  ;;  %vm3230_vm11 = vsmask.f32 5376 }
  0x1f   : > { %v431_v3 = vld [vmem:[%s6956_s29 + $0x8] sm:$0xff]  ;;  %v430_v4 = vld [vmem:[%s6956_s29] sm:$0xff]  ;;  %s428_s20 = scalar_lea.vmem %s8809_s1, %s6163_s16  ;;  %s6819_s16 = smov 80  }
  0x20   : > { %v434_v5 = vpack.c.bf16 %v431_v3, %v431_v3  ;;  %v433_v6 = vpack.c.bf16 %v430_v4, %v430_v4  ;;  %540 = vperm.xlu1 %6565, %v536_v10   ;;  %s6821_s19 = smov 16  }
  0x22   : > { %6165 = vmatprep.subr.msk.bf16.mxu0 %vm8792_vm0, %v434_v5  ;;  %v460_v7 = vsel %vm8792_vm0, %v433_v6, 0  ;;  %vm1052_vm0 = vsmask.f32 7938 }
  0x23   : > { %466 = vmatpush1.bf16.msra.mxu0 %v460_v7  ;;  %v625_v7 = vlaneseq }
  0x26   : > { %6166 = vmatmul.mubr.msk.bf16.vlgmr.msra.gmra.mrb[0].mxu0 %vm8791_vm1, %v6566_v8  ;;  %vm4212_vm1 = vsmask.f32 7424 }
  0x99   : > { %v442_v11 = vpop.permute.xlu0 %441 }
  0x9b   : > { %v546_v48 = vpop.permute.xlu1 %545 }
  0x9d   : > { %v447_v15 = vpop.permute.xlu0 %446 }
  0x9f   : > { %v541_v49 = vpop.permute.xlu1 %540 }
  0xf9   : > { %v499_v12 = vpop.f32.mrb[0].mxu0 }
  0xfa   : > { %v500_v13 = vadd.f32 %v499_v12, %v442_v11  ;;  %v501_v14 = vpop.f32.mrb[1].mxu0  ;;  %v626_v12 = vshrl.u32 %v625_v7, 7 }
  0xfb   : > { %v502_v16 = vadd.f32 %v501_v14, %v442_v11  ;;  %v503_v17 = vpop.f32.mrb[2].mxu0  ;;  %v6814_v14 = vmov 1966171168  }
  0xfc   : > { %v508_v18 = vsub.f32 0.0, %v500_v13  ;;  %v504_v19 = vadd.f32 %v503_v17, %v447_v15  ;;  %v505_v20 = vpop.f32.mrb[3].mxu0  ;;  %v631_v17 = vsub.s32 1, %v626_v12 }
  0xfd   : > { %v509_v21 = vsub.f32 0.0, %v502_v16  ;;  %v506_v22 = vadd.f32 %v505_v20, %v447_v15  ;;  %v647_v15 = vunpack.c.l.s4 %v6814_v14 }
  0xfe   : > { %v512_v23 = vmul.f32 1.442695, %v508_v18  ;;  %v510_v24 = vsub.f32 0.0, %v504_v19 }
  0xff   : > { %v514_v25 = vmul.f32 1.442695, %v509_v21  ;;  %v511_v26 = vsub.f32 0.0, %v506_v22  ;;  %v648_v21 = vunpack.c.0.s8 %v647_v15 }
 0x100   : > { %6699 = vpow2.f32 %v512_v23  ;;  %v516_v27 = vmul.f32 1.442695, %v510_v24 }
 0x101   : > { %6701 = vpow2.f32 %v514_v25  ;;  %v518_v28 = vmul.f32 1.442695, %v511_v26 }
 0x102   : > { %6703 = vpow2.f32 %v516_v27 }
 0x103   : > { %6705 = vpow2.f32 %v518_v28 }
 0x10a   : > { %v6700_v29 = vpop.eup %6699 }
 0x10b   : > { %v6702_v30 = vpop.eup %6701  ;;  %v520_v31 = vadd.f32 1.0, %v6700_v29  ;;  %v651_v29 = vsub.s32 %v648_v21, %v626_v12 }
 0x10c   : > { %v6704_v32 = vpop.eup %6703  ;;  %v521_v33 = vadd.f32 1.0, %v6702_v30 }
 0x10d   : > { %v6706_v34 = vpop.eup %6705  ;;  %6707 = vrcp.f32 %v520_v31  ;;  %v522_v35 = vadd.f32 1.0, %v6704_v32 }
 0x10e   : > { %6709 = vrcp.f32 %v521_v33  ;;  %v523_v36 = vadd.f32 1.0, %v6706_v34 }
 0x10f   : > { %6711 = vrcp.f32 %v522_v35 }
 0x110   : > { %6713 = vrcp.f32 %v523_v36 }
 0x117   : > { %v6708_v37 = vpop.eup %6707 }
 0x118   : > { %v6710_v38 = vpop.eup %6709  ;;  %v528_v41 = vmul.f32 %v6708_v37, %v500_v13  ;;  %v6980_v13 = vsub.s32 0, %v626_v12 }
 0x119   : > { %v6712_v39 = vpop.eup %6711  ;;  %v529_v43 = vmul.f32 %v6710_v38, %v502_v16  ;;  %v432_v16 = vld [vmem:[%s428_s20] sm:$0x3] }
 0x11a   : > { %v6714_v40 = vpop.eup %6713  ;;  %v530_v42 = vmul.f32 %v6712_v39, %v504_v19  ;;  %v6983_v20 = vrot.slane %v432_v16, %v6980_v13  ;;  %v6985_v24 = vrot.slane %v432_v16, %v631_v17 }
 0x11b   : > { %v531_v44 = vmul.f32 %v6714_v40, %v506_v22 }
 0x11c   : > { %v534_v45 = vpack.c.bf16 %v530_v42, %v528_v41  ;;  %8810 = vst [vmem:[#allocation9_spill] sm:$0xff] %v6983_v20  ;;  %8811 = vst [vmem:[#allocation10_spill] sm:$0xff] %v6985_v24 }
 0x11d   : > { %v535_v46 = vpack.c.bf16 %v531_v44, %v529_v43 }
 0x11f   : > { %557 = vmatprep.subr.bf16.mxu1 %v535_v46 }
 0x120   : > { %558 = vmatpush1.bf16.msra.mxu1 %v534_v45 }
 0x123   : > { %6168 = vmatmul.mubr.msk.bf16.vlgmr.msra.gmra.mrb[0].mxu1 %vm8795_vm2, %v6567_v47  ;;  %vm1543_vm2 = vsmask.f32 7942 }
 0x1f6   : > { %v591_v50 = vpop.f32.mrb[0].mxu1 }
 0x1f7   : > { %v592_v51 = vadd.f32 %v591_v50, %v541_v49  ;;  %v593_v52 = vpop.f32.mrb[1].mxu1 }
 0x1f8   : > { %v594_v53 = vadd.f32 %v593_v52, %v541_v49  ;;  %v595_v54 = vpop.f32.mrb[2].mxu1 }
 0x1f9   : > { %v600_v55 = vsub.f32 0.0, %v592_v51  ;;  %v596_v56 = vadd.f32 %v595_v54, %v546_v48  ;;  %v597_v57 = vpop.f32.mrb[3].mxu1 }
 0x1fa   : > { %v601_v58 = vsub.f32 0.0, %v594_v53  ;;  %v598_v59 = vadd.f32 %v597_v57, %v546_v48 }
 0x1fb   : > { %v604_v60 = vmul.f32 1.442695, %v600_v55  ;;  %v602_v61 = vsub.f32 0.0, %v596_v56 }
 0x1fc   : > { %v606_v62 = vmul.f32 1.442695, %v601_v58  ;;  %v603_v63 = vsub.f32 0.0, %v598_v59 }
 0x1fd   : > { %6715 = vpow2.f32 %v604_v60  ;;  %v608_v1 = vmul.f32 1.442695, %v602_v61 }
 0x1fe   : > { %6717 = vpow2.f32 %v606_v62  ;;  %v610_v2 = vmul.f32 1.442695, %v603_v63 }
 0x1ff   : > { %6719 = vpow2.f32 %v608_v1 }
 0x200   : > { %6721 = vpow2.f32 %v610_v2 }
 0x207   : > { %v6716_v3 = vpop.eup %6715 }
 0x208   : > { %v6718_v4 = vpop.eup %6717  ;;  %v612_v5 = vadd.f32 1.0, %v6716_v3 }
 0x209   : > { %v6720_v6 = vpop.eup %6719  ;;  %v613_v8 = vadd.f32 1.0, %v6718_v4 }
 0x20a   : > { %v6722_v9 = vpop.eup %6721  ;;  %6723 = vrcp.f32 %v612_v5  ;;  %v614_v10 = vadd.f32 1.0, %v6720_v6 }
 0x20b   : > { %6725 = vrcp.f32 %v613_v8  ;;  %v615_v11 = vadd.f32 1.0, %v6722_v9 }
 0x20c   : > { %6727 = vrcp.f32 %v614_v10 }
 0x20d   : > { %6729 = vrcp.f32 %v615_v11 }
 0x214   : > { %v6724_v18 = vpop.eup %6723 }
 0x215   : > { %v6726_v19 = vpop.eup %6725  ;;  %v620_v22 = vmul.f32 %v6724_v18, %v592_v51 }
 0x216   : > { %v6728_v23 = vpop.eup %6727  ;;  %v621_v25 = vmul.f32 %v6726_v19, %v594_v53 }
 0x217   : > { %v6730_v26 = vpop.eup %6729  ;;  %v622_v27 = vmul.f32 %v6728_v23, %v596_v56  ;;  %v635_v30 = vmul.f32 %v6983_v20, %v620_v22 }
 0x218   : > { %v623_v28 = vmul.f32 %v6730_v26, %v598_v59  ;;  %v636_v32 = vmul.f32 %v6985_v24, %v621_v25 }
 0x219   : > { %v637_v31 = vmul.f32 %v6983_v20, %v622_v27 }
 0x21a   : > { %v638_v33 = vmul.f32 %v6985_v24, %v623_v28 }
 0x21b   : > { %v639_v34 = vpack.c.bf16 %v637_v31, %v635_v30  ;;  %v6448_v35 = vpack.c.bf16 %v637_v31, %v637_v31 }
 0x21c   : > { %v640_v36 = vpack.c.bf16 %v638_v33, %v636_v32  ;;  %v6449_v39 = vpack.c.bf16 %v638_v33, %v638_v33 }
 0x21d   : > { %v652_v37 = vrot.slane %v639_v34, %v651_v29  ;;  %v659_v38 = vrot.slane %v6448_v35, %v651_v29 }
 0x21e   : > { %v2584_v47 = vrot.slane %v640_v36, %v651_v29  ;;  %v2591_v48 = vrot.slane %v6449_v39, %v651_v29 }
 0x21f   : > { %v660_v40 = vcombine.high %v652_v37, %v652_v37  ;;  %v661_v41 = vcombine.high %v659_v38, %v659_v38  ;;  %v668_v42 = vrot.slane %v652_v37, %v651_v29  ;;  %v675_v43 = vrot.slane %v659_v38, %v651_v29 }
 0x220   : > { %v2592_v57 = vcombine.high %v2584_v47, %v2584_v47  ;;  %v2593_v58 = vcombine.high %v2591_v48, %v2591_v48  ;;  %v6993_v62 = vrot.slane %v2584_v47, %v651_v29  ;;  %v6996_v3 = vrot.slane %v2591_v48, %v651_v29 }
 0x221   : > { %v682_v44 = vrot.slane %v660_v40, %v651_v29  ;;  %v689_v45 = vrot.slane %v661_v41, %v651_v29  ;;  %v690_v46 = vcombine.high %v668_v42, %v668_v42  ;;  %v691_v49 = vcombine.high %v675_v43, %v675_v43 }
 0x222   : > { %v695_v52 = vunpack.i.h.s16 %v668_v42  ;;  %v703_v55 = vunpack.i.h.s16 %v675_v43  ;;  %v6173_v56 = vpack.i.b16 %v675_v43, %v675_v43  ;;  %v6169_v1 = vpack.i.b16 %v668_v42, %v668_v42 }
 0x223   : > { %v692_v50 = vcombine.high %v682_v44, %v682_v44  ;;  %v6991_v51 = vcombine.high %v689_v45, %v689_v45  ;;  %v697_v53 = vunpack.i.h.s16 %v682_v44  ;;  %v699_v54 = vunpack.i.h.s16 %v690_v46 }
 0x224   : > { %v705_v60 = vunpack.i.h.s16 %v689_v45  ;;  %v707_v61 = vunpack.i.h.s16 %v691_v49  ;;  %v711_v2 = vpack.i.b16 %v695_v52, %v695_v52  ;;  %v6170_v4 = vpack.i.b16 %v682_v44, %v682_v44 }
 0x225   : > { %v701_v59 = vunpack.i.h.s16 %v692_v50  ;;  %v709_v63 = vunpack.i.h.s16 %v6991_v51  ;;  %v713_v5 = vpack.i.b16 %v697_v53, %v697_v53  ;;  %v6171_v6 = vpack.i.b16 %v690_v46, %v690_v46 }
 0x226   : > { %v715_v7 = vpack.i.b16 %v699_v54, %v699_v54  ;;  %v6172_v8 = vpack.i.b16 %v692_v50, %v692_v50  ;;  %v719_v9 = vpack.i.b16 %v703_v55, %v703_v55  ;;  %v6174_v10 = vpack.i.b16 %v689_v45, %v689_v45 }
 0x227   : > { %v6999_v11 = vrot.slane %v6173_v56, %v6980_v13  ;;  %v717_v12 = vpack.i.b16 %v701_v59, %v701_v59  ;;  %v721_v14 = vpack.i.b16 %v705_v60, %v705_v60  ;;  %v6175_v15 = vpack.i.b16 %v691_v49, %v691_v49  ;;  %v1324_v59 = vld [vmem:[#allocation3 + $0x40] sm:$0x2] }
 0x228   : > { %v723_v16 = vpack.i.b16 %v707_v61, %v707_v61  ;;  %v6176_v17 = vpack.i.b16 %v6991_v51, %v6991_v51  ;;  %v725_v18 = vpack.i.b16 %v709_v63, %v709_v63  ;;  %v7003_v19 = vrot.slane %v2592_v57, %v651_v29 }
 0x229   : > { %v7005_v21 = vrot.slane %v2593_v58, %v651_v29  ;;  %1756 = vrot.lane.b32.xlu1 %v6999_v11, %s6815_s17  ;;  %v7010_v22 = vrot.slane %v6169_v1, %v6980_v13  ;;  %v7013_v23 = vrot.slane %v711_v2, %v6980_v13  ;;  %v7016_v25 = vrot.slane %v6170_v4, %v6980_v13  ;;  %v833_v1 = vld [vmem:[#allocation3 + $0x40] sm:$0x1] }
 0x22a   : > { %v7020_v26 = vcombine.high %v6993_v62, %v6993_v62  ;;  %1265 = vrot.lane.b32.xlu0 %v6999_v11, %s6816_s26  ;;  %v7025_v27 = vrot.slane %v713_v5, %v6980_v13  ;;  %v7028_v28 = vrot.slane %v6171_v6, %v6980_v13  ;;  %v7031_v29 = vrot.slane %v715_v7, %v6980_v13 }
 0x22b   : > { %v2624_v30 = vcombine.high %v7003_v19, %v7003_v19  ;;  %v7036_v31 = vrot.slane %v6172_v8, %v6980_v13  ;;  %v7039_v32 = vrot.slane %v717_v12, %v6980_v13  ;;  %v7043_v33 = vcombine.high %v6996_v3, %v6996_v3  ;;  %v2765_v8 = vld [vmem:[#allocation3 + $0x40] sm:$0x10] }
 0x22c   : > { %v7047_v34 = vcombine.high %v7005_v21, %v7005_v21  ;;  %v7050_v35 = vrot.slane %v719_v9, %v6980_v13  ;;  %v7053_v36 = vrot.slane %v6174_v10, %v6980_v13  ;;  %v2627_v37 = vunpack.i.h.s16 %v6993_v62  ;;  %v2741_v9 = vld [vmem:[#allocation3] sm:$0x10]  ;;  %v836_v10 = vld [vmem:[#allocation3 + $0x48] sm:$0x1] }
 0x22d   : > { %v2629_v38 = vunpack.i.h.s16 %v7003_v19  ;;  %1740 = vrot.lane.b32.xlu1 %v7010_v22, %s6815_s17  ;;  %v7060_v39 = vrot.slane %v721_v14, %v6980_v13  ;;  %v7063_v40 = vrot.slane %v6175_v15, %v6980_v13  ;;  %v7066_v41 = vrot.slane %v723_v16, %v6980_v13 }
 0x22e   : > { %v2631_v42 = vunpack.i.h.s16 %v7020_v26  ;;  %2247 = vrot.lane.b32.xlu0 %v6999_v11, %s6817_s28  ;;  %v7072_v43 = vrot.slane %v6176_v17, %v6980_v13  ;;  %v2633_v44 = vunpack.i.h.s16 %v2624_v30  ;;  %v2635_v45 = vunpack.i.h.s16 %v6996_v3  ;;  %v812_v17 = vld [vmem:[#allocation3 + $0x8] sm:$0x1] }
 0x22f   : > { %v6237_v46 = vpack.i.b16 %v6996_v3, %v6996_v3  ;;  %v7078_v47 = vrot.slane %v725_v18, %v6980_v13  ;;  %v2637_v48 = vunpack.i.h.s16 %v7005_v21  ;;  %v2639_v49 = vunpack.i.h.s16 %v7043_v33  ;;  %v809_v3 = vld [vmem:[#allocation3] sm:$0x1]  ;;  %v839_v18 = vld [vmem:[#allocation3 + $0x50] sm:$0x1] }
 0x230   : > { %v2641_v50 = vunpack.i.h.s16 %v7047_v34  ;;  %v6233_v51 = vpack.i.b16 %v6993_v62, %v6993_v62  ;;  %v2643_v52 = vpack.i.b16 %v2627_v37, %v2627_v37  ;;  %v6234_v53 = vpack.i.b16 %v7003_v19, %v7003_v19  ;;  %v815_v19 = vld [vmem:[#allocation3 + $0x10] sm:$0x1]  ;;  %v845_v37 = vld [vmem:[#allocation3 + $0x60] sm:$0x1] }
 0x231   : > { %v2645_v54 = vpack.i.b16 %v2629_v38, %v2629_v38  ;;  %v6235_v55 = vpack.i.b16 %v7020_v26, %v7020_v26  ;;  %v2647_v56 = vpack.i.b16 %v2631_v42, %v2631_v42  ;;  %v6236_v57 = vpack.i.b16 %v2624_v30, %v2624_v30  ;;  %v821_v38 = vld [vmem:[#allocation3 + $0x20] sm:$0x1]  ;;  %v2747_v42 = vld [vmem:[#allocation3 + $0x10] sm:$0x10] }
 0x232   : > { %v6238_v58 = vpack.i.b16 %v7005_v21, %v7005_v21  ;;  %1249 = vrot.lane.b32.xlu0 %v7010_v22, %s6816_s26  ;;  %v2649_v60 = vpack.i.b16 %v2633_v44, %v2633_v44  ;;  %v2651_v61 = vpack.i.b16 %v2635_v45, %v2635_v45  ;;  %v6239_v62 = vpack.i.b16 %v7043_v33, %v7043_v33  ;;  %v2777_v44 = vld [vmem:[#allocation3 + $0x60] sm:$0x10] }
 0x233   : > { %v7102_v63 = vrot.slane %v6237_v46, %v6980_v13  ;;  %v2653_v4 = vpack.i.b16 %v2637_v48, %v2637_v48  ;;  %v2655_v5 = vpack.i.b16 %v2639_v49, %v2639_v49  ;;  %v6240_v6 = vpack.i.b16 %v7047_v34, %v7047_v34  ;;  %v2771_v34 = vld [vmem:[#allocation3 + $0x50] sm:$0x10] }
 0x234   : > { %v2657_v7 = vpack.i.b16 %v2641_v50, %v2641_v50  ;;  %v7113_v12 = vrot.slane %v6233_v51, %v6980_v13  ;;  %v7116_v14 = vrot.slane %v2643_v52, %v6980_v13  ;;  %v7119_v15 = vrot.slane %v6234_v53, %v6980_v13  ;;  %v2768_v50 = vld [vmem:[#allocation3 + $0x48] sm:$0x10]  ;;  %v2753_v51 = vld [vmem:[#allocation3 + $0x20] sm:$0x10] }
 0x235   : > { %v7122_v16 = vrot.slane %v2645_v54, %v6980_v13  ;;  %3197 = vrot.lane.b32.xlu1 %v7102_v63, %s6816_s26  ;;  %v7127_v21 = vrot.slane %v6235_v55, %v6980_v13  ;;  %v7130_v26 = vrot.slane %v2647_v56, %v6980_v13  ;;  %v7133_v30 = vrot.slane %v6236_v57, %v6980_v13  ;;  %v2744_v56 = vld [vmem:[#allocation3 + $0x8] sm:$0x10]  ;;  %v842_v57 = vld [vmem:[#allocation3 + $0x58] sm:$0x1] }
 0x236   : > { %v7136_v33 = vrot.slane %v6238_v58, %v6980_v13  ;;  %2231 = vrot.lane.b32.xlu0 %v7010_v22, %s6817_s28  ;;  %v7141_v45 = vrot.slane %v2649_v60, %v6980_v13  ;;  %v7144_v46 = vrot.slane %v2651_v61, %v6980_v13  ;;  %v7147_v48 = vrot.slane %v6239_v62, %v6980_v13  ;;  %v818_v58 = vld [vmem:[#allocation3 + $0x18] sm:$0x1] }
 0x237   : > { %v834_v49 = vsel %vm7095_vm7, %v6999_v11, %v833_v1  ;;  %v7153_v52 = vrot.slane %v2653_v4, %v6980_v13  ;;  %v7156_v53 = vrot.slane %v2655_v5, %v6980_v13  ;;  %v2766_v54 = vsel %vm7106_vm8, %v7102_v63, %v2765_v8  ;;  %v824_v4 = vld [vmem:[#allocation3 + $0x28] sm:$0x1]  ;;  %v851_v5 = vld [vmem:[#allocation3 + $0x70] sm:$0x1] }
 0x238   : > { %835 = vst [vmem:[#allocation3 + $0x40] sm:$0x1] %v834_v49  ;;  %v810_v55 = vsel %vm7095_vm7, %v7010_v22, %v809_v3  ;;  %v7165_v60 = vrot.slane %v6240_v6, %v6980_v13  ;;  %v7168_v61 = vrot.slane %v2657_v7, %v6980_v13  ;;  %2767 = vst [vmem:[#allocation3 + $0x40] sm:$0x10] %v2766_v54  ;;  %v848_v3 = vld [vmem:[#allocation3 + $0x68] sm:$0x1] }
 0x239   : > { %4179 = vrot.lane.b32.xlu1 %v7102_v63, %s6817_s28  ;;  %811 = vst [vmem:[#allocation3] sm:$0x1] %v810_v55  ;;  %v2742_v62 = vsel %vm7106_vm8, %v7113_v12, %v2741_v9  ;;  %v837_v1 = vsel %vm7095_vm7, %v7050_v35, %v836_v10  ;;  %v813_v13 = vsel %vm7095_vm7, %v7013_v23, %v812_v17  ;;  %v827_v9 = vld [vmem:[#allocation3 + $0x30] sm:$0x1]  ;;  %v2774_v10 = vld [vmem:[#allocation3 + $0x58] sm:$0x10] }
 0x23a   : > { %1020 = vrot.lane.b32.xlu0 %v6999_v11, %s6818_s15  ;;  %2743 = vst [vmem:[#allocation3] sm:$0x10] %v2742_v62  ;;  %838 = vst [vmem:[#allocation3 + $0x48] sm:$0x1] %v837_v1  ;;  %v840_v6 = vsel %vm7095_vm7, %v7053_v36, %v839_v18  ;;  %v816_v7 = vsel %vm7095_vm7, %v7016_v25, %v815_v19  ;;  %v2772_v8 = vsel %vm7106_vm8, %v7136_v33, %v2771_v34  ;;  %v2750_v49 = vld [vmem:[#allocation3 + $0x18] sm:$0x10] }
 0x23b   : > { %814 = vst [vmem:[#allocation3 + $0x8] sm:$0x1] %v813_v13  ;;  %841 = vst [vmem:[#allocation3 + $0x50] sm:$0x1] %v840_v6  ;;  %v846_v17 = vsel %vm7095_vm7, %v7063_v40, %v845_v37  ;;  %v822_v18 = vsel %vm7095_vm7, %v7028_v28, %v821_v38  ;;  %v2748_v19 = vsel %vm7106_vm8, %v7119_v15, %v2747_v42  ;;  %v2780_v54 = vld [vmem:[#allocation3 + $0x68] sm:$0x10] }
 0x23c   : > { %817 = vst [vmem:[#allocation3 + $0x10] sm:$0x1] %v816_v7  ;;  %2773 = vst [vmem:[#allocation3 + $0x50] sm:$0x10] %v2772_v8  ;;  %v2778_v34 = vsel %vm7106_vm8, %v7147_v48, %v2777_v44  ;;  %v2756_v55 = vld [vmem:[#allocation3 + $0x28] sm:$0x10]  ;;  %v2769_v37 = vsel %vm7106_vm8, %v7144_v46, %v2768_v50  ;;  %v2754_v38 = vsel %vm7106_vm8, %v7127_v21, %v2753_v51 }
 0x23d   : > { %847 = vst [vmem:[#allocation3 + $0x60] sm:$0x1] %v846_v17  ;;  %823 = vst [vmem:[#allocation3 + $0x20] sm:$0x1] %v822_v18  ;;  %v2745_v42 = vsel %vm7106_vm8, %v7116_v14, %v2744_v56  ;;  %v843_v44 = vsel %vm7095_vm7, %v7060_v39, %v842_v57  ;;  %v2783_v62 = vld [vmem:[#allocation3 + $0x70] sm:$0x10]  ;;  %3181 = vrot.lane.b32.xlu1 %v7113_v12, %s6816_s26  ;;  %v819_v50 = vsel %vm7095_vm7, %v7025_v27, %v818_v58 }
 0x23e   : > { %2749 = vst [vmem:[#allocation3 + $0x10] sm:$0x10] %v2748_v19  ;;  %2779 = vst [vmem:[#allocation3 + $0x60] sm:$0x10] %v2778_v34  ;;  %v2759_v1 = vld [vmem:[#allocation3 + $0x30] sm:$0x10]  ;;  %v849_v51 = vsel %vm7095_vm7, %v7066_v41, %v848_v3  ;;  %v825_v56 = vsel %vm7095_vm7, %v7031_v29, %v824_v4  ;;  %1511 = vrot.lane.b32.xlu0 %v6999_v11, %s6819_s16  ;;  %v852_v58 = vsel %vm7095_vm7, %v7072_v43, %v851_v5 }
 0x23f   : > { %v854_v13 = vld [vmem:[#allocation3 + $0x78] sm:$0x1]  ;;  %2770 = vst [vmem:[#allocation3 + $0x48] sm:$0x10] %v2769_v37  ;;  %2755 = vst [vmem:[#allocation3 + $0x20] sm:$0x10] %v2754_v38  ;;  %v828_v3 = vsel %vm7095_vm7, %v7036_v31, %v827_v9  ;;  %v2775_v4 = vsel %vm7106_vm8, %v7153_v52, %v2774_v10  ;;  %v2751_v8 = vsel %vm7106_vm8, %v7122_v16, %v2750_v49 }
 0x240   : > { %2746 = vst [vmem:[#allocation3 + $0x8] sm:$0x10] %v2745_v42  ;;  %844 = vst [vmem:[#allocation3 + $0x58] sm:$0x1] %v843_v44  ;;  %v830_v57 = vld [vmem:[#allocation3 + $0x38] sm:$0x1]  ;;  %v2781_v5 = vsel %vm7106_vm8, %v7156_v53, %v2780_v54  ;;  %v2757_v9 = vsel %vm7106_vm8, %v7130_v26, %v2756_v55  ;;  %v2784_v10 = vsel %vm7106_vm8, %v7165_v60, %v2783_v62 }
 0x241   : > { %v2786_v6 = vld [vmem:[#allocation3 + $0x78] sm:$0x10]  ;;  %820 = vst [vmem:[#allocation3 + $0x18] sm:$0x1] %v819_v50  ;;  %850 = vst [vmem:[#allocation3 + $0x68] sm:$0x1] %v849_v51  ;;  %v2760_v49 = vsel %vm7106_vm8, %v7133_v30, %v2759_v1  ;;  %v855_v17 = vsel %vm7095_vm7, %v7078_v47, %v854_v13  ;;  %v831_v18 = vsel %vm7095_vm7, %v7039_v32, %v830_v57  ;;  %4163 = vrot.lane.b32.xlu1 %v7113_v12, %s6817_s28 }
 0x242   : > { %v2762_v7 = vld [vmem:[#allocation3 + $0x38] sm:$0x10]  ;;  %826 = vst [vmem:[#allocation3 + $0x28] sm:$0x1] %v825_v56  ;;  %853 = vst [vmem:[#allocation3 + $0x70] sm:$0x1] %v852_v58  ;;  %v2787_v19 = vsel %vm7106_vm8, %v7168_v61, %v2786_v6  ;;  %2002 = vrot.lane.b32.xlu0 %v6999_v11, %s6820_s18 }
 0x243   : > { %829 = vst [vmem:[#allocation3 + $0x30] sm:$0x1] %v828_v3  ;;  %2776 = vst [vmem:[#allocation3 + $0x58] sm:$0x10] %v2775_v4  ;;  %v2763_v34 = vsel %vm7106_vm8, %v7141_v45, %v2762_v7  ;;  %v1791_v55 = vld [vmem:[#allocation3] sm:$0x4] }
 0x244   : > { %2752 = vst [vmem:[#allocation3 + $0x18] sm:$0x10] %v2751_v8  ;;  %2782 = vst [vmem:[#allocation3 + $0x68] sm:$0x10] %v2781_v5  ;;  %v2306_v38 = vld [vmem:[#allocation3 + $0x40] sm:$0x8] }
 0x245   : > { %2758 = vst [vmem:[#allocation3 + $0x28] sm:$0x10] %v2757_v9  ;;  %2785 = vst [vmem:[#allocation3 + $0x70] sm:$0x10] %v2784_v10  ;;  %2952 = vrot.lane.b32.xlu1 %v7102_v63, %s6818_s15  ;;  %vm3229_vm8 = vcmask 128005  }
 0x246   : > { %2761 = vst [vmem:[#allocation3 + $0x30] sm:$0x10] %v2760_v49  ;;  %856 = vst [vmem:[#allocation3 + $0x78] sm:$0x1] %v855_v17  ;;  %2493 = vrot.lane.b32.xlu0 %v6999_v11, %s6821_s19  ;;  %v6822_v11 = vmov 0.0  }
 0x247   : > { %832 = vst [vmem:[#allocation3 + $0x38] sm:$0x1] %v831_v18  ;;  %2788 = vst [vmem:[#allocation3 + $0x78] sm:$0x10] %v2787_v19  ;;  %6466 = vmatprep.subr.bf16.mxu0 %v6822_v11  ;;  %6472 = vmatprep.subr.bf16.mxu1 %v6822_v11  ;;  %v1300_v13 = vld [vmem:[#allocation3] sm:$0x2] }
 0x248   : > { %2764 = vst [vmem:[#allocation3 + $0x38] sm:$0x10] %v2763_v34  ;;  %6468 = vmatprep.mubr.msk.bf16.mxu0 %vm8793_vm9, %v6822_v11  ;;  %6474 = vmatprep.mubr.msk.bf16.mxu1 %vm8793_vm9, %v6822_v11  ;;  %vm7382_vm7 = vmand %vm2279_vm4, %vm2280_vm6  ;;  %v3256_v56 = vld [vmem:[#allocation3 + $0x40] sm:$0x20]  ;;  %vm8796_vm6 = vcmask 130055  }
 0x249   : > { %3443 = vrot.lane.b32.xlu1 %v7102_v63, %s6819_s16  ;;  %vm7397_vm13 = vmand %vm3229_vm8, %vm3230_vm11  ;;  %v2282_v6 = vld [vmem:[#allocation3] sm:$0x8]  ;;  %v4238_v8 = vld [vmem:[#allocation3 + $0x40] sm:$0x80] }
 0x24a   : > { %1004 = vrot.lane.b32.xlu0 %v7010_v22, %s6818_s15  ;;  %vm7410_vm11 = vmand %vm8796_vm6, %vm4212_vm1  ;;  %v1078_v49 = vld [vmem:[#allocation3 + $0x40] sm:$0x1]  ;;  %v3232_v18 = vld [vmem:[#allocation3] sm:$0x20]  ;;  %vm2034_vm1 = vsmask.f32 7946 }
 0x24b   : > { %vm7419_vm9 = vmand %vm806_vm3, %vm1052_vm0 }
 0x24c   : > { %vm7432_vm0 = vmand %vm1297_vm12, %vm1543_vm2  ;;  %vm2984_vm2 = vsmask.f32 7954  ;;  %vm2525_vm12 = vsmask.f32 7950 }
 0x24d   : > { %3934 = vrot.lane.b32.xlu1 %v7102_v63, %s6820_s18  ;;  %vm7445_vm3 = vmand %vm1788_vm10, %vm2034_vm1  ;;  %vm3475_vm10 = vsmask.f32 7958 }
 0x24e   : > { %1495 = vrot.lane.b32.xlu0 %v7010_v22, %s6819_s16  ;;  %vm7454_vm6 = vmand %vm2738_vm5, %vm2984_vm2 }
 0x24f   : > { %vm7463_vm1 = vmand %vm2279_vm4, %vm2525_vm12  ;;  %vm4457_vm4 = vsmask.f32 7966  ;;  %vm3720_vm12 = vcmask 129030  }
 0x250   : > { %vm7472_vm5 = vmand %vm3229_vm8, %vm3475_vm10  ;;  %vm8838_vm8 = vcmask 130055   ;;  %vm3721_vm10 = vsmask.f32 6400 }
 0x251   : > { %4425 = vrot.lane.b32.xlu1 %v7102_v63, %s6821_s19  ;;  %vm7493_vm2 = vmand %vm8838_vm8, %vm4457_vm4  ;;  %vm3966_vm8 = vsmask.f32 7962 }
 0x252   : > { %1986 = vrot.lane.b32.xlu0 %v7010_v22, %s6820_s18  ;;  %vm7518_vm4 = vmand %vm3720_vm12, %vm3721_vm10 }
 0x253   : > { %vm7537_vm10 = vmand %vm3720_vm12, %vm3966_vm8  ;;  %vm8845_vm12 = vcmask 130048   ;;  %vm8846_vm8 = vmmov 0  }
 0x255   : > { %2936 = vrot.lane.b32.xlu1 %v7113_v12, %s6818_s15 }
 0x256   : > { %2477 = vrot.lane.b32.xlu0 %v7010_v22, %s6821_s19  ;;  %v3253_v22 = vld [vmem:[#allocation3 + $0x38] sm:$0x20] }
 0x259   : > { %3427 = vrot.lane.b32.xlu1 %v7113_v12, %s6819_s16 }
 0x25a   : > { %3688 = vrot.lane.b32.xlu0 %v7102_v63, %s6815_s17 }
 0x25d   : > { %3918 = vrot.lane.b32.xlu1 %v7113_v12, %s6820_s18 }
 0x25e   : > { %3672 = vrot.lane.b32.xlu0 %v7113_v12, %s6815_s17 }
 0x261   : > { %4409 = vrot.lane.b32.xlu1 %v7113_v12, %s6821_s19 }
 0x262   : > { %1267 = vrot.lane.b32.xlu0 %v7050_v35, %s6816_s26 }
 0x265   : > { %1758 = vrot.lane.b32.xlu1 %v7050_v35, %s6815_s17 }
 0x266   : > { %2249 = vrot.lane.b32.xlu0 %v7050_v35, %s6817_s28 }
 0x269   : > { %1742 = vrot.lane.b32.xlu1 %v7013_v23, %s6815_s17 }
 0x26a   : > { %1251 = vrot.lane.b32.xlu0 %v7013_v23, %s6816_s26 }
 0x26d   : > { %1760 = vrot.lane.b32.xlu1 %v7053_v36, %s6815_s17 }
 0x26e   : > { %2233 = vrot.lane.b32.xlu0 %v7013_v23, %s6817_s28 }
 0x271   : > { %1513 = vrot.lane.b32.xlu1 %v7050_v35, %s6819_s16 }
 0x272   : > { %1269 = vrot.lane.b32.xlu0 %v7053_v36, %s6816_s26 }
 0x275   : > { %2495 = vrot.lane.b32.xlu1 %v7050_v35, %s6821_s19 }
 0x276   : > { %2251 = vrot.lane.b32.xlu0 %v7053_v36, %s6817_s28 }
 0x279   : > { %1744 = vrot.lane.b32.xlu1 %v7016_v25, %s6815_s17 }
 0x27a   : > { %1022 = vrot.lane.b32.xlu0 %v7050_v35, %s6818_s15 }
 0x27d   : > { %1497 = vrot.lane.b32.xlu1 %v7013_v23, %s6819_s16 }
 0x27e   : > { %2004 = vrot.lane.b32.xlu0 %v7050_v35, %s6820_s18 }
 0x281   : > { %2479 = vrot.lane.b32.xlu1 %v7013_v23, %s6821_s19 }
 0x282   : > { %1253 = vrot.lane.b32.xlu0 %v7016_v25, %s6816_s26 }
 0x285   : > { %1764 = vrot.lane.b32.xlu1 %v7063_v40, %s6815_s17 }
 0x286   : > { %2235 = vrot.lane.b32.xlu0 %v7016_v25, %s6817_s28 }
 0x289   : > { %1748 = vrot.lane.b32.xlu1 %v7028_v28, %s6815_s17 }
 0x28a   : > { %1006 = vrot.lane.b32.xlu0 %v7013_v23, %s6818_s15 }
 0x28d   : > { %3199 = vrot.lane.b32.xlu1 %v7144_v46, %s6816_s26 }
 0x28e   : > { %1988 = vrot.lane.b32.xlu0 %v7013_v23, %s6820_s18  ;;  %v1815_v23 = vld [vmem:[#allocation3 + $0x40] sm:$0x4] }
 0x291   : > { %4181 = vrot.lane.b32.xlu1 %v7144_v46, %s6817_s28 }
 0x292   : > { %1273 = vrot.lane.b32.xlu0 %v7063_v40, %s6816_s26 }
 0x295   : > { %3183 = vrot.lane.b32.xlu1 %v7116_v14, %s6816_s26 }
 0x296   : > { %2255 = vrot.lane.b32.xlu0 %v7063_v40, %s6817_s28 }
 0x299   : > { %4165 = vrot.lane.b32.xlu1 %v7116_v14, %s6817_s28 }
 0x29a   : > { %1024 = vrot.lane.b32.xlu0 %v7053_v36, %s6818_s15 }
 0x29b   : > { %v1757_v63 = vpop.permute.xlu1 %1756 }
 0x29c   : > { %v1816_v2 = vsel %vm7362_vm14, %v1757_v63, %v1815_v23  ;;  %v1266_v12 = vpop.permute.xlu0 %1265 }
 0x29d   : > { %3201 = vrot.lane.b32.xlu1 %v7136_v33, %s6816_s26  ;;  %1817 = vst [vmem:[#allocation3 + $0x40] sm:$0x4] %v1816_v2  ;;  %v1325_v54 = vsel %vm7369_vm15, %v1266_v12, %v1324_v59  ;;  %v4214_v12 = vld [vmem:[#allocation3] sm:$0x80] }
 0x29e   : > { %1326 = vst [vmem:[#allocation3 + $0x40] sm:$0x2] %v1325_v54  ;;  %1515 = vrot.lane.b32.xlu0 %v7053_v36, %s6819_s16 }
 0x29f   : > { %v1741_v42 = vpop.permute.xlu1 %1740 }
 0x2a0   : > { %v2248_v44 = vpop.permute.xlu0 %2247  ;;  %v1792_v62 = vsel %vm7362_vm14, %v1741_v42, %v1791_v55  ;;  %v4235_v55 = vld [vmem:[#allocation3 + $0x38] sm:$0x80] }
 0x2a1   : > { %4183 = vrot.lane.b32.xlu1 %v7136_v33, %s6817_s28  ;;  %v2307_v1 = vsel %vm7382_vm7, %v2248_v44, %v2306_v38  ;;  %1793 = vst [vmem:[#allocation3] sm:$0x4] %v1792_v62 }
 0x2a2   : > { %2308 = vst [vmem:[#allocation3 + $0x40] sm:$0x8] %v2307_v1  ;;  %2006 = vrot.lane.b32.xlu0 %v7053_v36, %s6820_s18 }
 0x2a4   : > { %v1250_v50 = vpop.permute.xlu0 %1249  ;;  %v2060_v44 = vld [vmem:[#allocation3 + $0x40] sm:$0x4] }
 0x2a5   : > { %3445 = vrot.lane.b32.xlu1 %v7144_v46, %s6819_s16  ;;  %v1301_v57 = vsel %vm7369_vm15, %v1250_v50, %v1300_v13  ;;  %v1569_v63 = vld [vmem:[#allocation3 + $0x40] sm:$0x2] }
 0x2a6   : > { %1302 = vst [vmem:[#allocation3] sm:$0x2] %v1301_v57  ;;  %2497 = vrot.lane.b32.xlu0 %v7053_v36, %s6821_s19 }
 0x2a7   : > { %v3198_v7 = vpop.permute.xlu1 %3197 }
 0x2a8   : > { %v3257_v58 = vsel %vm7397_vm13, %v3198_v7, %v3256_v56  ;;  %v2232_v3 = vpop.permute.xlu0 %2231  ;;  %v3010_v56 = vld [vmem:[#allocation3 + $0x40] sm:$0x10] }
 0x2a9   : > { %3258 = vst [vmem:[#allocation3 + $0x40] sm:$0x20] %v3257_v58  ;;  %4427 = vrot.lane.b32.xlu1 %v7144_v46, %s6821_s19  ;;  %v2283_v36 = vsel %vm7382_vm7, %v2232_v3, %v2282_v6  ;;  %v2551_v7 = vld [vmem:[#allocation3 + $0x40] sm:$0x8]  ;;  %v8836_v3 = vmov 0 }
 0x2aa   : > { %2284 = vst [vmem:[#allocation3] sm:$0x8] %v2283_v36  ;;  %1257 = vrot.lane.b32.xlu0 %v7028_v28, %s6816_s26  ;;  %v8837_v3 = vsel %vm7472_vm5, 4294967295, %v8836_v3 }
 0x2ab   : > { %v4180_v9 = vpop.permute.xlu1 %4179 }
 0x2ac   : > { %v4239_v10 = vsel %vm7410_vm11, %v4180_v9, %v4238_v8  ;;  %v1021_v17 = vpop.permute.xlu0 %1020 }
 0x2ad   : > { %4240 = vst [vmem:[#allocation3 + $0x40] sm:$0x80] %v4239_v10  ;;  %3185 = vrot.lane.b32.xlu1 %v7119_v15, %s6816_s26  ;;  %v1079_v19 = vsel %vm7419_vm9, %v1021_v17, %v1078_v49  ;;  %v1054_v17 = vld [vmem:[#allocation3] sm:$0x1] }
 0x2ae   : > { %1080 = vst [vmem:[#allocation3 + $0x40] sm:$0x1] %v1079_v19  ;;  %2239 = vrot.lane.b32.xlu0 %v7028_v28, %s6817_s28 }
 0x2af   : > { %v3182_v23 = vpop.permute.xlu1 %3181 }
 0x2b0   : > { %v3233_v59 = vsel %vm7397_vm13, %v3182_v23, %v3232_v18  ;;  %v1512_v2 = vpop.permute.xlu0 %1511  ;;  %v3501_v36 = vld [vmem:[#allocation3 + $0x40] sm:$0x20]  ;;  %v1545_v23 = vld [vmem:[#allocation3] sm:$0x2] }
 0x2b1   : > { %3234 = vst [vmem:[#allocation3] sm:$0x20] %v3233_v59  ;;  %4167 = vrot.lane.b32.xlu1 %v7119_v15, %s6817_s28  ;;  %v1570_v54 = vsel %vm7432_vm0, %v1512_v2, %v1569_v63 }
 0x2b2   : > { %1571 = vst [vmem:[#allocation3 + $0x40] sm:$0x2] %v1570_v54  ;;  %1008 = vrot.lane.b32.xlu0 %v7016_v25, %s6818_s15 }
 0x2b3   : > { %v4164_v38 = vpop.permute.xlu1 %4163 }
 0x2b4   : > { %v4215_v42 = vsel %vm7410_vm11, %v4164_v38, %v4214_v12  ;;  %v2003_v62 = vpop.permute.xlu0 %2002  ;;  %v2036_v38 = vld [vmem:[#allocation3] sm:$0x4] }
 0x2b5   : > { %4216 = vst [vmem:[#allocation3] sm:$0x80] %v4215_v42  ;;  %3429 = vrot.lane.b32.xlu1 %v7116_v14, %s6819_s16  ;;  %v2061_v13 = vsel %vm7445_vm3, %v2003_v62, %v2060_v44  ;;  %v2986_v62 = vld [vmem:[#allocation3] sm:$0x10] }
 0x2b6   : > { %2062 = vst [vmem:[#allocation3 + $0x40] sm:$0x4] %v2061_v13  ;;  %1499 = vrot.lane.b32.xlu0 %v7016_v25, %s6819_s16 }
 0x2b7   : > { %v2953_v57 = vpop.permute.xlu1 %2952 }
 0x2b8   : > { %v3011_v6 = vsel %vm7454_vm6, %v2953_v57, %v3010_v56  ;;  %v2494_v58 = vpop.permute.xlu0 %2493  ;;  %v2527_v57 = vld [vmem:[#allocation3] sm:$0x8] }
 0x2b9   : > { %3012 = vst [vmem:[#allocation3 + $0x40] sm:$0x10] %v3011_v6  ;;  %4411 = vrot.lane.b32.xlu1 %v7116_v14, %s6821_s19  ;;  %v2552_v8 = vsel %vm7463_vm1, %v2494_v58, %v2551_v7  ;;  %v3031_v58 = vld [vmem:[#allocation3 + $0x78] sm:$0x10] }
 0x2ba   : > { %2553 = vst [vmem:[#allocation3 + $0x40] sm:$0x8] %v2552_v8  ;;  %1990 = vrot.lane.b32.xlu0 %v7016_v25, %s6820_s18  ;;  %v3747_v8 = vld [vmem:[#allocation3 + $0x40] sm:$0x40] }
 0x2bb   : > { %v3444_v9 = vpop.permute.xlu1 %3443 }
 0x2bc   : > { %v3502_v10 = vsel %vm7472_vm5, %v3444_v9, %v3501_v36  ;;  %v1005_v49 = vpop.permute.xlu0 %1004  ;;  %v3477_v36 = vld [vmem:[#allocation3] sm:$0x20] }
 0x2bd   : > { %3503 = vst [vmem:[#allocation3 + $0x40] sm:$0x20] %v3502_v10  ;;  %3205 = vrot.lane.b32.xlu1 %v7147_v48, %s6816_s26  ;;  %v1055_v18 = vsel %vm7419_vm9, %v1005_v49, %v1054_v17 }
 0x2be   : > { %1056 = vst [vmem:[#allocation3] sm:$0x1] %v1055_v18  ;;  %2481 = vrot.lane.b32.xlu0 %v7016_v25, %s6821_s19  ;;  %v4483_v25 = vld [vmem:[#allocation3 + $0x40] sm:$0x80]  ;;  %v3723_v18 = vld [vmem:[#allocation3] sm:$0x40] }
 0x2bf   : > { %v7488_v19 = vpop.permute.xlu1 %3934 }
 0x2c0   : > { %v1496_v59 = vpop.permute.xlu0 %1495 }
 0x2c1   : > { %4187 = vrot.lane.b32.xlu1 %v7147_v48, %s6817_s28  ;;  %v1546_v2 = vsel %vm7432_vm0, %v1496_v59, %v1545_v23 }
 0x2c2   : > { %1547 = vst [vmem:[#allocation3] sm:$0x2] %v1546_v2  ;;  %1028 = vrot.lane.b32.xlu0 %v7063_v40, %s6818_s15 }
 0x2c3   : > { %v4426_v12 = vpop.permute.xlu1 %4425 }
 0x2c4   : > { %v4484_v54 = vsel %vm7493_vm2, %v4426_v12, %v4483_v25  ;;  %v1987_v42 = vpop.permute.xlu0 %1986  ;;  %v1327_v25 = vld [vmem:[#allocation3 + $0x48] sm:$0x2] }
 0x2c5   : > { %4485 = vst [vmem:[#allocation3 + $0x40] sm:$0x80] %v4484_v54  ;;  %2956 = vrot.lane.b32.xlu1 %v7136_v33, %s6818_s15  ;;  %v2037_v44 = vsel %vm7445_vm3, %v1987_v42, %v2036_v38 }
 0x2c6   : > { %2038 = vst [vmem:[#allocation3] sm:$0x4] %v2037_v44  ;;  %1519 = vrot.lane.b32.xlu0 %v7063_v40, %s6819_s16 }
 0x2c7   : > { %v2937_v13 = vpop.permute.xlu1 %2936 }
 0x2c8   : > { %v2987_v56 = vsel %vm7454_vm6, %v2937_v13, %v2986_v62  ;;  %v2478_v6 = vpop.permute.xlu0 %2477  ;;  %v1818_v62 = vld [vmem:[#allocation3 + $0x48] sm:$0x4] }
 0x2c9   : > { %2988 = vst [vmem:[#allocation3] sm:$0x10] %v2987_v56  ;;  %3447 = vrot.lane.b32.xlu1 %v7136_v33, %s6819_s16  ;;  %v2528_v7 = vsel %vm7463_vm1, %v2478_v6, %v2527_v57  ;;  %v2309_v57 = vld [vmem:[#allocation3 + $0x48] sm:$0x8] }
 0x2ca   : > { %2529 = vst [vmem:[#allocation3] sm:$0x8] %v2528_v7  ;;  %2010 = vrot.lane.b32.xlu0 %v7063_v40, %s6820_s18 }
 0x2cb   : > { %v3428_v9 = vpop.permute.xlu1 %3427 }
 0x2cc   : > { %v3478_v10 = vsel %vm7472_vm5, %v3428_v9, %v3477_v36  ;;  %v3689_v49 = vpop.permute.xlu0 %3688 }
 0x2cd   : > { %3479 = vst [vmem:[#allocation3] sm:$0x20] %v3478_v10  ;;  %3938 = vrot.lane.b32.xlu1 %v7136_v33, %s6820_s18  ;;  %v3748_v17 = vsel %vm7518_vm4, %v3689_v49, %v3747_v8  ;;  %v1303_v49 = vld [vmem:[#allocation3 + $0x8] sm:$0x2] }
 0x2ce   : > { %3749 = vst [vmem:[#allocation3 + $0x40] sm:$0x40] %v3748_v17  ;;  %2501 = vrot.lane.b32.xlu0 %v7063_v40, %s6821_s19  ;;  %v4459_v40 = vld [vmem:[#allocation3] sm:$0x80] }
 0x2cf   : > { %v3919_v23 = vpop.permute.xlu1 %3918 }
 0x2d0   : > { %v3673_v59 = vpop.permute.xlu0 %3672 }
 0x2d1   : > { %4429 = vrot.lane.b32.xlu1 %v7136_v33, %s6821_s19  ;;  %v3724_v2 = vsel %vm7518_vm4, %v3673_v59, %v3723_v18 }
 0x2d2   : > { %3725 = vst [vmem:[#allocation3] sm:$0x40] %v3724_v2  ;;  %1012 = vrot.lane.b32.xlu0 %v7028_v28, %s6818_s15  ;;  %v1821_v2 = vld [vmem:[#allocation3 + $0x50] sm:$0x4] }
 0x2d3   : > { %v4410_v54 = vpop.permute.xlu1 %4409 }
 0x2d4   : > { %v4460_v38 = vsel %vm7493_vm2, %v4410_v54, %v4459_v40  ;;  %v1268_v42 = vpop.permute.xlu0 %1267  ;;  %v2285_v40 = vld [vmem:[#allocation3 + $0x8] sm:$0x8] }
 0x2d5   : > { %v3992_v44 = vld [vmem:[#allocation3 + $0x40] sm:$0x40]  ;;  %4461 = vst [vmem:[#allocation3] sm:$0x80] %v4460_v38  ;;  %3189 = vrot.lane.b32.xlu1 %v7127_v21, %s6816_s26  ;;  %v1328_v13 = vsel %vm7369_vm15, %v1268_v42, %v1327_v25 }
 0x2d6   : > { %v3993_v56 = vsel %vm7537_vm10, %v7488_v19, %v3992_v44  ;;  %1329 = vst [vmem:[#allocation3 + $0x48] sm:$0x2] %v1328_v13  ;;  %1503 = vrot.lane.b32.xlu0 %v7028_v28, %s6819_s16  ;;  %v1794_v19 = vld [vmem:[#allocation3 + $0x8] sm:$0x4] }
 0x2d7   : > { %3994 = vst [vmem:[#allocation3 + $0x40] sm:$0x40] %v3993_v56  ;;  %v1759_v6 = vpop.permute.xlu1 %1758 }
 0x2d8   : > { %v1819_v7 = vsel %vm7362_vm14, %v1759_v6, %v1818_v62  ;;  %v2250_v8 = vpop.permute.xlu0 %2249  ;;  %v1330_v62 = vld [vmem:[#allocation3 + $0x50] sm:$0x2] }
 0x2d9   : > { %v3968_v36 = vld [vmem:[#allocation3] sm:$0x40]  ;;  %1820 = vst [vmem:[#allocation3 + $0x48] sm:$0x4] %v1819_v7  ;;  %4171 = vrot.lane.b32.xlu1 %v7127_v21, %s6817_s28  ;;  %v2310_v9 = vsel %vm7382_vm7, %v2250_v8, %v2309_v57  ;;  %v2312_v8 = vld [vmem:[#allocation3 + $0x50] sm:$0x8] }
 0x2da   : > { %v3969_v10 = vsel %vm7537_vm10, %v3919_v23, %v3968_v36  ;;  %2311 = vst [vmem:[#allocation3 + $0x48] sm:$0x8] %v2310_v9  ;;  %1994 = vrot.lane.b32.xlu0 %v7028_v28, %s6820_s18 }
 0x2db   : > { %3970 = vst [vmem:[#allocation3] sm:$0x40] %v3969_v10  ;;  %v1743_v17 = vpop.permute.xlu1 %1742 }
 0x2dc   : > { %v1795_v18 = vsel %vm7362_vm14, %v1743_v17, %v1794_v19  ;;  %v1252_v59 = vpop.permute.xlu0 %1251  ;;  %v1797_v17 = vld [vmem:[#allocation3 + $0x10] sm:$0x4] }
 0x2dd   : > { %1796 = vst [vmem:[#allocation3 + $0x8] sm:$0x4] %v1795_v18  ;;  %2940 = vrot.lane.b32.xlu1 %v7119_v15, %s6818_s15  ;;  %v1304_v25 = vsel %vm7369_vm15, %v1252_v59, %v1303_v49  ;;  %v1572_v13 = vld [vmem:[#allocation3 + $0x48] sm:$0x2] }
 0x2de   : > { %1305 = vst [vmem:[#allocation3 + $0x8] sm:$0x2] %v1304_v25  ;;  %2485 = vrot.lane.b32.xlu0 %v7028_v28, %s6821_s19  ;;  %v4516_v23 = vld [vmem:[#allocation3 + $0x40] sm:$0xff] }
 0x2df   : > { %v1761_v54 = vpop.permute.xlu1 %1760  ;;  %6467 = vmatpush3.bf16.msra.mxu0 %v4516_v23 }
 0x2e0   : > { %v1822_v38 = vsel %vm7362_vm14, %v1761_v54, %v1821_v2  ;;  %v2234_v42 = vpop.permute.xlu0 %2233  ;;  %6478 = vmatprep.subr.bf16.mxu0 %v6822_v11  ;;  %v1081_v2 = vld [vmem:[#allocation3 + $0x48] sm:$0x1] }
 0x2e1   : > { %1823 = vst [vmem:[#allocation3 + $0x50] sm:$0x4] %v1822_v38  ;;  %3431 = vrot.lane.b32.xlu1 %v7119_v15, %s6819_s16  ;;  %v2286_v44 = vsel %vm7382_vm7, %v2234_v42, %v2285_v40  ;;  %v2554_v36 = vld [vmem:[#allocation3 + $0x48] sm:$0x8]  ;;  %v2063_v38 = vld [vmem:[#allocation3 + $0x48] sm:$0x4] }
 0x2e2   : > { %2287 = vst [vmem:[#allocation3 + $0x8] sm:$0x8] %v2286_v44  ;;  %3690 = vrot.lane.b32.xlu0 %v7144_v46, %s6815_s17  ;;  %v4507_v28 = vld [vmem:[#allocation3] sm:$0xff] }
 0x2e3   : > { %v1514_v56 = vpop.permute.xlu1 %1513  ;;  %6469 = vmatmul.mubr.msk.bf16.vlgmr.msra.gmra.mrb[4].mxu0 %vm8845_vm12, %v4507_v28  ;;  %v1306_v28 = vld [vmem:[#allocation3 + $0x10] sm:$0x2] }
 0x2e4   : > { %v1573_v57 = vsel %vm7432_vm0, %v1514_v56, %v1572_v13  ;;  %v1270_v6 = vpop.permute.xlu0 %1269  ;;  %6480 = vmatprep.mubr.msk.bf16.mxu0 %vm8846_vm8, %v6822_v11 }
 0x2e5   : > { %1574 = vst [vmem:[#allocation3 + $0x48] sm:$0x2] %v1573_v57  ;;  %3922 = vrot.lane.b32.xlu1 %v7119_v15, %s6820_s18  ;;  %v1331_v7 = vsel %vm7369_vm15, %v1270_v6, %v1330_v62  ;;  %v1548_v40 = vld [vmem:[#allocation3 + $0x8] sm:$0x2]  ;;  %v1827_v6 = vld [vmem:[#allocation3 + $0x60] sm:$0x4] }
 0x2e6   : > { %1332 = vst [vmem:[#allocation3 + $0x50] sm:$0x2] %v1331_v7  ;;  %3674 = vrot.lane.b32.xlu0 %v7116_v14, %s6815_s17 }
 0x2e7   : > { %v2496_v9 = vpop.permute.xlu1 %2495 }
 0x2e8   : > { %v2555_v19 = vsel %vm7463_vm1, %v2496_v9, %v2554_v36  ;;  %v2252_v10 = vpop.permute.xlu0 %2251 }
 0x2e9   : > { %2556 = vst [vmem:[#allocation3 + $0x48] sm:$0x8] %v2555_v19  ;;  %4413 = vrot.lane.b32.xlu1 %v7119_v15, %s6821_s19  ;;  %v2313_v49 = vsel %vm7382_vm7, %v2252_v10, %v2312_v8  ;;  %v2530_v62 = vld [vmem:[#allocation3 + $0x8] sm:$0x8]  ;;  %v1803_v19 = vld [vmem:[#allocation3 + $0x20] sm:$0x4] }
 0x2ea   : > { %2314 = vst [vmem:[#allocation3 + $0x50] sm:$0x8] %v2313_v49  ;;  %3692 = vrot.lane.b32.xlu0 %v7136_v33, %s6815_s17 }
 0x2eb   : > { %v1745_v18 = vpop.permute.xlu1 %1744 }
 0x2ec   : > { %v1798_v59 = vsel %vm7362_vm14, %v1745_v18, %v1797_v17  ;;  %v1023_v25 = vpop.permute.xlu0 %1022  ;;  %v1057_v17 = vld [vmem:[#allocation3 + $0x8] sm:$0x1] }
 0x2ed   : > { %1799 = vst [vmem:[#allocation3 + $0x10] sm:$0x4] %v1798_v59  ;;  %2960 = vrot.lane.b32.xlu1 %v7147_v48, %s6818_s15  ;;  %v1082_v23 = vsel %vm7419_vm9, %v1023_v25, %v1081_v2  ;;  %v3259_v59 = vld [vmem:[#allocation3 + $0x48] sm:$0x20] }
 0x2ee   : > { %1083 = vst [vmem:[#allocation3 + $0x48] sm:$0x1] %v1082_v23  ;;  %2954 = vrot.lane.b32.xlu0 %v7144_v46, %s6818_s15 }
 0x2ef   : > { %v1498_v54 = vpop.permute.xlu1 %1497 }
 0x2f0   : > { %v1549_v33 = vsel %vm7432_vm0, %v1498_v54, %v1548_v40  ;;  %v2005_v42 = vpop.permute.xlu0 %2004  ;;  %v2039_v40 = vld [vmem:[#allocation3 + $0x8] sm:$0x4] }
 0x2f1   : > { %1550 = vst [vmem:[#allocation3 + $0x8] sm:$0x2] %v1549_v33  ;;  %3451 = vrot.lane.b32.xlu1 %v7147_v48, %s6819_s16  ;;  %v2064_v44 = vsel %vm7445_vm3, %v2005_v42, %v2063_v38  ;;  %v4241_v33 = vld [vmem:[#allocation3 + $0x48] sm:$0x80]  ;;  %v1336_v42 = vld [vmem:[#allocation3 + $0x60] sm:$0x2] }
 0x2f2   : > { %2065 = vst [vmem:[#allocation3 + $0x48] sm:$0x4] %v2064_v44  ;;  %3936 = vrot.lane.b32.xlu0 %v7144_v46, %s6820_s18  ;;  %v2288_v46 = vld [vmem:[#allocation3 + $0x10] sm:$0x8] }
 0x2f3   : > { %v2480_v13 = vpop.permute.xlu1 %2479 }
 0x2f4   : > { %v2531_v56 = vsel %vm7463_vm1, %v2480_v13, %v2530_v62  ;;  %v1254_v57 = vpop.permute.xlu0 %1253  ;;  %v3235_v62 = vld [vmem:[#allocation3 + $0x8] sm:$0x20] }
 0x2f5   : > { %2532 = vst [vmem:[#allocation3 + $0x8] sm:$0x8] %v2531_v56  ;;  %3942 = vrot.lane.b32.xlu1 %v7147_v48, %s6820_s18  ;;  %v1307_v7 = vsel %vm7369_vm15, %v1254_v57, %v1306_v28  ;;  %v2318_v56 = vld [vmem:[#allocation3 + $0x60] sm:$0x8] }
 0x2f6   : > { %1308 = vst [vmem:[#allocation3 + $0x10] sm:$0x2] %v1307_v7  ;;  %3676 = vrot.lane.b32.xlu0 %v7119_v15, %s6815_s17  ;;  %v4217_v7 = vld [vmem:[#allocation3 + $0x8] sm:$0x80] }
 0x2f7   : > { %v1765_v8 = vpop.permute.xlu1 %1764 }
 0x2f8   : > { %v1828_v36 = vsel %vm7362_vm14, %v1765_v8, %v1827_v6  ;;  %v2236_v9 = vpop.permute.xlu0 %2235 }
 0x2f9   : > { %1829 = vst [vmem:[#allocation3 + $0x60] sm:$0x4] %v1828_v36  ;;  %4433 = vrot.lane.b32.xlu1 %v7147_v48, %s6821_s19  ;;  %v2289_v10 = vsel %vm7382_vm7, %v2236_v9, %v2288_v46  ;;  %v1084_v9 = vld [vmem:[#allocation3 + $0x50] sm:$0x1] }
 0x2fa   : > { %2290 = vst [vmem:[#allocation3 + $0x10] sm:$0x8] %v2289_v10  ;;  %2938 = vrot.lane.b32.xlu0 %v7116_v14, %s6818_s15  ;;  %v3262_v10 = vld [vmem:[#allocation3 + $0x50] sm:$0x20] }
 0x2fb   : > { %v1749_v49 = vpop.permute.xlu1 %1748 }
 0x2fc   : > { %v1804_v15 = vsel %vm7362_vm14, %v1749_v49, %v1803_v19  ;;  %v1007_v18 = vpop.permute.xlu0 %1006 }
 0x2fd   : > { %1805 = vst [vmem:[#allocation3 + $0x20] sm:$0x4] %v1804_v15  ;;  %2944 = vrot.lane.b32.xlu1 %v7127_v21, %s6818_s15  ;;  %v1058_v2 = vsel %vm7419_vm9, %v1007_v18, %v1057_v17  ;;  %v1575_v17 = vld [vmem:[#allocation3 + $0x50] sm:$0x2] }
 0x2fe   : > { %1059 = vst [vmem:[#allocation3 + $0x8] sm:$0x1] %v1058_v2  ;;  %3920 = vrot.lane.b32.xlu0 %v7116_v14, %s6820_s18 }
 0x2ff   : > { %v3200_v25 = vpop.permute.xlu1 %3199 }
 0x300   : > { %v3260_v23 = vsel %vm7397_vm13, %v3200_v25, %v3259_v59  ;;  %v1989_v54 = vpop.permute.xlu0 %1988  ;;  %v4244_v59 = vld [vmem:[#allocation3 + $0x50] sm:$0x80] }
 0x301   : > { %3261 = vst [vmem:[#allocation3 + $0x48] sm:$0x20] %v3260_v23  ;;  %3435 = vrot.lane.b32.xlu1 %v7127_v21, %s6819_s16  ;;  %v2040_v38 = vsel %vm7445_vm3, %v1989_v54, %v2039_v40  ;;  %v2066_v40 = vld [vmem:[#allocation3 + $0x50] sm:$0x4] }
 0x302   : > { %2041 = vst [vmem:[#allocation3 + $0x8] sm:$0x4] %v2040_v38  ;;  %3696 = vrot.lane.b32.xlu0 %v7147_v48, %s6815_s17 }
 0x303   : > { %v4182_v14 = vpop.permute.xlu1 %4181 }
 0x304   : > { %v4242_v44 = vsel %vm7410_vm11, %v4182_v14, %v4241_v33  ;;  %v1274_v28 = vpop.permute.xlu0 %1273 }
 0x305   : > { %4243 = vst [vmem:[#allocation3 + $0x48] sm:$0x80] %v4242_v44  ;;  %3926 = vrot.lane.b32.xlu1 %v7127_v21, %s6820_s18  ;;  %v1337_v13 = vsel %vm7369_vm15, %v1274_v28, %v1336_v42  ;;  %v2557_v44 = vld [vmem:[#allocation3 + $0x50] sm:$0x8] }
 0x306   : > { %1338 = vst [vmem:[#allocation3 + $0x60] sm:$0x2] %v1337_v13  ;;  %3680 = vrot.lane.b32.xlu0 %v7127_v21, %s6815_s17  ;;  %v1312_v13 = vld [vmem:[#allocation3 + $0x20] sm:$0x2] }
 0x307   : > { %v3184_v48 = vpop.permute.xlu1 %3183 }
 0x308   : > { %v3236_v57 = vsel %vm7397_vm13, %v3184_v48, %v3235_v62  ;;  %v2256_v6 = vpop.permute.xlu0 %2255  ;;  %v3504_v38 = vld [vmem:[#allocation3 + $0x48] sm:$0x20] }
 0x309   : > { %3237 = vst [vmem:[#allocation3 + $0x8] sm:$0x20] %v3236_v57  ;;  %4417 = vrot.lane.b32.xlu1 %v7127_v21, %s6821_s19  ;;  %v2319_v46 = vsel %vm7382_vm7, %v2256_v6, %v2318_v56 }
 0x30a   : > { %2320 = vst [vmem:[#allocation3 + $0x60] sm:$0x8] %v2319_v46  ;;  %1026 = vrot.lane.b32.xlu0 %v7060_v39, %s6818_s15 }
 0x30b   : > { %v4166_v8 = vpop.permute.xlu1 %4165 }
 0x30c   : > { %v4218_v36 = vsel %vm7410_vm11, %v4166_v8, %v4217_v7  ;;  %v1025_v19 = vpop.permute.xlu0 %1024  ;;  %v4486_v56 = vld [vmem:[#allocation3 + $0x48] sm:$0x80]  ;;  %v3238_v7 = vld [vmem:[#allocation3 + $0x10] sm:$0x20]  ;;  %v2294_v8 = vld [vmem:[#allocation3 + $0x20] sm:$0x8] }
 0x30d   : > { %4219 = vst [vmem:[#allocation3 + $0x8] sm:$0x80] %v4218_v36  ;;  %1271 = vrot.lane.b32.xlu1 %v7060_v39, %s6816_s26  ;;  %v1085_v21 = vsel %vm7419_vm9, %v1025_v19, %v1084_v9 }
 0x30e   : > { %1086 = vst [vmem:[#allocation3 + $0x50] sm:$0x1] %v1085_v21  ;;  %2008 = vrot.lane.b32.xlu0 %v7060_v39, %s6820_s18 }
 0x30f   : > { %v3202_v49 = vpop.permute.xlu1 %3201 }
 0x310   : > { %v3263_v15 = vsel %vm7397_vm13, %v3202_v49, %v3262_v10  ;;  %v1516_v18 = vpop.permute.xlu0 %1515  ;;  %v4220_v10 = vld [vmem:[#allocation3 + $0x10] sm:$0x80] }
 0x311   : > { %3264 = vst [vmem:[#allocation3 + $0x50] sm:$0x20] %v3263_v15  ;;  %1762 = vrot.lane.b32.xlu1 %v7060_v39, %s6815_s17  ;;  %v1576_v2 = vsel %vm7432_vm0, %v1516_v18, %v1575_v17  ;;  %v1060_v18 = vld [vmem:[#allocation3 + $0x10] sm:$0x1] }
 0x312   : > { %1577 = vst [vmem:[#allocation3 + $0x50] sm:$0x2] %v1576_v2  ;;  %1010 = vrot.lane.b32.xlu0 %v7025_v27, %s6818_s15  ;;  %v3480_v2 = vld [vmem:[#allocation3 + $0x8] sm:$0x20] }
 0x313   : > { %v4184_v25 = vpop.permute.xlu1 %4183 }
 0x314   : > { %v4245_v23 = vsel %vm7410_vm11, %v4184_v25, %v4244_v59  ;;  %v2007_v54 = vpop.permute.xlu0 %2006 }
 0x315   : > { %4246 = vst [vmem:[#allocation3 + $0x50] sm:$0x80] %v4245_v23  ;;  %2253 = vrot.lane.b32.xlu1 %v7060_v39, %s6817_s28  ;;  %v2067_v33 = vsel %vm7445_vm3, %v2007_v54, %v2066_v40  ;;  %v1551_v40 = vld [vmem:[#allocation3 + $0x10] sm:$0x2] }
 0x316   : > { %2068 = vst [vmem:[#allocation3 + $0x50] sm:$0x4] %v2067_v33  ;;  %1992 = vrot.lane.b32.xlu0 %v7025_v27, %s6820_s18 }
 0x317   : > { %v3446_v42 = vpop.permute.xlu1 %3445 }
 0x318   : > { %v3505_v14 = vsel %vm7472_vm5, %v3446_v42, %v3504_v38  ;;  %v2498_v28 = vpop.permute.xlu0 %2497  ;;  %v4462_v38 = vld [vmem:[#allocation3 + $0x8] sm:$0x80] }
 0x319   : > { %3506 = vst [vmem:[#allocation3 + $0x48] sm:$0x20] %v3505_v14  ;;  %1255 = vrot.lane.b32.xlu1 %v7025_v27, %s6816_s26  ;;  %v2558_v62 = vsel %vm7463_vm1, %v2498_v28, %v2557_v44  ;;  %v2042_v44 = vld [vmem:[#allocation3 + $0x10] sm:$0x4] }
 0x31a   : > { %2559 = vst [vmem:[#allocation3 + $0x50] sm:$0x8] %v2558_v62  ;;  %1277 = vrot.lane.b32.xlu0 %v7072_v43, %s6816_s26  ;;  %v3268_v62 = vld [vmem:[#allocation3 + $0x60] sm:$0x20] }
 0x31b   : > { %v4428_v48 = vpop.permute.xlu1 %4427 }
 0x31c   : > { %v4487_v57 = vsel %vm7493_vm2, %v4428_v48, %v4486_v56  ;;  %v1258_v6 = vpop.permute.xlu0 %1257 }
 0x31d   : > { %4488 = vst [vmem:[#allocation3 + $0x48] sm:$0x80] %v4487_v57  ;;  %1746 = vrot.lane.b32.xlu1 %v7025_v27, %s6815_s17  ;;  %v1313_v46 = vsel %vm7369_vm15, %v1258_v6, %v1312_v13  ;;  %v2533_v57 = vld [vmem:[#allocation3 + $0x10] sm:$0x8] }
 0x31e   : > { %1314 = vst [vmem:[#allocation3 + $0x20] sm:$0x2] %v1313_v46  ;;  %2259 = vrot.lane.b32.xlu0 %v7072_v43, %s6817_s28 }
 0x31f   : > { %v3186_v36 = vpop.permute.xlu1 %3185 }
 0x320   : > { %v3239_v9 = vsel %vm7397_vm13, %v3186_v36, %v3238_v7  ;;  %v2240_v19 = vpop.permute.xlu0 %2239  ;;  %v4250_v7 = vld [vmem:[#allocation3 + $0x60] sm:$0x80] }
 0x321   : > { %3240 = vst [vmem:[#allocation3 + $0x10] sm:$0x20] %v3239_v9  ;;  %2237 = vrot.lane.b32.xlu1 %v7025_v27, %s6817_s28  ;;  %v2295_v21 = vsel %vm7382_vm7, %v2240_v19, %v2294_v8  ;;  %v1090_v9 = vld [vmem:[#allocation3 + $0x60] sm:$0x1] }
 0x322   : > { %2296 = vst [vmem:[#allocation3 + $0x20] sm:$0x8] %v2295_v21  ;;  %1030 = vrot.lane.b32.xlu0 %v7066_v41, %s6818_s15  ;;  %v3016_v21 = vld [vmem:[#allocation3 + $0x50] sm:$0x10] }
 0x323   : > { %v4168_v49 = vpop.permute.xlu1 %4167 }
 0x324   : > { %v4221_v15 = vsel %vm7410_vm11, %v4168_v49, %v4220_v10  ;;  %v1009_v17 = vpop.permute.xlu0 %1008 }
 0x325   : > { %4222 = vst [vmem:[#allocation3 + $0x10] sm:$0x80] %v4221_v15  ;;  %1275 = vrot.lane.b32.xlu1 %v7066_v41, %s6816_s26  ;;  %v1061_v59 = vsel %vm7419_vm9, %v1009_v17, %v1060_v18  ;;  %v1581_v17 = vld [vmem:[#allocation3 + $0x60] sm:$0x2] }
 0x326   : > { %1062 = vst [vmem:[#allocation3 + $0x10] sm:$0x1] %v1061_v59  ;;  %2012 = vrot.lane.b32.xlu0 %v7066_v41, %s6820_s18  ;;  %v3507_v59 = vld [vmem:[#allocation3 + $0x50] sm:$0x20] }
 0x327   : > { %v3430_v25 = vpop.permute.xlu1 %3429 }
 0x328   : > { %v3481_v23 = vsel %vm7472_vm5, %v3430_v25, %v3480_v2  ;;  %v1500_v54 = vpop.permute.xlu0 %1499 }
 0x329   : > { %3482 = vst [vmem:[#allocation3 + $0x8] sm:$0x20] %v3481_v23  ;;  %1766 = vrot.lane.b32.xlu1 %v7066_v41, %s6815_s17  ;;  %v1552_v33 = vsel %vm7432_vm0, %v1500_v54, %v1551_v40  ;;  %v2072_v23 = vld [vmem:[#allocation3 + $0x60] sm:$0x4] }
 0x32a   : > { %1553 = vst [vmem:[#allocation3 + $0x10] sm:$0x2] %v1552_v33  ;;  %1261 = vrot.lane.b32.xlu0 %v7036_v31, %s6816_s26 }
 0x32b   : > { %v4412_v42 = vpop.permute.xlu1 %4411 }
 0x32c   : > { %v4463_v14 = vsel %vm7493_vm2, %v4412_v42, %v4462_v38  ;;  %v1991_v28 = vpop.permute.xlu0 %1990  ;;  %v2563_v38 = vld [vmem:[#allocation3 + $0x60] sm:$0x8] }
 0x32d   : > { %4464 = vst [vmem:[#allocation3 + $0x8] sm:$0x80] %v4463_v14  ;;  %2257 = vrot.lane.b32.xlu1 %v7066_v41, %s6817_s28  ;;  %v2043_v13 = vsel %vm7445_vm3, %v1991_v28, %v2042_v44  ;;  %v4489_v44 = vld [vmem:[#allocation3 + $0x50] sm:$0x80] }
 0x32e   : > { %2044 = vst [vmem:[#allocation3 + $0x10] sm:$0x4] %v2043_v13  ;;  %2243 = vrot.lane.b32.xlu0 %v7036_v31, %s6817_s28  ;;  %v1066_v13 = vld [vmem:[#allocation3 + $0x20] sm:$0x1] }
 0x32f   : > { %v3206_v56 = vpop.permute.xlu1 %3205 }
 0x330   : > { %v3269_v48 = vsel %vm7397_vm13, %v3206_v56, %v3268_v62  ;;  %v2482_v6 = vpop.permute.xlu0 %2481 }
 0x331   : > { %3270 = vst [vmem:[#allocation3 + $0x60] sm:$0x20] %v3269_v48  ;;  %1517 = vrot.lane.b32.xlu1 %v7060_v39, %s6819_s16  ;;  %v2534_v46 = vsel %vm7463_vm1, %v2482_v6, %v2533_v57  ;;  %v3244_v48 = vld [vmem:[#allocation3 + $0x20] sm:$0x20] }
 0x332   : > { %2535 = vst [vmem:[#allocation3 + $0x10] sm:$0x8] %v2534_v46  ;;  %1014 = vrot.lane.b32.xlu0 %v7031_v29, %s6818_s15  ;;  %v1557_v46 = vld [vmem:[#allocation3 + $0x20] sm:$0x2] }
 0x333   : > { %v4188_v8 = vpop.permute.xlu1 %4187 }
 0x334   : > { %v4251_v36 = vsel %vm7410_vm11, %v4188_v8, %v4250_v7  ;;  %v1029_v19 = vpop.permute.xlu0 %1028 }
 0x335   : > { %4252 = vst [vmem:[#allocation3 + $0x60] sm:$0x80] %v4251_v36  ;;  %2499 = vrot.lane.b32.xlu1 %v7060_v39, %s6821_s19  ;;  %v1091_v10 = vsel %vm7419_vm9, %v1029_v19, %v1090_v9  ;;  %v4226_v36 = vld [vmem:[#allocation3 + $0x20] sm:$0x80] }
 0x336   : > { %1092 = vst [vmem:[#allocation3 + $0x60] sm:$0x1] %v1091_v10  ;;  %1996 = vrot.lane.b32.xlu0 %v7031_v29, %s6820_s18 }
 0x337   : > { %v2957_v49 = vpop.permute.xlu1 %2956 }
 0x338   : > { %v3017_v15 = vsel %vm7454_vm6, %v2957_v49, %v3016_v21  ;;  %v1520_v18 = vpop.permute.xlu0 %1519  ;;  %v2048_v21 = vld [vmem:[#allocation3 + $0x20] sm:$0x4] }
 0x339   : > { %3018 = vst [vmem:[#allocation3 + $0x50] sm:$0x10] %v3017_v15  ;;  %1259 = vrot.lane.b32.xlu1 %v7031_v29, %s6816_s26  ;;  %v1582_v39 = vsel %vm7432_vm0, %v1520_v18, %v1581_v17  ;;  %v2992_v15 = vld [vmem:[#allocation3 + $0x10] sm:$0x10] }
 0x33a   : > { %1583 = vst [vmem:[#allocation3 + $0x60] sm:$0x2] %v1582_v39  ;;  %1032 = vrot.lane.b32.xlu0 %v7072_v43, %s6818_s15  ;;  %v2539_v39 = vld [vmem:[#allocation3 + $0x20] sm:$0x8] }
 0x33b   : > { %v3448_v2 = vpop.permute.xlu1 %3447 }
 0x33c   : > { %v3508_v25 = vsel %vm7472_vm5, %v3448_v2, %v3507_v59  ;;  %v2011_v40 = vpop.permute.xlu0 %2010 }
 0x33d   : > { %3509 = vst [vmem:[#allocation3 + $0x50] sm:$0x20] %v3508_v25  ;;  %1750 = vrot.lane.b32.xlu1 %v7031_v29, %s6815_s17  ;;  %v2073_v54 = vsel %vm7445_vm3, %v2011_v40, %v2072_v23  ;;  %v3750_v25 = vld [vmem:[#allocation3 + $0x48] sm:$0x40]  ;;  %v3483_v23 = vld [vmem:[#allocation3 + $0x10] sm:$0x20] }
 0x33e   : > { %2074 = vst [vmem:[#allocation3 + $0x60] sm:$0x4] %v2073_v54  ;;  %2014 = vrot.lane.b32.xlu0 %v7072_v43, %s6820_s18 }
 0x33f   : > { %v7766_v33 = vpop.permute.xlu1 %3938 }
 0x340   : > { %v2502_v42 = vpop.permute.xlu0 %2501 }
 0x341   : > { %2241 = vrot.lane.b32.xlu1 %v7031_v29, %s6817_s28  ;;  %v2564_v14 = vsel %vm7463_vm1, %v2502_v42, %v2563_v38 }
 0x342   : > { %2565 = vst [vmem:[#allocation3 + $0x60] sm:$0x8] %v2564_v14  ;;  %1016 = vrot.lane.b32.xlu0 %v7036_v31, %s6818_s15  ;;  %v3726_v14 = vld [vmem:[#allocation3 + $0x8] sm:$0x40] }
 0x343   : > { %v4430_v28 = vpop.permute.xlu1 %4429 }
 0x344   : > { %v4490_v62 = vsel %vm7493_vm2, %v4430_v28, %v4489_v44  ;;  %v1013_v56 = vpop.permute.xlu0 %1012 }
 0x345   : > { %4491 = vst [vmem:[#allocation3 + $0x50] sm:$0x80] %v4490_v62  ;;  %1501 = vrot.lane.b32.xlu1 %v7025_v27, %s6819_s16  ;;  %v1067_v57 = vsel %vm7419_vm9, %v1013_v56, %v1066_v13  ;;  %v4465_v13 = vld [vmem:[#allocation3 + $0x10] sm:$0x80] }
 0x346   : > { %1068 = vst [vmem:[#allocation3 + $0x20] sm:$0x1] %v1067_v57  ;;  %1998 = vrot.lane.b32.xlu0 %v7036_v31, %s6820_s18 }
 0x347   : > { %v3190_v6 = vpop.permute.xlu1 %3189 }
 0x348   : > { %v3245_v7 = vsel %vm7397_vm13, %v3190_v6, %v3244_v48  ;;  %v1504_v8 = vpop.permute.xlu0 %1503 }
 0x349   : > { %3246 = vst [vmem:[#allocation3 + $0x20] sm:$0x20] %v3245_v7  ;;  %2483 = vrot.lane.b32.xlu1 %v7025_v27, %s6821_s19  ;;  %v1558_v9 = vsel %vm7432_vm0, %v1504_v8, %v1557_v46  ;;  %v3022_v7 = vld [vmem:[#allocation3 + $0x60] sm:$0x10] }
 0x34a   : > { %1559 = vst [vmem:[#allocation3 + $0x20] sm:$0x2] %v1558_v9  ;;  %3203 = vrot.lane.b32.xlu0 %v7153_v52, %s6816_s26 }
 0x34b   : > { %v4172_v19 = vpop.permute.xlu1 %4171 }
 0x34c   : > { %v4227_v10 = vsel %vm7410_vm11, %v4172_v19, %v4226_v36  ;;  %v1995_v49 = vpop.permute.xlu0 %1994  ;;  %v3013_v36 = vld [vmem:[#allocation3 + $0x48] sm:$0x10] }
 0x34d   : > { %4228 = vst [vmem:[#allocation3 + $0x20] sm:$0x80] %v4227_v10  ;;  %1768 = vrot.lane.b32.xlu1 %v7072_v43, %s6815_s17  ;;  %v2049_v27 = vsel %vm7445_vm3, %v1995_v49, %v2048_v21  ;;  %v3513_v10 = vld [vmem:[#allocation3 + $0x60] sm:$0x20] }
 0x34e   : > { %2050 = vst [vmem:[#allocation3 + $0x20] sm:$0x4] %v2049_v27  ;;  %3694 = vrot.lane.b32.xlu0 %v7153_v52, %s6815_s17 }
 0x34f   : > { %v2941_v17 = vpop.permute.xlu1 %2940 }
 0x350   : > { %v2993_v18 = vsel %vm7454_vm6, %v2941_v17, %v2992_v15  ;;  %v2486_v59 = vpop.permute.xlu0 %2485 }
 0x351   : > { %2994 = vst [vmem:[#allocation3 + $0x10] sm:$0x10] %v2993_v18  ;;  %1521 = vrot.lane.b32.xlu1 %v7066_v41, %s6819_s16  ;;  %v2540_v2 = vsel %vm7463_vm1, %v2486_v59, %v2539_v39  ;;  %v3729_v39 = vld [vmem:[#allocation3 + $0x10] sm:$0x40] }
 0x352   : > { %2541 = vst [vmem:[#allocation3 + $0x20] sm:$0x8] %v2540_v2  ;;  %4185 = vrot.lane.b32.xlu0 %v7153_v52, %s6817_s28 }
 0x353   : > { %v3432_v40 = vpop.permute.xlu1 %3431 }
 0x354   : > { %v3484_v54 = vsel %vm7472_vm5, %v3432_v40, %v3483_v23  ;;  %v3691_v38 = vpop.permute.xlu0 %3690 }
 0x355   : > { %3485 = vst [vmem:[#allocation3 + $0x10] sm:$0x20] %v3484_v54  ;;  %2503 = vrot.lane.b32.xlu1 %v7066_v41, %s6821_s19  ;;  %v3751_v42 = vsel %vm7518_vm4, %v3691_v38, %v3750_v25  ;;  %v3753_v41 = vld [vmem:[#allocation3 + $0x50] sm:$0x40]  ;;  %v2989_v54 = vld [vmem:[#allocation3 + $0x8] sm:$0x10] }
 0x356   : > { %3752 = vst [vmem:[#allocation3 + $0x48] sm:$0x40] %v3751_v42  ;;  %3187 = vrot.lane.b32.xlu0 %v7122_v16, %s6816_s26 }
 0x357   : > { %v7814_v44 = vpop.permute.xlu1 %3922 }
 0x358   : > { %v3675_v28 = vpop.permute.xlu0 %3674 }
 0x359   : > { %1752 = vrot.lane.b32.xlu1 %v7036_v31, %s6815_s17  ;;  %v3727_v62 = vsel %vm7518_vm4, %v3675_v28, %v3726_v14  ;;  %v2998_v28 = vld [vmem:[#allocation3 + $0x20] sm:$0x10] }
 0x35a   : > { %3728 = vst [vmem:[#allocation3 + $0x8] sm:$0x40] %v3727_v62  ;;  %3678 = vrot.lane.b32.xlu0 %v7122_v16, %s6815_s17 }
 0x35b   : > { %v4414_v56 = vpop.permute.xlu1 %4413 }
 0x35c   : > { %v4466_v48 = vsel %vm7493_vm2, %v4414_v56, %v4465_v13  ;;  %v3693_v57 = vpop.permute.xlu0 %3692 }
 0x35d   : > { %4467 = vst [vmem:[#allocation3 + $0x10] sm:$0x80] %v4466_v48  ;;  %1505 = vrot.lane.b32.xlu1 %v7031_v29, %s6819_s16  ;;  %v3754_v6 = vsel %vm7518_vm4, %v3693_v57, %v3753_v41  ;;  %v3995_v27 = vld [vmem:[#allocation3 + $0x48] sm:$0x40] }
 0x35e   : > { %3755 = vst [vmem:[#allocation3 + $0x50] sm:$0x40] %v3754_v6  ;;  %4169 = vrot.lane.b32.xlu0 %v7122_v16, %s6817_s28 }
 0x35f   : > { %v2961_v46 = vpop.permute.xlu1 %2960 }
 0x360   : > { %v3023_v8 = vsel %vm7454_vm6, %v2961_v46, %v3022_v7  ;;  %v2955_v9 = vpop.permute.xlu0 %2954  ;;  %v3759_v7 = vld [vmem:[#allocation3 + $0x60] sm:$0x40]  ;;  %v3489_v46 = vld [vmem:[#allocation3 + $0x20] sm:$0x20] }
 0x361   : > { %3024 = vst [vmem:[#allocation3 + $0x60] sm:$0x10] %v3023_v8  ;;  %2487 = vrot.lane.b32.xlu1 %v7031_v29, %s6821_s19  ;;  %v3014_v19 = vsel %vm7454_vm6, %v2955_v9, %v3013_v36  ;;  %v3971_v13 = vld [vmem:[#allocation3 + $0x8] sm:$0x40] }
 0x362   : > { %3015 = vst [vmem:[#allocation3 + $0x48] sm:$0x10] %v3014_v19  ;;  %3207 = vrot.lane.b32.xlu0 %v7156_v53, %s6816_s26 }
 0x363   : > { %v3452_v21 = vpop.permute.xlu1 %3451 }
 0x364   : > { %v3514_v49 = vsel %vm7472_vm5, %v3452_v21, %v3513_v10  ;;  %v3937_v15 = vpop.permute.xlu0 %3936 }
 0x365   : > { %v3998_v17 = vld [vmem:[#allocation3 + $0x50] sm:$0x40]  ;;  %3515 = vst [vmem:[#allocation3 + $0x60] sm:$0x20] %v3514_v49  ;;  %1523 = vrot.lane.b32.xlu1 %v7072_v43, %s6819_s16  ;;  %v3996_v29 = vsel %vm7537_vm10, %v3937_v15, %v3995_v27  ;;  %v4471_v15 = vld [vmem:[#allocation3 + $0x20] sm:$0x80] }
 0x366   : > { %v3999_v18 = vsel %vm7537_vm10, %v7766_v33, %v3998_v17  ;;  %3997 = vst [vmem:[#allocation3 + $0x48] sm:$0x40] %v3996_v29  ;;  %3698 = vrot.lane.b32.xlu0 %v7156_v53, %s6815_s17  ;;  %v4495_v33 = vld [vmem:[#allocation3 + $0x60] sm:$0x80]  ;;  %v1087_v29 = vld [vmem:[#allocation3 + $0x58] sm:$0x1] }
 0x367   : > { %4000 = vst [vmem:[#allocation3 + $0x50] sm:$0x40] %v3999_v18  ;;  %v7849_v59 = vpop.permute.xlu1 %3942 }
 0x368   : > { %v3677_v2 = vpop.permute.xlu0 %3676 }
 0x369   : > { %2505 = vrot.lane.b32.xlu1 %v7072_v43, %s6821_s19  ;;  %v3730_v25 = vsel %vm7518_vm4, %v3677_v2, %v3729_v39  ;;  %v1333_v2 = vld [vmem:[#allocation3 + $0x58] sm:$0x2] }
 0x36a   : > { %3731 = vst [vmem:[#allocation3 + $0x10] sm:$0x40] %v3730_v25  ;;  %4189 = vrot.lane.b32.xlu0 %v7156_v53, %s6817_s28 }
 0x36b   : > { %v4434_v23 = vpop.permute.xlu1 %4433 }
 0x36c   : > { %v4496_v40 = vsel %vm7493_vm2, %v4434_v23, %v4495_v33  ;;  %v2939_v38 = vpop.permute.xlu0 %2938 }
 0x36d   : > { %4497 = vst [vmem:[#allocation3 + $0x60] sm:$0x80] %v4496_v40  ;;  %1507 = vrot.lane.b32.xlu1 %v7036_v31, %s6819_s16  ;;  %v2990_v43 = vsel %vm7454_vm6, %v2939_v38, %v2989_v54  ;;  %v4517_v42 = vld [vmem:[#allocation3 + $0x48] sm:$0xff] }
 0x36e   : > { %2991 = vst [vmem:[#allocation3 + $0x8] sm:$0x10] %v2990_v43  ;;  %6473 = vmatpush3.bf16.msra.mxu1 %v4517_v42  ;;  %2958 = vrot.lane.b32.xlu0 %v7153_v52, %s6818_s15  ;;  %v4518_v14 = vld [vmem:[#allocation3 + $0x50] sm:$0xff]  ;;  %v1824_v43 = vld [vmem:[#allocation3 + $0x58] sm:$0x4] }
 0x36f   : > { %v2945_v62 = vpop.permute.xlu1 %2944  ;;  %6479 = vmatpush3.bf16.msra.mxu0 %v4518_v14  ;;  %6484 = vmatprep.subr.bf16.mxu1 %v6822_v11 }
 0x370   : > { %v2999_v41 = vsel %vm7454_vm6, %v2945_v62, %v2998_v28  ;;  %v3921_v56 = vpop.permute.xlu0 %3920  ;;  %6490 = vmatprep.subr.bf16.mxu0 %v6822_v11  ;;  %v1063_v62 = vld [vmem:[#allocation3 + $0x18] sm:$0x1] }
 0x371   : > { %v3974_v48 = vld [vmem:[#allocation3 + $0x10] sm:$0x40]  ;;  %3000 = vst [vmem:[#allocation3 + $0x20] sm:$0x10] %v2999_v41  ;;  %2489 = vrot.lane.b32.xlu1 %v7036_v31, %s6821_s19  ;;  %v3972_v57 = vsel %vm7537_vm10, %v3921_v56, %v3971_v13  ;;  %v2315_v41 = vld [vmem:[#allocation3 + $0x58] sm:$0x8] }
 0x372   : > { %v3975_v6 = vsel %vm7537_vm10, %v7814_v44, %v3974_v48  ;;  %3973 = vst [vmem:[#allocation3 + $0x8] sm:$0x40] %v3972_v57  ;;  %3940 = vrot.lane.b32.xlu0 %v7153_v52, %s6820_s18  ;;  %v3735_v44 = vld [vmem:[#allocation3 + $0x20] sm:$0x40] }
 0x373   : > { %3976 = vst [vmem:[#allocation3 + $0x10] sm:$0x40] %v3975_v6  ;;  %v3436_v8 = vpop.permute.xlu1 %3435 }
 0x374   : > { %v3490_v36 = vsel %vm7472_vm5, %v3436_v8, %v3489_v46  ;;  %v3697_v9 = vpop.permute.xlu0 %3696  ;;  %vm8847_vm5 = vmmov %vm8845_vm12  ;;  %v1342_v8 = vld [vmem:[#allocation3 + $0x70] sm:$0x2] }
 0x375   : > { %3491 = vst [vmem:[#allocation3 + $0x20] sm:$0x20] %v3490_v36  ;;  %3449 = vrot.lane.b32.xlu1 %v7153_v52, %s6819_s16  ;;  %v3760_v31 = vsel %vm7518_vm4, %v3697_v9, %v3759_v7  ;;  %v1309_v7 = vld [vmem:[#allocation3 + $0x18] sm:$0x2] }
 0x376   : > { %3761 = vst [vmem:[#allocation3 + $0x60] sm:$0x40] %v3760_v31  ;;  %3191 = vrot.lane.b32.xlu0 %v7130_v26, %s6816_s26 }
 0x377   : > { %v3927_v19 = vpop.permute.xlu1 %3926 }
 0x378   : > { %v3681_v10 = vpop.permute.xlu0 %3680 }
 0x379   : > { %4431 = vrot.lane.b32.xlu1 %v7153_v52, %s6821_s19  ;;  %v3736_v21 = vsel %vm7518_vm4, %v3681_v10, %v3735_v44  ;;  %v4508_v49 = vld [vmem:[#allocation3 + $0x8] sm:$0xff]  ;;  %v1800_v10 = vld [vmem:[#allocation3 + $0x18] sm:$0x4] }
 0x37a   : > { %3737 = vst [vmem:[#allocation3 + $0x20] sm:$0x40] %v3736_v21  ;;  %6475 = vmatmul.mubr.msk.bf16.vlgmr.msra.gmra.mrb[4].mxu1 %vm8845_vm12, %v4508_v49  ;;  %3682 = vrot.lane.b32.xlu0 %v7130_v26, %s6815_s17  ;;  %v4509_v27 = vld [vmem:[#allocation3 + $0x10] sm:$0xff]  ;;  %vm8848_vm12 = vmmov %vm8847_vm5 }
 0x37b   : > { %v4418_v17 = vpop.permute.xlu1 %4417  ;;  %6481 = vmatmul.mubr.msk.bf16.vlgmr.msra.gmra.mrb[8].mxu0 %vm8847_vm5, %v4509_v27  ;;  %6486 = vmatprep.mubr.msk.bf16.mxu1 %vm8846_vm8, %v6822_v11  ;;  %v2324_v21 = vld [vmem:[#allocation3 + $0x70] sm:$0x8] }
 0x37c   : > { %v4472_v52 = vsel %vm7493_vm2, %v4418_v17, %v4471_v15  ;;  %v1027_v18 = vpop.permute.xlu0 %1026  ;;  %6492 = vmatprep.mubr.msk.bf16.mxu0 %vm8846_vm8, %v6822_v11 }
 0x37d   : > { %v4004_v39 = vld [vmem:[#allocation3 + $0x60] sm:$0x40]  ;;  %4473 = vst [vmem:[#allocation3 + $0x20] sm:$0x80] %v4472_v52  ;;  %3433 = vrot.lane.b32.xlu1 %v7122_v16, %s6819_s16  ;;  %v1088_v25 = vsel %vm7419_vm9, %v1027_v18, %v1087_v29  ;;  %v2291_v52 = vld [vmem:[#allocation3 + $0x18] sm:$0x8] }
 0x37e   : > { %v4005_v33 = vsel %vm7537_vm10, %v7849_v59, %v4004_v39  ;;  %1089 = vst [vmem:[#allocation3 + $0x58] sm:$0x1] %v1088_v25  ;;  %4173 = vrot.lane.b32.xlu0 %v7130_v26, %s6817_s28  ;;  %v1093_v39 = vld [vmem:[#allocation3 + $0x68] sm:$0x1] }
 0x37f   : > { %4006 = vst [vmem:[#allocation3 + $0x60] sm:$0x40] %v4005_v33  ;;  %v1272_v23 = vpop.permute.xlu1 %1271  ;;  %v1339_v33 = vld [vmem:[#allocation3 + $0x68] sm:$0x2] }
 0x380   : > { %v1334_v40 = vsel %vm7369_vm15, %v1272_v23, %v1333_v2  ;;  %v2009_v54 = vpop.permute.xlu0 %2008 }
 0x381   : > { %v3980_v38 = vld [vmem:[#allocation3 + $0x20] sm:$0x40]  ;;  %1335 = vst [vmem:[#allocation3 + $0x58] sm:$0x2] %v1334_v40  ;;  %4415 = vrot.lane.b32.xlu1 %v7122_v16, %s6821_s19 }
 0x382   : > { %v3981_v42 = vsel %vm7537_vm10, %v3927_v19, %v3980_v38  ;;  %2942 = vrot.lane.b32.xlu0 %v7122_v16, %s6818_s15 }
 0x383   : > { %3982 = vst [vmem:[#allocation3 + $0x20] sm:$0x40] %v3981_v42  ;;  %v1763_v59 = vpop.permute.xlu1 %1762  ;;  %v1318_v42 = vld [vmem:[#allocation3 + $0x30] sm:$0x2] }
 0x384   : > { %v1825_v14 = vsel %vm7362_vm14, %v1763_v59, %v1824_v43  ;;  %v1011_v28 = vpop.permute.xlu0 %1010  ;;  %v1830_v43 = vld [vmem:[#allocation3 + $0x68] sm:$0x4] }
 0x385   : > { %1826 = vst [vmem:[#allocation3 + $0x58] sm:$0x4] %v1825_v14  ;;  %3209 = vrot.lane.b32.xlu1 %v7165_v60, %s6816_s26  ;;  %v1064_v13 = vsel %vm7419_vm9, %v1011_v28, %v1063_v62  ;;  %v2321_v62 = vld [vmem:[#allocation3 + $0x68] sm:$0x8] }
 0x386   : > { %1065 = vst [vmem:[#allocation3 + $0x18] sm:$0x1] %v1064_v13  ;;  %3924 = vrot.lane.b32.xlu0 %v7122_v16, %s6820_s18  ;;  %v4520_v56 = vld [vmem:[#allocation3 + $0x60] sm:$0xff]  ;;  %v2300_v13 = vld [vmem:[#allocation3 + $0x30] sm:$0x8] }
 0x387   : > { %v2254_v48 = vpop.permute.xlu1 %2253  ;;  %6491 = vmatpush3.bf16.msra.mxu0 %v4520_v56 }
 0x388   : > { %v2316_v57 = vsel %vm7382_vm7, %v2254_v48, %v2315_v41  ;;  %v1993_v6 = vpop.permute.xlu0 %1992  ;;  %6502 = vmatprep.subr.bf16.mxu0 %v6822_v11 }
 0x389   : > { %2317 = vst [vmem:[#allocation3 + $0x58] sm:$0x8] %v2316_v57  ;;  %4191 = vrot.lane.b32.xlu1 %v7165_v60, %s6817_s28 }
 0x38a   : > { %3700 = vrot.lane.b32.xlu0 %v7165_v60, %s6815_s17  ;;  %v4511_v46 = vld [vmem:[#allocation3 + $0x20] sm:$0xff] }
 0x38b   : > { %v1256_v16 = vpop.permute.xlu1 %1255  ;;  %6493 = vmatmul.mubr.msk.bf16.vlgmr.msra.gmra.mrb[12].mxu0 %vm8847_vm5, %v4511_v46  ;;  %vm8849_vm5 = vnez %v8837_v3 }
 0x38c   : > { %v2069_v36 = vld [vmem:[#allocation3 + $0x58] sm:$0x4]  ;;  %v1310_v9 = vsel %vm7369_vm15, %v1256_v16, %v1309_v7  ;;  %v1278_v31 = vpop.permute.xlu0 %1277  ;;  %6504 = vmatprep.mubr.msk.bf16.mxu0 %vm8846_vm8, %v6822_v11  ;;  %v1578_v7 = vld [vmem:[#allocation3 + $0x58] sm:$0x2] }
 0x38d   : > { %v2070_v44 = vsel %vm7445_vm3, %v2009_v54, %v2069_v36  ;;  %1311 = vst [vmem:[#allocation3 + $0x18] sm:$0x2] %v1310_v9  ;;  %3453 = vrot.lane.b32.xlu1 %v7156_v53, %s6819_s16  ;;  %v1343_v19 = vsel %vm7369_vm15, %v1278_v31, %v1342_v8  ;;  %v1069_v36 = vld [vmem:[#allocation3 + $0x28] sm:$0x1] }
 0x38e   : > { %2071 = vst [vmem:[#allocation3 + $0x58] sm:$0x4] %v2070_v44  ;;  %1344 = vst [vmem:[#allocation3 + $0x70] sm:$0x2] %v1343_v19  ;;  %2962 = vrot.lane.b32.xlu0 %v7156_v53, %s6818_s15 }
 0x38f   : > { %v1747_v49 = vpop.permute.xlu1 %1746 }
 0x390   : > { %v1801_v27 = vsel %vm7362_vm14, %v1747_v49, %v1800_v10  ;;  %v2260_v15 = vpop.permute.xlu0 %2259  ;;  %v2560_v44 = vld [vmem:[#allocation3 + $0x58] sm:$0x8]  ;;  %v1315_v49 = vld [vmem:[#allocation3 + $0x28] sm:$0x2] }
 0x391   : > { %1802 = vst [vmem:[#allocation3 + $0x18] sm:$0x4] %v1801_v27  ;;  %4435 = vrot.lane.b32.xlu1 %v7156_v53, %s6821_s19  ;;  %v2325_v17 = vsel %vm7382_vm7, %v2260_v15, %v2324_v21 }
 0x392   : > { %2326 = vst [vmem:[#allocation3 + $0x70] sm:$0x8] %v2325_v17  ;;  %3944 = vrot.lane.b32.xlu0 %v7156_v53, %s6820_s18  ;;  %v1096_v17 = vld [vmem:[#allocation3 + $0x70] sm:$0x1] }
 0x393   : > { %v2238_v29 = vpop.permute.xlu1 %2237 }
 0x394   : > { %v2292_v18 = vsel %vm7382_vm7, %v2238_v29, %v2291_v52  ;;  %v1031_v2 = vpop.permute.xlu0 %1030  ;;  %v1806_v29 = vld [vmem:[#allocation3 + $0x28] sm:$0x4] }
 0x395   : > { %2293 = vst [vmem:[#allocation3 + $0x18] sm:$0x8] %v2292_v18  ;;  %3193 = vrot.lane.b32.xlu1 %v7133_v30, %s6816_s26  ;;  %v1094_v25 = vsel %vm7419_vm9, %v1031_v2, %v1093_v39 }
 0x396   : > { %1095 = vst [vmem:[#allocation3 + $0x68] sm:$0x1] %v1094_v25  ;;  %3684 = vrot.lane.b32.xlu0 %v7133_v30, %s6815_s17  ;;  %v2297_v25 = vld [vmem:[#allocation3 + $0x28] sm:$0x8] }
 0x397   : > { %v1276_v23 = vpop.permute.xlu1 %1275 }
 0x398   : > { %v2045_v53 = vld [vmem:[#allocation3 + $0x18] sm:$0x4]  ;;  %v1340_v40 = vsel %vm7369_vm15, %v1276_v23, %v1339_v33  ;;  %v2013_v54 = vpop.permute.xlu0 %2012 }
 0x399   : > { %v2046_v38 = vsel %vm7445_vm3, %v1993_v6, %v2045_v53  ;;  %1341 = vst [vmem:[#allocation3 + $0x68] sm:$0x2] %v1340_v40  ;;  %4175 = vrot.lane.b32.xlu1 %v7133_v30, %s6817_s28  ;;  %v1072_v40 = vld [vmem:[#allocation3 + $0x30] sm:$0x1] }
 0x39a   : > { %2047 = vst [vmem:[#allocation3 + $0x18] sm:$0x4] %v2046_v38  ;;  %2946 = vrot.lane.b32.xlu0 %v7130_v26, %s6818_s15 }
 0x39b   : > { %v1767_v59 = vpop.permute.xlu1 %1766 }
 0x39c   : > { %v1831_v14 = vsel %vm7362_vm14, %v1767_v59, %v1830_v43  ;;  %v1262_v28 = vpop.permute.xlu0 %1261 }
 0x39d   : > { %1832 = vst [vmem:[#allocation3 + $0x68] sm:$0x4] %v1831_v14  ;;  %3437 = vrot.lane.b32.xlu1 %v7130_v26, %s6819_s16  ;;  %v1319_v41 = vsel %vm7369_vm15, %v1262_v28, %v1318_v42 }
 0x39e   : > { %1320 = vst [vmem:[#allocation3 + $0x30] sm:$0x2] %v1319_v41  ;;  %3928 = vrot.lane.b32.xlu0 %v7130_v26, %s6820_s18 }
 0x39f   : > { %v2258_v56 = vpop.permute.xlu1 %2257 }
 0x3a0   : > { %v2322_v48 = vsel %vm7382_vm7, %v2258_v56, %v2321_v62  ;;  %v2244_v57 = vpop.permute.xlu0 %2243 }
 0x3a1   : > { %2323 = vst [vmem:[#allocation3 + $0x68] sm:$0x8] %v2322_v48  ;;  %4419 = vrot.lane.b32.xlu1 %v7130_v26, %s6821_s19  ;;  %v2301_v6 = vsel %vm7382_vm7, %v2244_v57, %v2300_v13  ;;  %v3265_v48 = vld [vmem:[#allocation3 + $0x58] sm:$0x20]  ;;  %v2536_v57 = vld [vmem:[#allocation3 + $0x18] sm:$0x8] }
 0x3a2   : > { %2302 = vst [vmem:[#allocation3 + $0x30] sm:$0x8] %v2301_v6  ;;  %2964 = vrot.lane.b32.xlu0 %v7165_v60, %s6818_s15 }
 0x3a3   : > { %v1518_v46 = vpop.permute.xlu1 %1517 }
 0x3a4   : > { %v2075_v8 = vld [vmem:[#allocation3 + $0x68] sm:$0x4]  ;;  %v1579_v16 = vsel %vm7432_vm0, %v1518_v46, %v1578_v7  ;;  %v1015_v9 = vpop.permute.xlu0 %1014 }
 0x3a5   : > { %v2076_v31 = vsel %vm7445_vm3, %v2013_v54, %v2075_v8  ;;  %1580 = vst [vmem:[#allocation3 + $0x58] sm:$0x2] %v1579_v16  ;;  %3455 = vrot.lane.b32.xlu1 %v7165_v60, %s6819_s16  ;;  %v1070_v26 = vsel %vm7419_vm9, %v1015_v9, %v1069_v36  ;;  %v1833_v8 = vld [vmem:[#allocation3 + $0x70] sm:$0x4]  ;;  %v3756_v36 = vld [vmem:[#allocation3 + $0x58] sm:$0x40] }
 0x3a6   : > { %2077 = vst [vmem:[#allocation3 + $0x68] sm:$0x4] %v2076_v31  ;;  %1071 = vst [vmem:[#allocation3 + $0x28] sm:$0x1] %v1070_v26  ;;  %3946 = vrot.lane.b32.xlu0 %v7165_v60, %s6820_s18 }
 0x3a7   : > { %v2500_v19 = vpop.permute.xlu1 %2499 }
 0x3a8   : > { %v2561_v10 = vsel %vm7463_vm1, %v2500_v19, %v2560_v44  ;;  %v1997_v21 = vpop.permute.xlu0 %1996  ;;  %v4247_v19 = vld [vmem:[#allocation3 + $0x58] sm:$0x80] }
 0x3a9   : > { %2562 = vst [vmem:[#allocation3 + $0x58] sm:$0x8] %v2561_v10  ;;  %4437 = vrot.lane.b32.xlu1 %v7165_v60, %s6821_s19  ;;  %v1584_v10 = vld [vmem:[#allocation3 + $0x68] sm:$0x2] }
 0x3aa   : > { %2948 = vrot.lane.b32.xlu0 %v7133_v30, %s6818_s15 }
 0x3ab   : > { %v1260_v27 = vpop.permute.xlu1 %1259 }
 0x3ac   : > { %v1316_v15 = vsel %vm7369_vm15, %v1260_v27, %v1315_v49  ;;  %v1033_v52 = vpop.permute.xlu0 %1032 }
 0x3ad   : > { %1317 = vst [vmem:[#allocation3 + $0x28] sm:$0x2] %v1316_v15  ;;  %3439 = vrot.lane.b32.xlu1 %v7133_v30, %s6819_s16  ;;  %v1097_v18 = vsel %vm7419_vm9, %v1033_v52, %v1096_v17  ;;  %v3241_v17 = vld [vmem:[#allocation3 + $0x18] sm:$0x20]  ;;  %v2566_v52 = vld [vmem:[#allocation3 + $0x68] sm:$0x8] }
 0x3ae   : > { %1098 = vst [vmem:[#allocation3 + $0x70] sm:$0x1] %v1097_v18  ;;  %3930 = vrot.lane.b32.xlu0 %v7133_v30, %s6820_s18 }
 0x3af   : > { %v1751_v60 = vpop.permute.xlu1 %1750 }
 0x3b0   : > { %v1807_v39 = vsel %vm7362_vm14, %v1751_v60, %v1806_v29  ;;  %v8011_v2 = vpop.permute.xlu0 %2014 }
 0x3b1   : > { %1808 = vst [vmem:[#allocation3 + $0x28] sm:$0x4] %v1807_v39  ;;  %4421 = vrot.lane.b32.xlu1 %v7133_v30, %s6821_s19  ;;  %v1554_v30 = vld [vmem:[#allocation3 + $0x18] sm:$0x2] }
 0x3b2   : > { %1034 = vrot.lane.b32.xlu0 %v7078_v47, %s6818_s15 }
 0x3b3   : > { %v2242_v33 = vpop.permute.xlu1 %2241 }
 0x3b4   : > { %v2298_v23 = vsel %vm7382_vm7, %v2242_v33, %v2297_v25  ;;  %v1017_v53 = vpop.permute.xlu0 %1016  ;;  %v1809_v33 = vld [vmem:[#allocation3 + $0x30] sm:$0x4] }
 0x3b5   : > { %2299 = vst [vmem:[#allocation3 + $0x28] sm:$0x8] %v2298_v23  ;;  %1279 = vrot.lane.b32.xlu1 %v7078_v47, %s6816_s26  ;;  %v1073_v54 = vsel %vm7419_vm9, %v1017_v53, %v1072_v40  ;;  %v3732_v53 = vld [vmem:[#allocation3 + $0x18] sm:$0x40] }
 0x3b6   : > { %1074 = vst [vmem:[#allocation3 + $0x30] sm:$0x1] %v1073_v54  ;;  %v4561_v38 = vpop.f32.mrb[4].mxu0  ;;  %2016 = vrot.lane.b32.xlu0 %v7078_v47, %s6820_s18 }
 0x3b7   : > { %v1502_v43 = vpop.permute.xlu1 %1501  ;;  %v6470_v42 = vpop.f32.mrb[5].mxu0 }
 0x3b8   : > { %v2051_v59 = vld [vmem:[#allocation3 + $0x28] sm:$0x4]  ;;  %v1555_v14 = vsel %vm7432_vm0, %v1502_v43, %v1554_v30  ;;  %v4564_v28 = vpop.f32.mrb[6].mxu0  ;;  %v8027_v62 = vpop.permute.xlu0 %1998  ;;  %v4223_v30 = vld [vmem:[#allocation3 + $0x18] sm:$0x80] }
 0x3b9   : > { %v2052_v41 = vsel %vm7445_vm3, %v1997_v21, %v2051_v59  ;;  %1556 = vst [vmem:[#allocation3 + $0x18] sm:$0x2] %v1555_v14  ;;  %1770 = vrot.lane.b32.xlu1 %v7078_v47, %s6815_s17  ;;  %v4876_v13 = vpack.c.bf16 %v4564_v28, %v4561_v38  ;;  %v6471_v56 = vpop.f32.mrb[7].mxu0  ;;  %v1560_v43 = vld [vmem:[#allocation3 + $0x28] sm:$0x2] }
 0x3ba   : > { %2053 = vst [vmem:[#allocation3 + $0x28] sm:$0x4] %v2052_v41  ;;  %1018 = vrot.lane.b32.xlu0 %v7039_v32, %s6818_s15  ;;  %v3271_v41 = vld [vmem:[#allocation3 + $0x68] sm:$0x20] }
 0x3bb   : > { %4884 = vst.msk [vmem:[#allocation4] sm:$0xff] %vm8848_vm12, %v4876_v13  ;;  %v2484_v6 = vpop.permute.xlu1 %2483 }
 0x3bc   : > { %v2537_v7 = vsel %vm7463_vm1, %v2484_v6, %v2536_v57  ;;  %v3204_v46 = vpop.permute.xlu0 %3203  ;;  %v2542_v13 = vld [vmem:[#allocation3 + $0x28] sm:$0x8] }
 0x3bd   : > { %2538 = vst [vmem:[#allocation3 + $0x18] sm:$0x8] %v2537_v7  ;;  %2261 = vrot.lane.b32.xlu1 %v7078_v47, %s6817_s28  ;;  %v3266_v16 = vsel %vm7397_vm13, %v3204_v46, %v3265_v48  ;;  %v3762_v46 = vld [vmem:[#allocation3 + $0x68] sm:$0x40] }
 0x3be   : > { %3267 = vst [vmem:[#allocation3 + $0x58] sm:$0x20] %v3266_v16  ;;  %2000 = vrot.lane.b32.xlu0 %v7039_v32, %s6820_s18 }
 0x3bf   : > { %v1769_v9 = vpop.permute.xlu1 %1768 }
 0x3c0   : > { %v1834_v31 = vsel %vm7362_vm14, %v1769_v9, %v1833_v8  ;;  %v3695_v26 = vpop.permute.xlu0 %3694  ;;  %v1587_v8 = vld [vmem:[#allocation3 + $0x70] sm:$0x2] }
 0x3c1   : > { %1835 = vst [vmem:[#allocation3 + $0x70] sm:$0x4] %v1834_v31  ;;  %1263 = vrot.lane.b32.xlu1 %v7039_v32, %s6816_s26  ;;  %v3757_v44 = vsel %vm7518_vm4, %v3695_v26, %v3756_v36  ;;  %v4253_v31 = vld [vmem:[#allocation3 + $0x68] sm:$0x80]  ;;  %v2569_v26 = vld [vmem:[#allocation3 + $0x70] sm:$0x8] }
 0x3c2   : > { %3758 = vst [vmem:[#allocation3 + $0x58] sm:$0x40] %v3757_v44  ;;  %3211 = vrot.lane.b32.xlu0 %v7168_v61, %s6816_s26 }
 0x3c3   : > { %v1522_v21 = vpop.permute.xlu1 %1521 }
 0x3c4   : > { %v1585_v49 = vsel %vm7432_vm0, %v1522_v21, %v1584_v10  ;;  %v4186_v27 = vpop.permute.xlu0 %4185 }
 0x3c5   : > { %1586 = vst [vmem:[#allocation3 + $0x68] sm:$0x2] %v1585_v49  ;;  %1754 = vrot.lane.b32.xlu1 %v7039_v32, %s6815_s17  ;;  %v4248_v15 = vsel %vm7410_vm11, %v4186_v27, %v4247_v19  ;;  %v1563_v49 = vld [vmem:[#allocation3 + $0x30] sm:$0x2] }
 0x3c6   : > { %4249 = vst [vmem:[#allocation3 + $0x58] sm:$0x80] %v4248_v15  ;;  %3702 = vrot.lane.b32.xlu0 %v7168_v61, %s6815_s17  ;;  %v3019_v15 = vld [vmem:[#allocation3 + $0x58] sm:$0x10] }
 0x3c7   : > { %v2504_v29 = vpop.permute.xlu1 %2503 }
 0x3c8   : > { %v2078_v18 = vld [vmem:[#allocation3 + $0x70] sm:$0x4]  ;;  %v2567_v60 = vsel %vm7463_vm1, %v2504_v29, %v2566_v52  ;;  %v3188_v39 = vpop.permute.xlu0 %3187 }
 0x3c9   : > { %v2079_v25 = vsel %vm7445_vm3, %v8011_v2, %v2078_v18  ;;  %2568 = vst [vmem:[#allocation3 + $0x68] sm:$0x8] %v2567_v60  ;;  %2245 = vrot.lane.b32.xlu1 %v7039_v32, %s6817_s28  ;;  %v3242_v23 = vsel %vm7397_vm13, %v3188_v39, %v3241_v17  ;;  %v2545_v18 = vld [vmem:[#allocation3 + $0x30] sm:$0x8]  ;;  %v4001_v39 = vld [vmem:[#allocation3 + $0x58] sm:$0x40] }
 0x3ca   : > { %2080 = vst [vmem:[#allocation3 + $0x70] sm:$0x4] %v2079_v25  ;;  %3243 = vst [vmem:[#allocation3 + $0x18] sm:$0x20] %v3242_v23  ;;  %4193 = vrot.lane.b32.xlu0 %v7168_v61, %s6817_s28 }
 0x3cb   : > { %v1753_v40 = vpop.permute.xlu1 %1752 }
 0x3cc   : > { %v1810_v54 = vsel %vm7362_vm14, %v1753_v40, %v1809_v33  ;;  %v3679_v38 = vpop.permute.xlu0 %3678  ;;  %v3247_v33 = vld [vmem:[#allocation3 + $0x28] sm:$0x20] }
 0x3cd   : > { %1811 = vst [vmem:[#allocation3 + $0x30] sm:$0x4] %v1810_v54  ;;  %1525 = vrot.lane.b32.xlu1 %v7078_v47, %s6819_s16  ;;  %v3733_v2 = vsel %vm7518_vm4, %v3679_v38, %v3732_v53  ;;  %v3510_v53 = vld [vmem:[#allocation3 + $0x58] sm:$0x20] }
 0x3ce   : > { %3734 = vst [vmem:[#allocation3 + $0x18] sm:$0x40] %v3733_v2  ;;  %3195 = vrot.lane.b32.xlu0 %v7141_v45, %s6816_s26  ;;  %v3738_v2 = vld [vmem:[#allocation3 + $0x28] sm:$0x40] }
 0x3cf   : > { %v1506_v42 = vpop.permute.xlu1 %1505 }
 0x3d0   : > { %v1561_v59 = vsel %vm7432_vm0, %v1506_v42, %v1560_v43  ;;  %v4170_v14 = vpop.permute.xlu0 %4169  ;;  %v4492_v43 = vld [vmem:[#allocation3 + $0x58] sm:$0x80] }
 0x3d1   : > { %1562 = vst [vmem:[#allocation3 + $0x28] sm:$0x2] %v1561_v59  ;;  %2507 = vrot.lane.b32.xlu1 %v7078_v47, %s6821_s19  ;;  %v4224_v28 = vsel %vm7410_vm11, %v4170_v14, %v4223_v30 }
 0x3d2   : > { %4225 = vst [vmem:[#allocation3 + $0x18] sm:$0x80] %v4224_v28  ;;  %3686 = vrot.lane.b32.xlu0 %v7141_v45, %s6815_s17  ;;  %v4229_v28 = vld [vmem:[#allocation3 + $0x28] sm:$0x80] }
 0x3d3   : > { %v2488_v56 = vpop.permute.xlu1 %2487 }
 0x3d4   : > { %v2054_v48 = vld [vmem:[#allocation3 + $0x30] sm:$0x4]  ;;  %v2543_v57 = vsel %vm7463_vm1, %v2488_v56, %v2542_v13  ;;  %v3208_v6 = vpop.permute.xlu0 %3207  ;;  %v3486_v13 = vld [vmem:[#allocation3 + $0x18] sm:$0x20] }
 0x3d5   : > { %v2055_v7 = vsel %vm7445_vm3, %v8027_v62, %v2054_v48  ;;  %2544 = vst [vmem:[#allocation3 + $0x28] sm:$0x8] %v2543_v57  ;;  %1509 = vrot.lane.b32.xlu1 %v7039_v32, %s6819_s16  ;;  %v3272_v47 = vsel %vm7397_vm13, %v3208_v6, %v3271_v41 }
 0x3d6   : > { %2056 = vst [vmem:[#allocation3 + $0x30] sm:$0x4] %v2055_v7  ;;  %3273 = vst [vmem:[#allocation3 + $0x68] sm:$0x20] %v3272_v47  ;;  %4177 = vrot.lane.b32.xlu0 %v7141_v45, %s6817_s28 }
 0x3d7   : > { %v1524_v16 = vpop.permute.xlu1 %1523 }
 0x3d8   : > { %v1588_v36 = vsel %vm7432_vm0, %v1524_v16, %v1587_v8  ;;  %v3699_v9 = vpop.permute.xlu0 %3698  ;;  %v3274_v16 = vld [vmem:[#allocation3 + $0x70] sm:$0x20] }
 0x3d9   : > { %1589 = vst [vmem:[#allocation3 + $0x70] sm:$0x2] %v1588_v36  ;;  %2491 = vrot.lane.b32.xlu1 %v7039_v32, %s6821_s19  ;;  %v3763_v62 = vsel %vm7518_vm4, %v3699_v9, %v3762_v46  ;;  %v4468_v6 = vld [vmem:[#allocation3 + $0x18] sm:$0x80]  ;;  %v2995_v46 = vld [vmem:[#allocation3 + $0x18] sm:$0x10] }
 0x3da   : > { %3764 = vst [vmem:[#allocation3 + $0x68] sm:$0x40] %v3763_v62  ;;  %2966 = vrot.lane.b32.xlu0 %v7168_v61, %s6818_s15 }
 0x3db   : > { %v2506_v44 = vpop.permute.xlu1 %2505 }
 0x3dc   : > { %v2570_v19 = vsel %vm7463_vm1, %v2506_v44, %v2569_v26  ;;  %v4190_v10 = vpop.permute.xlu0 %4189  ;;  %v4256_v44 = vld [vmem:[#allocation3 + $0x70] sm:$0x80] }
 0x3dd   : > { %2571 = vst [vmem:[#allocation3 + $0x70] sm:$0x8] %v2570_v19  ;;  %3457 = vrot.lane.b32.xlu1 %v7168_v61, %s6819_s16  ;;  %v4254_v32 = vsel %vm7410_vm11, %v4190_v10, %v4253_v31  ;;  %v3977_v31 = vld [vmem:[#allocation3 + $0x18] sm:$0x40]  ;;  %v3765_v10 = vld [vmem:[#allocation3 + $0x70] sm:$0x40] }
 0x3de   : > { %4255 = vst [vmem:[#allocation3 + $0x68] sm:$0x80] %v4254_v32  ;;  %3948 = vrot.lane.b32.xlu0 %v7168_v61, %s6820_s18 }
 0x3df   : > { %v1508_v21 = vpop.permute.xlu1 %1507 }
 0x3e0   : > { %v1564_v27 = vsel %vm7432_vm0, %v1508_v21, %v1563_v49  ;;  %v2959_v17 = vpop.permute.xlu0 %2958 }
 0x3e1   : > { %1565 = vst [vmem:[#allocation3 + $0x30] sm:$0x2] %v1564_v27  ;;  %4439 = vrot.lane.b32.xlu1 %v7168_v61, %s6821_s19  ;;  %v3020_v52 = vsel %vm7454_vm6, %v2959_v17, %v3019_v15  ;;  %v3516_v17 = vld [vmem:[#allocation3 + $0x68] sm:$0x20] }
 0x3e2   : > { %3021 = vst [vmem:[#allocation3 + $0x58] sm:$0x10] %v3020_v52  ;;  %2950 = vrot.lane.b32.xlu0 %v7141_v45, %s6818_s15 }
 0x3e3   : > { %v2490_v29 = vpop.permute.xlu1 %2489 }
 0x3e4   : > { %v2546_v60 = vsel %vm7463_vm1, %v2490_v29, %v2545_v18  ;;  %v3941_v25 = vpop.permute.xlu0 %3940  ;;  %v3025_v29 = vld [vmem:[#allocation3 + $0x68] sm:$0x10] }
 0x3e5   : > { %2547 = vst [vmem:[#allocation3 + $0x30] sm:$0x8] %v2546_v60  ;;  %3441 = vrot.lane.b32.xlu1 %v7141_v45, %s6819_s16  ;;  %v4002_v61 = vsel %vm7537_vm10, %v3941_v25, %v4001_v39 }
 0x3e6   : > { %4003 = vst [vmem:[#allocation3 + $0x58] sm:$0x40] %v4002_v61  ;;  %3932 = vrot.lane.b32.xlu0 %v7141_v45, %s6820_s18  ;;  %v4498_v61 = vld [vmem:[#allocation3 + $0x68] sm:$0x80] }
 0x3e7   : > { %v3450_v23 = vpop.permute.xlu1 %3449 }
 0x3e8   : > { %v3511_v40 = vsel %vm8849_vm5, %v3450_v23, %v3510_v53  ;;  %v3192_v54 = vpop.permute.xlu0 %3191  ;;  %v4007_v23 = vld [vmem:[#allocation3 + $0x68] sm:$0x40] }
 0x3e9   : > { %3512 = vst [vmem:[#allocation3 + $0x58] sm:$0x20] %v3511_v40  ;;  %4423 = vrot.lane.b32.xlu1 %v7141_v45, %s6821_s19  ;;  %v3248_v38 = vsel %vm7397_vm13, %v3192_v54, %v3247_v33  ;;  %v3250_v40 = vld [vmem:[#allocation3 + $0x30] sm:$0x20] }
 0x3ea   : > { %3249 = vst [vmem:[#allocation3 + $0x28] sm:$0x20] %v3248_v38  ;;  %v3741_v38 = vld [vmem:[#allocation3 + $0x30] sm:$0x40] }
 0x3eb   : > { %v4432_v30 = vpop.permute.xlu1 %4431 }
 0x3ec   : > { %v4493_v42 = vsel %vm7493_vm2, %v4432_v30, %v4492_v43  ;;  %v3683_v59 = vpop.permute.xlu0 %3682 }
 0x3ed   : > { %4494 = vst [vmem:[#allocation3 + $0x58] sm:$0x80] %v4493_v42  ;;  %v3739_v14 = vsel %vm7518_vm4, %v3683_v59, %v3738_v2  ;;  %v4232_v42 = vld [vmem:[#allocation3 + $0x30] sm:$0x80] }
 0x3ee   : > { %3740 = vst [vmem:[#allocation3 + $0x28] sm:$0x40] %v3739_v14 }
 0x3ef   : > { %v3434_v41 = vpop.permute.xlu1 %3433 }
 0x3f0   : > { %v3487_v45 = vsel %vm8849_vm5, %v3434_v41, %v3486_v13  ;;  %v4174_v56 = vpop.permute.xlu0 %4173  ;;  %v3001_v41 = vld [vmem:[#allocation3 + $0x28] sm:$0x10] }
 0x3f1   : > { %3488 = vst [vmem:[#allocation3 + $0x18] sm:$0x20] %v3487_v45  ;;  %v4230_v48 = vsel %vm7410_vm11, %v4174_v56, %v4229_v28 }
 0x3f2   : > { %4231 = vst [vmem:[#allocation3 + $0x28] sm:$0x80] %v4230_v48 }
 0x3f3   : > { %v4416_v57 = vpop.permute.xlu1 %4415 }
 0x3f4   : > { %v4469_v7 = vsel %vm7493_vm2, %v4416_v57, %v4468_v6  ;;  %v4519_v47 = vld [vmem:[#allocation3 + $0x58] sm:$0xff]  ;;  %v2943_v8 = vpop.permute.xlu0 %2942  ;;  %v3492_v57 = vld [vmem:[#allocation3 + $0x28] sm:$0x20] }
 0x3f5   : > { %4470 = vst [vmem:[#allocation3 + $0x18] sm:$0x80] %v4469_v7  ;;  %6485 = vmatpush3.bf16.msra.mxu1 %v4519_v47  ;;  %v2996_v36 = vsel %vm7454_vm6, %v2943_v8, %v2995_v46  ;;  %v3983_v7 = vld [vmem:[#allocation3 + $0x28] sm:$0x40] }
 0x3f6   : > { %2997 = vst [vmem:[#allocation3 + $0x18] sm:$0x10] %v2996_v36  ;;  %6496 = vmatprep.subr.bf16.mxu1 %v6822_v11 }
 0x3f7   : > { %v3210_v9 = vpop.permute.xlu1 %3209 }
 0x3f8   : > { %v3275_v62 = vsel %vm7397_vm13, %v3210_v9, %v3274_v16  ;;  %v3925_v26 = vpop.permute.xlu0 %3924  ;;  %v3028_v9 = vld [vmem:[#allocation3 + $0x70] sm:$0x10] }
 0x3f9   : > { %3276 = vst [vmem:[#allocation3 + $0x70] sm:$0x20] %v3275_v62  ;;  %v3978_v19 = vsel %vm7537_vm10, %v3925_v26, %v3977_v31  ;;  %v4474_v16 = vld [vmem:[#allocation3 + $0x28] sm:$0x80] }
 0x3fa   : > { %3979 = vst [vmem:[#allocation3 + $0x18] sm:$0x40] %v3978_v19 }
 0x3fb   : > { %v4192_v32 = vpop.permute.xlu1 %4191 }
 0x3fc   : > { %v4257_v21 = vsel %vm7410_vm11, %v4192_v32, %v4256_v44  ;;  %v3701_v49 = vpop.permute.xlu0 %3700 }
 0x3fd   : > { %4258 = vst [vmem:[#allocation3 + $0x70] sm:$0x80] %v4257_v21  ;;  %v3766_v27 = vsel %vm7518_vm4, %v3701_v49, %v3765_v10 }
 0x3fe   : > { %3767 = vst [vmem:[#allocation3 + $0x70] sm:$0x40] %v3766_v27 }
 0x3ff   : > { %v3454_v15 = vpop.permute.xlu1 %3453 }
 0x400   : > { %v3517_v52 = vsel %vm8849_vm5, %v3454_v15, %v3516_v17  ;;  %v2963_v18 = vpop.permute.xlu0 %2962  ;;  %v3519_v26 = vld [vmem:[#allocation3 + $0x70] sm:$0x20] }
 0x401   : > { %3518 = vst [vmem:[#allocation3 + $0x68] sm:$0x20] %v3517_v52  ;;  %v3026_v60 = vsel %vm7454_vm6, %v2963_v18, %v3025_v29  ;;  %v4510_v39 = vld [vmem:[#allocation3 + $0x18] sm:$0xff]  ;;  %v3004_v52 = vld [vmem:[#allocation3 + $0x30] sm:$0x10] }
 0x402   : > { %3027 = vst [vmem:[#allocation3 + $0x68] sm:$0x10] %v3026_v60  ;;  %6487 = vmatmul.mubr.msk.bf16.vlgmr.msra.gmra.mrb[8].mxu1 %vm8848_vm12, %v4510_v39 }
 0x403   : > { %v4436_v25 = vpop.permute.xlu1 %4435  ;;  %6498 = vmatprep.mubr.msk.bf16.mxu1 %vm8846_vm8, %v6822_v11 }
 0x404   : > { %v4499_v33 = vsel %vm7493_vm2, %v4436_v25, %v4498_v61  ;;  %v3945_v53 = vpop.permute.xlu0 %3944  ;;  %v4501_v49 = vld [vmem:[#allocation3 + $0x70] sm:$0x80] }
 0x405   : > { %4500 = vst [vmem:[#allocation3 + $0x68] sm:$0x80] %v4499_v33  ;;  %v4008_v54 = vsel %vm7537_vm10, %v3945_v53, %v4007_v23  ;;  %v4010_v10 = vld [vmem:[#allocation3 + $0x70] sm:$0x40] }
 0x406   : > { %4009 = vst [vmem:[#allocation3 + $0x68] sm:$0x40] %v4008_v54 }
 0x407   : > { %v3194_v2 = vpop.permute.xlu1 %3193 }
 0x408   : > { %v3251_v30 = vsel %vm7397_vm13, %v3194_v2, %v3250_v40  ;;  %v3685_v43 = vpop.permute.xlu0 %3684  ;;  %v1099_v2 = vld [vmem:[#allocation3 + $0x78] sm:$0x1] }
 0x409   : > { %3252 = vst [vmem:[#allocation3 + $0x30] sm:$0x20] %v3251_v30  ;;  %v3742_v59 = vsel %vm7518_vm4, %v3685_v43, %v3741_v38  ;;  %v1345_v30 = vld [vmem:[#allocation3 + $0x78] sm:$0x2] }
 0x40a   : > { %3743 = vst [vmem:[#allocation3 + $0x30] sm:$0x40] %v3742_v59 }
 0x40b   : > { %v4176_v14 = vpop.permute.xlu1 %4175 }
 0x40c   : > { %v4233_v28 = vsel %vm7410_vm11, %v4176_v14, %v4232_v42  ;;  %v2947_v13 = vpop.permute.xlu0 %2946 }
 0x40d   : > { %4234 = vst [vmem:[#allocation3 + $0x30] sm:$0x80] %v4233_v28  ;;  %v3002_v45 = vsel %vm7454_vm6, %v2947_v13, %v3001_v41  ;;  %v4521_v56 = vld [vmem:[#allocation3 + $0x68] sm:$0xff]  ;;  %v1836_v28 = vld [vmem:[#allocation3 + $0x78] sm:$0x4] }
 0x40e   : > { %3003 = vst [vmem:[#allocation3 + $0x28] sm:$0x10] %v3002_v45  ;;  %6497 = vmatpush3.bf16.msra.mxu1 %v4521_v56 }
 0x40f   : > { %v3438_v48 = vpop.permute.xlu1 %3437  ;;  %6508 = vmatprep.subr.bf16.mxu1 %v6822_v11 }
 0x410   : > { %v3493_v6 = vsel %vm8849_vm5, %v3438_v48, %v3492_v57  ;;  %v3929_v47 = vpop.permute.xlu0 %3928  ;;  %v3495_v60 = vld [vmem:[#allocation3 + $0x30] sm:$0x20]  ;;  %v1075_v48 = vld [vmem:[#allocation3 + $0x38] sm:$0x1]  ;;  %v2327_v57 = vld [vmem:[#allocation3 + $0x78] sm:$0x8] }
 0x411   : > { %3494 = vst [vmem:[#allocation3 + $0x28] sm:$0x20] %v3493_v6  ;;  %v3984_v46 = vsel %vm7537_vm10, %v3929_v47, %v3983_v7  ;;  %v3986_v61 = vld [vmem:[#allocation3 + $0x30] sm:$0x40] }
 0x412   : > { %3985 = vst [vmem:[#allocation3 + $0x28] sm:$0x40] %v3984_v46 }
 0x413   : > { %v4420_v8 = vpop.permute.xlu1 %4419 }
 0x414   : > { %v4475_v36 = vsel %vm7493_vm2, %v4420_v8, %v4474_v16  ;;  %v2965_v62 = vpop.permute.xlu0 %2964  ;;  %v4477_v53 = vld [vmem:[#allocation3 + $0x30] sm:$0x80]  ;;  %v1321_v8 = vld [vmem:[#allocation3 + $0x38] sm:$0x2]  ;;  %v3277_v16 = vld [vmem:[#allocation3 + $0x78] sm:$0x20] }
 0x415   : > { %4476 = vst [vmem:[#allocation3 + $0x28] sm:$0x80] %v4475_v36  ;;  %v3029_v31 = vsel %vm7454_vm6, %v2965_v62, %v3028_v9 }
 0x416   : > { %3030 = vst [vmem:[#allocation3 + $0x70] sm:$0x10] %v3029_v31 }
 0x417   : > { %v3456_v44 = vpop.permute.xlu1 %3455 }
 0x418   : > { %v3520_v19 = vsel %vm8849_vm5, %v3456_v44, %v3519_v26  ;;  %v3947_v32 = vpop.permute.xlu0 %3946  ;;  %v1812_v44 = vld [vmem:[#allocation3 + $0x38] sm:$0x4] }
 0x419   : > { %3521 = vst [vmem:[#allocation3 + $0x70] sm:$0x20] %v3520_v19  ;;  %v4011_v21 = vsel %vm7537_vm10, %v3947_v32, %v4010_v10  ;;  %v3768_v19 = vld [vmem:[#allocation3 + $0x78] sm:$0x40] }
 0x41a   : > { %4012 = vst [vmem:[#allocation3 + $0x70] sm:$0x40] %v4011_v21 }
 0x41b   : > { %v4438_v27 = vpop.permute.xlu1 %4437 }
 0x41c   : > { %v4502_v15 = vsel %vm7493_vm2, %v4438_v27, %v4501_v49  ;;  %v4512_v17 = vld [vmem:[#allocation3 + $0x28] sm:$0xff]  ;;  %v2949_v29 = vpop.permute.xlu0 %2948  ;;  %v2303_v49 = vld [vmem:[#allocation3 + $0x38] sm:$0x8]  ;;  %v4259_v27 = vld [vmem:[#allocation3 + $0x78] sm:$0x80] }
 0x41d   : > { %4503 = vst [vmem:[#allocation3 + $0x70] sm:$0x80] %v4502_v15  ;;  %6499 = vmatmul.mubr.msk.bf16.vlgmr.msra.gmra.mrb[12].mxu1 %vm8848_vm12, %v4512_v17  ;;  %v3005_v18 = vsel %vm7454_vm6, %v2949_v29, %v3004_v52 }
 0x41e   : > { %3006 = vst [vmem:[#allocation3 + $0x30] sm:$0x10] %v3005_v18  ;;  %6510 = vmatprep.mubr.msk.bf16.mxu1 %vm8846_vm8, %v6822_v11  ;;  %vm8850_vm8 = vmmov %vm8848_vm12  ;;  %vm4951_vm12 = vcmask 1047559  }
 0x41f   : > { %v3440_v39 = vpop.permute.xlu1 %3439 }
 0x420   : > { %v3496_v25 = vsel %vm8849_vm5, %v3440_v39, %v3495_v60  ;;  %v3931_v33 = vpop.permute.xlu0 %3930 }
 0x421   : > { %3497 = vst [vmem:[#allocation3 + $0x30] sm:$0x20] %v3496_v25  ;;  %v3987_v23 = vsel %vm7537_vm10, %v3931_v33, %v3986_v61 }
 0x422   : > { %3988 = vst [vmem:[#allocation3 + $0x30] sm:$0x40] %v3987_v23  ;;  %v3744_v23 = vld [vmem:[#allocation3 + $0x38] sm:$0x40] }
 0x423   : > { %v4422_v40 = vpop.permute.xlu1 %4421 }
 0x424   : > { %v4478_v54 = vsel %vm7493_vm2, %v4422_v40, %v4477_v53  ;;  %v4522_v38 = vld [vmem:[#allocation3 + $0x70] sm:$0xff]  ;;  %v1035_v11 = vpop.permute.xlu0 %1034 }
 0x425   : > { %4479 = vst [vmem:[#allocation3 + $0x30] sm:$0x80] %v4478_v54  ;;  %6503 = vmatpush3.bf16.msra.mxu0 %v4522_v38  ;;  %v1100_v43 = vsel %vm7419_vm9, %v1035_v11, %v1099_v2 }
 0x426   : > { %1101 = vst [vmem:[#allocation3 + $0x78] sm:$0x1] %v1100_v43 }
 0x427   : > { %v1280_v42 = vpop.permute.xlu1 %1279 }
 0x428   : > { %v1346_v59 = vsel %vm7369_vm15, %v1280_v42, %v1345_v30  ;;  %v2017_v14 = vpop.permute.xlu0 %2016 }
 0x429   : > { %1347 = vst [vmem:[#allocation3 + $0x78] sm:$0x2] %v1346_v59 }
 0x42b   : > { %v1771_v41 = vpop.permute.xlu1 %1770 }
 0x42c   : > { %v1837_v13 = vsel %vm7362_vm14, %v1771_v41, %v1836_v28  ;;  %v4513_v45 = vld [vmem:[#allocation3 + $0x30] sm:$0xff]  ;;  %v1019_v56 = vpop.permute.xlu0 %1018 }
 0x42d   : > { %1838 = vst [vmem:[#allocation3 + $0x78] sm:$0x4] %v1837_v13  ;;  %6505 = vmatmul.mubr.msk.bf16.vlgmr.msra.gmra.mrb[16].mxu0 %vm8850_vm8, %v4513_v45  ;;  %v1076_v6 = vsel %vm7419_vm9, %v1019_v56, %v1075_v48  ;;  %vm8851_vm9 = vmmov %vm8850_vm8 }
 0x42e   : > { %1077 = vst [vmem:[#allocation3 + $0x38] sm:$0x1] %v1076_v6  ;;  %5901 = vmatprep.mubr.bf16.mxu0 %v8799_v0 }
 0x42f   : > { %v2262_v7 = vpop.permute.xlu1 %2261 }
 0x430   : > { %v2328_v47 = vsel %vm7382_vm7, %v2262_v7, %v2327_v57  ;;  %v2001_v46 = vpop.permute.xlu0 %2000  ;;  %v1590_v18 = vld [vmem:[#allocation3 + $0x78] sm:$0x2] }
 0x431   : > { %2329 = vst [vmem:[#allocation3 + $0x78] sm:$0x8] %v2328_v47 }
 0x433   : > { %v1264_v36 = vpop.permute.xlu1 %1263 }
 0x434   : > { %v2081_v9 = vld [vmem:[#allocation3 + $0x78] sm:$0x4]  ;;  %v1322_v62 = vsel %vm7369_vm15, %v1264_v36, %v1321_v8  ;;  %v3212_v31 = vpop.permute.xlu0 %3211  ;;  %vm8853_vm15 = vmmov %vm8850_vm8 }
 0x435   : > { %v2082_v5 = vsel %vm7445_vm3, %v2017_v14, %v2081_v9  ;;  %1323 = vst [vmem:[#allocation3 + $0x38] sm:$0x2] %v1322_v62  ;;  %v3278_v26 = vsel %vm7397_vm13, %v3212_v31, %v3277_v16 }
 0x436   : > { %2083 = vst [vmem:[#allocation3 + $0x78] sm:$0x4] %v2082_v5  ;;  %3279 = vst [vmem:[#allocation3 + $0x78] sm:$0x20] %v3278_v26 }
 0x437   : > { %v1755_v10 = vpop.permute.xlu1 %1754 }
 0x438   : > { %v1813_v32 = vsel %vm7362_vm14, %v1755_v10, %v1812_v44  ;;  %v3703_v21 = vpop.permute.xlu0 %3702  ;;  %v2572_v53 = vld [vmem:[#allocation3 + $0x78] sm:$0x8]  ;;  %vm8852_vm14 = vmmov %vm8850_vm8  ;;  %v3007_v44 = vld [vmem:[#allocation3 + $0x38] sm:$0x10] }
 0x439   : > { %1814 = vst [vmem:[#allocation3 + $0x38] sm:$0x4] %v1813_v32  ;;  %v3769_v35 = vsel %vm7518_vm4, %v3703_v21, %v3768_v19 }
 0x43a   : > { %3770 = vst [vmem:[#allocation3 + $0x78] sm:$0x40] %v3769_v35 }
 0x43b   : > { %v2246_v15 = vpop.permute.xlu1 %2245 }
 0x43c   : > { %v2304_v17 = vsel %vm7382_vm7, %v2246_v15, %v2303_v49  ;;  %v4194_v52 = vpop.permute.xlu0 %4193  ;;  %v1566_v11 = vld [vmem:[#allocation3 + $0x38] sm:$0x2]  ;;  %vm8854_vm7 = vmmov %vm8850_vm8  ;;  %vm4955_vm8 = vcmask 125952  }
 0x43d   : > { %2305 = vst [vmem:[#allocation3 + $0x38] sm:$0x8] %v2304_v17  ;;  %v4260_v29 = vsel %vm7410_vm11, %v4194_v52, %v4259_v27  ;;  %v3522_v48 = vld [vmem:[#allocation3 + $0x78] sm:$0x20] }
 0x43e   : > { %4261 = vst [vmem:[#allocation3 + $0x78] sm:$0x80] %v4260_v29 }
 0x43f   : > { %v1526_v60 = vpop.permute.xlu1 %1525 }
 0x440   : > { %v2057_v39 = vld [vmem:[#allocation3 + $0x38] sm:$0x4]  ;;  %v1591_v25 = vsel %vm7432_vm0, %v1526_v60, %v1590_v18  ;;  %v3196_v61 = vpop.permute.xlu0 %3195 }
 0x441   : > { %v2058_v33 = vsel %vm7445_vm3, %v2001_v46, %v2057_v39  ;;  %1592 = vst [vmem:[#allocation3 + $0x78] sm:$0x2] %v1591_v25  ;;  %v3254_v37 = vsel %vm7397_vm13, %v3196_v61, %v3253_v22  ;;  %v4013_v8 = vld [vmem:[#allocation3 + $0x78] sm:$0x40]  ;;  %vm8855_vm13 = vmmov %vm8854_vm7  ;;  %vm4936_vm3 = vcmask 1042434  }
 0x442   : > { %2059 = vst [vmem:[#allocation3 + $0x38] sm:$0x4] %v2058_v33  ;;  %3255 = vst [vmem:[#allocation3 + $0x38] sm:$0x20] %v3254_v37 }
 0x443   : > { %v2508_v40 = vpop.permute.xlu1 %2507 }
 0x444   : > { %v2573_v54 = vsel %vm7463_vm1, %v2508_v40, %v2572_v53  ;;  %v3687_v38 = vpop.permute.xlu0 %3686  ;;  %v2548_v59 = vld [vmem:[#allocation3 + $0x38] sm:$0x8]  ;;  %v6576_v53 = vld [vmem:[#allocation4] ss:$0 sps:$4 sm:$0x11]  }
 0x445   : > { %2574 = vst [vmem:[#allocation3 + $0x78] sm:$0x8] %v2573_v54  ;;  %v3745_v2 = vsel %vm7518_vm4, %v3687_v38, %v3744_v23  ;;  %v4504_v31 = vld [vmem:[#allocation3 + $0x78] sm:$0x80]  ;;  %vm4945_vm4 = vcmask 1045509  }
 0x446   : > { %3746 = vst [vmem:[#allocation3 + $0x38] sm:$0x40] %v3745_v2  ;;  %v6568_v23 = vld [vmem:[#allocation4 + $0x4] ss:$0 sps:$4 sm:$0x11]  }
 0x447   : > { %v1510_v30 = vpop.permute.xlu1 %1509  ;;  %v6584_v40 = vld [vmem:[#allocation4 + $0x4] ss:$0 sps:$4 sm:$0x22]   ;;  %v6592_v54 = vld [vmem:[#allocation4] ss:$0 sps:$4 sm:$0x22]  }
 0x448   : > { %v1567_v51 = vsel %vm7432_vm0, %v1510_v30, %v1566_v11  ;;  %v4178_v43 = vpop.permute.xlu0 %4177  ;;  %v6600_v38 = vld [vmem:[#allocation4 + $0x4] ss:$0 sps:$4 sm:$0x22]   ;;  %vm4933_vm0 = vcmask 1041409  }
 0x449   : > { %1568 = vst [vmem:[#allocation3 + $0x38] sm:$0x2] %v1567_v51  ;;  %v4236_v42 = vsel %vm7410_vm11, %v4178_v43, %v4235_v55  ;;  %v3498_v32 = vld [vmem:[#allocation3 + $0x38] sm:$0x20]  ;;  %v5466_v43 = vunpack.c.l.b16 %v6568_v23 }
 0x44a   : > { %4237 = vst [vmem:[#allocation3 + $0x38] sm:$0x80] %v4236_v42  ;;  %v4989_v42 = vunpack.c.l.b16 %v6576_v53 }
 0x44b   : > { %v2492_v14 = vpop.permute.xlu1 %2491 }
 0x44c   : > { %v2549_v28 = vsel %vm7463_vm1, %v2492_v14, %v2548_v59  ;;  %v2967_v41 = vpop.permute.xlu0 %2966  ;;  %v5525_v59 = vunpack.c.l.b16 %v6584_v40  ;;  %v5049_v14 = vunpack.c.l.b16 %v6592_v54  ;;  %vm4939_vm1 = vcmask 1043459  }
 0x44d   : > { %2550 = vst [vmem:[#allocation3 + $0x38] sm:$0x8] %v2549_v28  ;;  %v3032_v13 = vsel %vm7454_vm6, %v2967_v41, %v3031_v58  ;;  %v4605_v45 = vpop.f32.mrb[4].mxu1  ;;  %v3989_v49 = vld [vmem:[#allocation3 + $0x38] sm:$0x40]  ;;  %v5584_v28 = vunpack.c.l.b16 %v6600_v38 }
 0x44e   : > { %3033 = vst [vmem:[#allocation3 + $0x78] sm:$0x10] %v3032_v13  ;;  %v6476_v34 = vpop.f32.mrb[5].mxu1  ;;  %v4649_v56 = vpop.f32.mrb[8].mxu0 }
 0x44f   : > { %v3458_v57 = vpop.permute.xlu1 %3457  ;;  %v4608_v4 = vpop.f32.mrb[6].mxu1  ;;  %v6608_v58 = vld [vmem:[#allocation4] ss:$0 sps:$4 sm:$0x22]   ;;  %v8269_v34 = vrot.slane %v4989_v42, 1 }
 0x450   : > { %v3523_v6 = vsel %vm8849_vm5, %v3458_v57, %v3522_v48  ;;  %v4877_v7 = vpack.c.bf16 %v4608_v4, %v4605_v45  ;;  %v6482_v47 = vpop.f32.mrb[9].mxu0  ;;  %v6477_v50 = vpop.f32.mrb[7].mxu1  ;;  %v6616_v41 = vld [vmem:[#allocation4 + $0x4] ss:$0 sps:$4 sm:$0x44]   ;;  %v8267_v45 = vrot.slane %v5466_v43, 1 }
 0x451   : > { %3524 = vst [vmem:[#allocation3 + $0x78] sm:$0x20] %v3523_v6  ;;  %v4652_v46 = vpop.f32.mrb[10].mxu0  ;;  %v3949_v16 = vpop.permute.xlu0 %3948  ;;  %v4480_v17 = vld [vmem:[#allocation3 + $0x38] sm:$0x80]  ;;  %v8271_v48 = vrot.slane %v5525_v59, 2  ;;  %v5109_v6 = vunpack.c.l.b16 %v6608_v58  ;;  %v5643_v47 = vunpack.c.l.b16 %v6616_v41 }
 0x452   : > { %4885 = vst.msk [vmem:[#allocation4 + $0x8] sm:$0xff] %vm8851_vm9, %v4877_v7  ;;  %v4878_v36 = vpack.c.bf16 %v4652_v46, %v4649_v56  ;;  %v4014_v9 = vsel %vm7537_vm10, %v3949_v16, %v4013_v8  ;;  %v6483_v62 = vpop.f32.mrb[11].mxu0  ;;  %v6624_v13 = vld [vmem:[#allocation4] ss:$0 sps:$4 sm:$0x44]   ;;  %v8273_v57 = vrot.slane %v5049_v14, 2 }
 0x453   : > { %4015 = vst [vmem:[#allocation3 + $0x78] sm:$0x40] %v4014_v9  ;;  %v4440_v5 = vpop.permute.xlu1 %4439  ;;  %v6632_v56 = vld [vmem:[#allocation4 + $0x4] ss:$0 sps:$4 sm:$0x44]   ;;  %v8275_v4 = vrot.slane %v5584_v28, 3  ;;  %v5169_v8 = vunpack.c.l.b16 %v6624_v13 }
 0x454   : > { %4886 = vst.msk [vmem:[#allocation4 + $0x10] sm:$0xff] %vm8852_vm14, %v4878_v36  ;;  %v4505_v26 = vsel %vm7493_vm2, %v4440_v5, %v4504_v31  ;;  %v6640_v7 = vld [vmem:[#allocation4] ss:$0 sps:$4 sm:$0x44]   ;;  %v5702_v31 = vunpack.c.l.b16 %v6632_v56  ;;  %vm5015_vm9 = vcmask 257152   ;;  %vm5075_vm14 = vcmask 388352  }
 0x455   : > { %4506 = vst [vmem:[#allocation3 + $0x78] sm:$0x80] %v4505_v26  ;;  %v2951_v19 = vpop.permute.xlu0 %2950  ;;  %v6648_v50 = vld [vmem:[#allocation4 + $0x4] ss:$0 sps:$4 sm:$0x88]   ;;  %v8277_v26 = vrot.slane %v5109_v6, 3 }
 0x456   : > { %v3008_v10 = vsel %vm7454_vm6, %v2951_v19, %v3007_v44  ;;  %vm8856_vm6 = vmmov %vm8854_vm7  ;;  %v6656_v46 = vld [vmem:[#allocation4] ss:$0 sps:$4 sm:$0x88]   ;;  %v6664_v16 = vld [vmem:[#allocation4 + $0x4] ss:$0 sps:$4 sm:$0x88]   ;;  %v5229_v44 = vunpack.c.l.b16 %v6640_v7 }
 0x457   : > { %3009 = vst [vmem:[#allocation3 + $0x38] sm:$0x10] %v3008_v10  ;;  %v3442_v21 = vpop.permute.xlu1 %3441  ;;  %v6672_v36 = vld [vmem:[#allocation4] ss:$0 sps:$4 sm:$0x88]   ;;  %v8279_v10 = vrot.slane %v5643_v47, 4  ;;  %vm8857_vm11 = vmmov %vm8856_vm6 }
 0x458   : > { %v3499_v35 = vsel %vm8849_vm5, %v3442_v21, %v3498_v32  ;;  %v5761_v32 = vunpack.c.l.b16 %v6648_v50  ;;  %v5289_v21 = vunpack.c.l.b16 %v6656_v46  ;;  %vm4948_vm5 = vcmask 1046534  }
 0x459   : > { %3500 = vst [vmem:[#allocation3 + $0x38] sm:$0x20] %v3499_v35  ;;  %v3933_v27 = vpop.permute.xlu0 %3932  ;;  %v6585_v5 = vld [vmem:[#allocation4 + $0xc] ss:$0 sps:$4 sm:$0x22]  }
 0x45a   : > { %v3990_v15 = vsel %vm7537_vm10, %v3933_v27, %v3989_v49  ;;  %v6593_v19 = vld [vmem:[#allocation4 + $0x8] ss:$0 sps:$4 sm:$0x22]   ;;  %v6601_v35 = vld [vmem:[#allocation4 + $0xc] ss:$0 sps:$4 sm:$0x22]   ;;  %v5820_v27 = vunpack.c.l.b16 %v6664_v16  ;;  %vm8869_vm10 = vmmov %vm8856_vm6 }
 0x45b   : > { %3991 = vst [vmem:[#allocation3 + $0x38] sm:$0x40] %v3990_v15  ;;  %v4424_v52 = vpop.permute.xlu1 %4423  ;;  %v6570_v9 = vld [vmem:[#allocation4 + $0x14] ss:$0 sps:$4 sm:$0x11]   ;;  %v8281_v49 = vrot.slane %v5169_v8, 4  ;;  %v5349_v15 = vunpack.c.l.b16 %v6672_v36  ;;  %v5050_v38 = vunpack.c.l.b16 %v6593_v19 }
 0x45c   : > { %v4481_v29 = vsel %vm7493_vm2, %v4424_v52, %v4480_v17  ;;  %v4523_v1 = vld [vmem:[#allocation3 + $0x78] sm:$0xff]  ;;  %v6578_v62 = vld [vmem:[#allocation4 + $0x10] ss:$0 sps:$4 sm:$0x11]   ;;  %v5468_v17 = vunpack.c.l.b16 %v6570_v9  ;;  %vm4942_vm2 = vcmask 1044484  }
 0x45d   : > { %4482 = vst [vmem:[#allocation3 + $0x38] sm:$0x80] %v4481_v29  ;;  %6509 = vmatpush3.bf16.msra.mxu1 %v4523_v1  ;;  %v6602_v52 = vld [vmem:[#allocation4 + $0x14] ss:$0 sps:$4 sm:$0x22]   ;;  %v8283_v29 = vrot.slane %v5702_v31, 5 }
 0x45e   : > { %v4737_v22 = vpop.f32.mrb[12].mxu0  ;;  %v8293_v23 = vrot.slane %v5349_v15, 7  ;;  %v8295_v54 = vrot.slane %v5468_v17, 7  ;;  %v6626_v43 = vld [vmem:[#allocation4 + $0x10] ss:$0 sps:$4 sm:$0x44]  }
 0x45f   : > { %v6494_v18 = vpop.f32.mrb[13].mxu0  ;;  %v8302_v58 = vrot.slane %v5050_v38, 1  ;;  %v6569_v31 = vld [vmem:[#allocation4 + $0xc] ss:$0 sps:$4 sm:$0x11]  }
 0x460   : > { %v4740_v60 = vpop.f32.mrb[14].mxu0  ;;  %v8285_v18 = vrot.slane %v5229_v44, 5  ;;  %v6633_v19 = vld [vmem:[#allocation4 + $0xc] ss:$0 sps:$4 sm:$0x44]  }
 0x461   : > { %v4880_v3 = vpack.c.bf16 %v4740_v60, %v4737_v22  ;;  %v6495_v39 = vpop.f32.mrb[15].mxu0  ;;  %v6609_v22 = vld [vmem:[#allocation4 + $0x8] ss:$0 sps:$4 sm:$0x22]  }
 0x462   : > { %v6610_v39 = vld [vmem:[#allocation4 + $0x10] ss:$0 sps:$4 sm:$0x22]   ;;  %v5110_v14 = vunpack.c.l.b16 %v6609_v22 }
 0x463   : > { %4888 = vst.msk [vmem:[#allocation4 + $0x20] sm:$0xff] %vm8853_vm15, %v4880_v3  ;;  %v4991_v3 = vunpack.c.l.b16 %v6578_v62  ;;  %v5111_v41 = vunpack.c.l.b16 %v6610_v39  ;;  %v5171_v62 = vunpack.c.l.b16 %v6626_v43  ;;  %v6649_v43 = vld [vmem:[#allocation4 + $0xc] ss:$0 sps:$4 sm:$0x88]   ;;  %vm5135_vm15 = vcmask 519552  }
 0x464   : > { %v4514_v25 = vld [vmem:[#allocation3 + $0x38] sm:$0xff]  ;;  %v8308_v8 = vrot.slane %v5110_v14, 2 }
 0x465   : > { %6511 = vmatmul.mubr.msk.bf16.vlgmr.msra.gmra.mrb[16].mxu1 %vm8854_vm7, %v4514_v25  ;;  %v8287_v25 = vrot.slane %v5761_v32, 6  ;;  %v8310_v9 = vrot.slane %v5111_v41, 1  ;;  %v6577_v32 = vld [vmem:[#allocation4 + $0x8] ss:$0 sps:$4 sm:$0x11]   ;;  %v8318_v22 = vrot.slane %v5171_v62, 2 }
 0x466   : > { %5976 = vmatprep.mubr.bf16.mxu1 %v8799_v0  ;;  %v6650_v41 = vld [vmem:[#allocation4 + $0x14] ss:$0 sps:$4 sm:$0x88]   ;;  %vm5195_vm7 = vcmask 650752  }
 0x46a   : > { %v6572_v42 = vld [vmem:[#allocation4 + $0x24] ss:$0 sps:$4 sm:$0x11]   ;;  %v6580_v28 = vld [vmem:[#allocation4 + $0x20] ss:$0 sps:$4 sm:$0x11]  }
 0x46b   : > { %v6588_v7 = vld [vmem:[#allocation4 + $0x24] ss:$0 sps:$4 sm:$0x22]   ;;  %v6596_v47 = vld [vmem:[#allocation4 + $0x20] ss:$0 sps:$4 sm:$0x22]  }
 0x46c   : > { %v6604_v46 = vld [vmem:[#allocation4 + $0x24] ss:$0 sps:$4 sm:$0x22]   ;;  %v6612_v36 = vld [vmem:[#allocation4 + $0x20] ss:$0 sps:$4 sm:$0x22]   ;;  %v5529_v15 = vunpack.c.l.b16 %v6588_v7 }
 0x46d   : > { %v6644_v38 = vld [vmem:[#allocation4 + $0x20] ss:$0 sps:$4 sm:$0x44]   ;;  %v6668_v0 = vld [vmem:[#allocation4 + $0x24] ss:$0 sps:$4 sm:$0x88]  }
 0x46e   : > { %v6684_v62 = vld [vmem:[#allocation4 + $0x24] ss:$0 sps:$4 sm:$0x11]  }
 0x46f   : > { %v5413_v20 = vunpack.c.l.b16 %v6684_v62 }
 0x4d5   : > { %v4693_v12 = vpop.f32.mrb[8].mxu1 }
 0x4d6   : > { %v6488_v61 = vpop.f32.mrb[9].mxu1 }
 0x4d7   : > { %v4696_v33 = vpop.f32.mrb[10].mxu1 }
 0x4d8   : > { %v4879_v63 = vpack.c.bf16 %v4696_v33, %v4693_v12  ;;  %v6489_v37 = vpop.f32.mrb[11].mxu1  ;;  %v8289_v12 = vrot.slane %v5289_v21, 6  ;;  %v5526_v33 = vunpack.c.l.b16 %v6585_v5  ;;  %v5470_v5 = vunpack.c.l.b16 %v6572_v42 }
 0x4d9   : > { %v8291_v37 = vrot.slane %v5820_v27, 7  ;;  %v4993_v21 = vunpack.c.l.b16 %v6580_v28  ;;  %v6634_v27 = vld [vmem:[#allocation4 + $0x14] ss:$0 sps:$4 sm:$0x44]   ;;  %v4990_v42 = vunpack.c.l.b16 %v6577_v32 }
 0x4da   : > { %4887 = vst.msk [vmem:[#allocation4 + $0x18] sm:$0xff] %vm8855_vm13, %v4879_v63  ;;  %v6617_v63 = vld [vmem:[#allocation4 + $0xc] ss:$0 sps:$4 sm:$0x44]   ;;  %v8300_v59 = vrot.slane %v5526_v33, 1  ;;  %v8322_v39 = vrot.slane %v5470_v5, 5  ;;  %v5704_v28 = vunpack.c.l.b16 %v6634_v27 }
 0x4db   : > { %v5644_v6 = vunpack.c.l.b16 %v6617_v63  ;;  %v6642_v33 = vld [vmem:[#allocation4 + $0x10] ss:$0 sps:$4 sm:$0x44]   ;;  %v8324_v63 = vld [vmem:[#allocation4] ss:$0 sps:$4 sm:$0x11]   ;;  %v4998_v27 = vsel %vm4933_vm0, %v4990_v42, %v8269_v34  ;;  %v5763_v42 = vunpack.c.l.b16 %v6650_v41  ;;  %v5059_v41 = vsel %vm4933_vm0, %v8302_v58, %v8273_v57 }
 0x4dc   : > { %v6658_v32 = vld [vmem:[#allocation4 + $0x10] ss:$0 sps:$4 sm:$0x88]   ;;  %v6681_v58 = vld [vmem:[#allocation4 + $0xc] ss:$0 sps:$4 sm:$0x11]  }
 0x4dd   : > { %v8312_v44 = vrot.slane %v5644_v6, 3  ;;  %v6594_v6 = vld [vmem:[#allocation4 + $0x10] ss:$0 sps:$4 sm:$0x22]   ;;  %vm5255_vm13 = vcmask 781952  }
 0x4e1   : > { %v6579_v24 = vld [vmem:[#allocation4 + $0x18] ss:$0 sps:$4 sm:$0x11]  }
 0x4f0   : > { %v4781_v2 = vpop.f32.mrb[12].mxu1 }
 0x4f1   : > { %v6500_v55 = vpop.f32.mrb[13].mxu1 }
 0x4f2   : > { %v4784_v11 = vpop.f32.mrb[14].mxu1  ;;  %v5586_v55 = vunpack.c.l.b16 %v6602_v52  ;;  %v6636_v52 = vld [vmem:[#allocation4 + $0x24] ss:$0 sps:$4 sm:$0x44]  }
 0x4f3   : > { %v4881_v30 = vpack.c.bf16 %v4784_v11, %v4781_v2  ;;  %v6501_v51 = vpop.f32.mrb[15].mxu1  ;;  %v5585_v2 = vunpack.c.l.b16 %v6601_v35  ;;  %v6618_v11 = vld [vmem:[#allocation4 + $0x14] ss:$0 sps:$4 sm:$0x44]  }
 0x4f4   : > { %v8298_v51 = vrot.slane %v4991_v3, 7  ;;  %v8306_v56 = vrot.slane %v5586_v55, 1  ;;  %v5645_v50 = vunpack.c.l.b16 %v6618_v11  ;;  %v8320_v3 = vld [vmem:[#allocation4 + $0x4] ss:$0 sps:$4 sm:$0x11]   ;;  %v8328_v11 = vrot.slane %v5529_v15, 6 }
 0x4f5   : > { %4889 = vst.msk [vmem:[#allocation4 + $0x28] sm:$0xff] %vm8856_vm6, %v4881_v30  ;;  %v6625_v30 = vld [vmem:[#allocation4 + $0x8] ss:$0 sps:$4 sm:$0x44]   ;;  %v8304_v13 = vrot.slane %v5585_v2, 2  ;;  %v5467_v2 = vunpack.c.l.b16 %v6569_v31  ;;  %v8344_v15 = vrot.slane %v5704_v28, 3 }
 0x4f6   : > { %v5170_v16 = vunpack.c.l.b16 %v6625_v30  ;;  %v8314_v35 = vrot.slane %v5645_v50, 2  ;;  %v6586_v55 = vld [vmem:[#allocation4 + $0x14] ss:$0 sps:$4 sm:$0x22]   ;;  %v5703_v30 = vunpack.c.l.b16 %v6633_v19  ;;  %v5231_v19 = vunpack.c.l.b16 %v6642_v33 }
 0x4f7   : > { %v6652_v50 = vld [vmem:[#allocation4 + $0x24] ss:$0 sps:$4 sm:$0x88]   ;;  %v5475_v31 = vsel %vm4933_vm0, %v5467_v2, %v8267_v45  ;;  %v5535_v45 = vsel %vm4933_vm0, %v8300_v59, %v8271_v48  ;;  %v6665_v2 = vld [vmem:[#allocation4 + $0xc] ss:$0 sps:$4 sm:$0x88]  }
 0x4f8   : > { %v8316_v17 = vrot.slane %v5170_v16, 3  ;;  %v8339_v5 = vrot.slane %v5703_v30, 4  ;;  %v6666_v30 = vld [vmem:[#allocation4 + $0x14] ss:$0 sps:$4 sm:$0x88]   ;;  %vm5315_vm6 = vcmask 913152  }
 0x4f9   : > { %v6673_v28 = vld [vmem:[#allocation4 + $0x8] ss:$0 sps:$4 sm:$0x88]   ;;  %v6674_v48 = vld [vmem:[#allocation4 + $0x10] ss:$0 sps:$4 sm:$0x88]  }
 0x4fa   : > { %v6676_v59 = vld [vmem:[#allocation4 + $0x20] ss:$0 sps:$4 sm:$0x88]   ;;  %v5179_v57 = vsel %vm4933_vm0, %v8316_v17, %v8281_v49 }
 0x500   : > { %v4825_v1 = vpop.f32.mrb[16].mxu0 }
 0x501   : > { %v6506_v60 = vpop.f32.mrb[17].mxu0 }
 0x502   : > { %v4828_v61 = vpop.f32.mrb[18].mxu0  ;;  %v6641_v60 = vld [vmem:[#allocation4 + $0x8] ss:$0 sps:$4 sm:$0x44]  }
 0x503   : > { %v4882_v53 = vpack.c.bf16 %v4828_v61, %v4825_v1  ;;  %v6507_v40 = vpop.f32.mrb[19].mxu0  ;;  %v5053_v1 = vunpack.c.l.b16 %v6596_v47  ;;  %v5588_v61 = vunpack.c.l.b16 %v6604_v46  ;;  %v5706_v47 = vunpack.c.l.b16 %v6636_v52 }
 0x504   : > { %v5113_v40 = vunpack.c.l.b16 %v6612_v36  ;;  %v5230_v16 = vunpack.c.l.b16 %v6641_v60  ;;  %v6657_v36 = vld [vmem:[#allocation4 + $0x8] ss:$0 sps:$4 sm:$0x88]   ;;  %v5233_v52 = vunpack.c.l.b16 %v6644_v38  ;;  %v6660_v60 = vld [vmem:[#allocation4 + $0x20] ss:$0 sps:$4 sm:$0x88]   ;;  %v5765_v38 = vunpack.c.l.b16 %v6652_v50 }
 0x505   : > { %4890 = vst.msk [vmem:[#allocation4 + $0x30] sm:$0xff] %vm8857_vm11, %v4882_v53  ;;  %v8326_v53 = vrot.slane %v4993_v21, 5  ;;  %v8330_v14 = vrot.slane %v5053_v1, 6  ;;  %v8332_v7 = vrot.slane %v5588_v61, 7  ;;  %v5762_v1 = vunpack.c.l.b16 %v6649_v43 }
 0x506   : > { %v8334_v46 = vrot.slane %v5113_v40, 7  ;;  %v8348_v61 = vsel %vm4936_vm3, %v8295_v54, %v5475_v31  ;;  %v5527_v40 = vunpack.c.l.b16 %v6586_v55  ;;  %v8353_v33 = vrot.slane %v5706_v47, 1  ;;  %v8369_v50 = vld [vmem:[#allocation4 + $0x24] ss:$0 sps:$4 sm:$0x44]  }
 0x507   : > { %v8355_v34 = vrot.slane %v5230_v16, 4  ;;  %v5290_v43 = vunpack.c.l.b16 %v6657_v36  ;;  %v8359_v54 = vsel %vm4936_vm3, %v8298_v51, %v4998_v27  ;;  %v5051_v55 = vunpack.c.l.b16 %v6594_v6 }
 0x508   : > { %8858 = vst [vmem:[#allocation11_spill] sm:$0xff] %v8353_v33  ;;  %v8361_v31 = vrot.slane %v5231_v19, 3  ;;  %v5291_v21 = vunpack.c.l.b16 %v6658_v32  ;;  %v8364_v47 = vsel %vm4936_vm3, %v5527_v40, %v5535_v45  ;;  %v8371_v16 = vrot.slane %v5233_v52, 1  ;;  %v6689_v32 = vld [vmem:[#allocation4 + $0x8] ss:$0 sps:$4 sm:$0x11]  }
 0x509   : > { %v5770_v36 = vrot.slane %v5762_v1, 5  ;;  %v5594_v51 = vsel %vm4933_vm0, %v8304_v13, %v8275_v4  ;;  %v5119_v6 = vsel %vm4933_vm0, %v8308_v8, %v8277_v26  ;;  %v5653_v19 = vsel %vm4933_vm0, %v8312_v44, %v8279_v10  ;;  %v6682_v13 = vld [vmem:[#allocation4 + $0x14] ss:$0 sps:$4 sm:$0x11]  }
 0x50a   : > { %8859 = vst [vmem:[#allocation12_spill] sm:$0xff] %v8371_v16  ;;  %v8385_v27 = vrot.slane %v5763_v42, 4  ;;  %v8387_v52 = vrot.slane %v5765_v38, 2  ;;  %v5293_v1 = vunpack.c.l.b16 %v6660_v60  ;;  %v5298_v4 = vrot.slane %v5290_v43, 5 }
 0x50b   : > { %v8389_v40 = vrot.slane %v5291_v21, 4  ;;  %v5821_v26 = vunpack.c.l.b16 %v6665_v2  ;;  %v5822_v8 = vunpack.c.l.b16 %v6666_v30  ;;  %v5824_v45 = vunpack.c.l.b16 %v6668_v0  ;;  %v6571_v10 = vld [vmem:[#allocation4 + $0x1c] ss:$0 sps:$4 sm:$0x11]  }
 0x50c   : > { %8860 = vst [vmem:[#allocation13_spill] sm:$0xff] %v8387_v52  ;;  %v8392_v44 = vsel %vm4936_vm3, %v5051_v55, %v5059_v41  ;;  %v8396_v49 = vsel %vm4936_vm3, %v8306_v56, %v5594_v51  ;;  %v8400_v17 = vsel %vm4936_vm3, %v8310_v9, %v5119_v6  ;;  %v5350_v60 = vunpack.c.l.b16 %v6673_v28  ;;  %v6690_v42 = vld [vmem:[#allocation4 + $0x10] ss:$0 sps:$4 sm:$0x11]  }
 0x50d   : > { %v8402_v21 = vld [vmem:[#allocation4 + $0x20] ss:$0 sps:$4 sm:$0x44]   ;;  %v5351_v2 = vunpack.c.l.b16 %v6674_v48  ;;  %v5353_v30 = vunpack.c.l.b16 %v6676_v59  ;;  %v5410_v0 = vunpack.c.l.b16 %v6681_v58  ;;  %v4925_v43 = vunpack.c.l.b16 %v6689_v32  ;;  %v6587_v55 = vld [vmem:[#allocation4 + $0x1c] ss:$0 sps:$4 sm:$0x22]  }
 0x50e   : > { %v6692_v38 = vld [vmem:[#allocation4 + $0x20] ss:$0 sps:$4 sm:$0x11]   ;;  %v8407_v56 = vsel %vm4936_vm3, %v8314_v35, %v5653_v19  ;;  %v8411_v9 = vsel %vm4936_vm3, %v8318_v22, %v5179_v57  ;;  %v5411_v28 = vunpack.c.l.b16 %v6682_v13  ;;  %v8413_v51 = vrot.slane %v5293_v1, 2 }
 0x50f   : > { %v5829_v48 = vrot.slane %v5821_v26, 6  ;;  %v5831_v59 = vrot.slane %v5822_v8, 5  ;;  %v8415_v6 = vrot.slane %v5824_v45, 3  ;;  %v5469_v58 = vunpack.c.l.b16 %v6571_v10  ;;  %v6595_v57 = vld [vmem:[#allocation4 + $0x18] ss:$0 sps:$4 sm:$0x22]  }
 0x510   : > { %8861 = vst [vmem:[#allocation14_spill] sm:$0xff] %v8413_v51  ;;  %v5358_v32 = vrot.slane %v5350_v60, 6  ;;  %v4926_v41 = vunpack.c.l.b16 %v6690_v42  ;;  %v5360_v52 = vrot.slane %v5351_v2, 5  ;;  %v8417_v16 = vrot.slane %v5353_v30, 3 }
 0x511   : > { %v5417_v35 = vrot.slane %v5410_v0, 7  ;;  %v4932_v19 = vrot.slane %v4925_v43, 7  ;;  %v4992_v33 = vunpack.c.l.b16 %v6579_v24  ;;  %v5528_v22 = vunpack.c.l.b16 %v6587_v55  ;;  %v6619_v51 = vld [vmem:[#allocation4 + $0x1c] ss:$0 sps:$4 sm:$0x44]  }
 0x512   : > { %v5419_v13 = vrot.slane %v5411_v28, 6  ;;  %v4928_v1 = vunpack.c.l.b16 %v6692_v38  ;;  %v6627_v26 = vld [vmem:[#allocation4 + $0x18] ss:$0 sps:$4 sm:$0x44]   ;;  %v5173_v8 = vunpack.c.l.b16 %v8402_v21  ;;  %v5712_v45 = vsel %vm4933_vm0, %v8339_v5, %v8283_v29 }
 0x513   : > { %v5239_v62 = vsel %vm4933_vm0, %v8355_v34, %v8285_v18  ;;  %v5771_v10 = vsel %vm4933_vm0, %v5770_v36, %v8287_v25  ;;  %v5478_v24 = vrot.slane %v5469_v58, 6  ;;  %v6635_v60 = vld [vmem:[#allocation4 + $0x1c] ss:$0 sps:$4 sm:$0x44]   ;;  %v5299_v42 = vsel %vm4933_vm0, %v5298_v4, %v8289_v12 }
 0x514   : > { %v8430_v2 = vrot.slane %v5413_v20, 4  ;;  %v4935_v30 = vrot.slane %v4926_v41, 6  ;;  %v6603_v0 = vld [vmem:[#allocation4 + $0x1c] ss:$0 sps:$4 sm:$0x22]   ;;  %v5830_v29 = vsel %vm4933_vm0, %v5829_v48, %v8291_v37  ;;  %v5359_v18 = vsel %vm4933_vm0, %v5358_v32, %v8293_v23 }
 0x515   : > { %v6611_v38 = vld [vmem:[#allocation4 + $0x18] ss:$0 sps:$4 sm:$0x22]   ;;  %v8862_v5 = vunpack.c.l.b16 %v8320_v3  ;;  %v8863_v34 = vunpack.c.l.b16 %v8324_v63  ;;  %v5001_v12 = vrot.slane %v4992_v33, 6  ;;  %v5537_v20 = vrot.slane %v5528_v22, 7 }
 0x516   : > { %v5052_v4 = vunpack.c.l.b16 %v6595_v57  ;;  %v6643_v43 = vld [vmem:[#allocation4 + $0x18] ss:$0 sps:$4 sm:$0x44]   ;;  %v8442_v55 = vrot.slane %v4928_v1, 4  ;;  %v5646_v41 = vunpack.c.l.b16 %v6619_v51  ;;  %v5172_v28 = vunpack.c.l.b16 %v6627_v26 }
 0x517   : > { %v5418_v25 = vsel %vm4933_vm0, %v5417_v35, %v8862_v5  ;;  %v4934_v36 = vsel %vm4933_vm0, %v4932_v19, %v8863_v34  ;;  %v5714_v37 = vsel %vm4936_vm3, %v8344_v15, %v5712_v45  ;;  %v8448_v23 = vsel %vm4936_vm3, %v8361_v31, %v5239_v62  ;;  %v6651_v3 = vld [vmem:[#allocation4 + $0x1c] ss:$0 sps:$4 sm:$0x88]   ;;  %v6659_v48 = vld [vmem:[#allocation4 + $0x18] ss:$0 sps:$4 sm:$0x88]  }
 0x518   : > { %v5705_v63 = vunpack.c.l.b16 %v6635_v60  ;;  %v5773_v33 = vsel %vm4936_vm3, %v8385_v27, %v5771_v10  ;;  %v8454_v58 = vsel %vm4936_vm3, %v8389_v40, %v5299_v42  ;;  %v6667_v32 = vld [vmem:[#allocation4 + $0x1c] ss:$0 sps:$4 sm:$0x88]   ;;  %v8457_v51 = vsel %vm4936_vm3, %v5831_v59, %v5830_v29  ;;  %v6675_v35 = vld [vmem:[#allocation4 + $0x18] ss:$0 sps:$4 sm:$0x88]  }
 0x519   : > { %v5479_v15 = vsel %vm4939_vm1, %v5478_v24, %v8348_v61  ;;  %v8462_v31 = vsel %vm4936_vm3, %v5360_v52, %v5359_v18  ;;  %v6683_v19 = vld [vmem:[#allocation4 + $0x1c] ss:$0 sps:$4 sm:$0x11]   ;;  %v8465_v22 = vsel %vm4936_vm3, %v5419_v13, %v5418_v25  ;;  %v6691_v27 = vld [vmem:[#allocation4 + $0x18] ss:$0 sps:$4 sm:$0x11]   ;;  %v8468_v57 = vsel %vm4936_vm3, %v4935_v30, %v4934_v36 }
 0x51a   : > { %v5002_v40 = vsel %vm4939_vm1, %v5001_v12, %v8359_v54  ;;  %v5061_v59 = vrot.slane %v5052_v4, 7  ;;  %v5587_v1 = vunpack.c.l.b16 %v6603_v0  ;;  %v5112_v26 = vunpack.c.l.b16 %v6611_v38  ;;  %v6573_v13 = vld [vmem:[#allocation4 + $0x2c] ss:$0 sps:$4 sm:$0x11]  }
 0x51b   : > { %v5656_v45 = vrot.slane %v5646_v41, 1  ;;  %v5182_v62 = vrot.slane %v5172_v28, 1  ;;  %v5232_v61 = vunpack.c.l.b16 %v6643_v43  ;;  %v5764_v10 = vunpack.c.l.b16 %v6651_v3  ;;  %v6581_v30 = vld [vmem:[#allocation4 + $0x28] ss:$0 sps:$4 sm:$0x11]  }
 0x51c   : > { %v5715_v52 = vrot.slane %v5705_v63, 2  ;;  %v5292_v24 = vunpack.c.l.b16 %v6659_v48  ;;  %v5823_v60 = vunpack.c.l.b16 %v6667_v32  ;;  %v5352_v42 = vunpack.c.l.b16 %v6675_v35  ;;  %v6589_v18 = vld [vmem:[#allocation4 + $0x2c] ss:$0 sps:$4 sm:$0x22]  }
 0x51d   : > { %v8474_v29 = vsel %vm4942_vm2, %v8322_v39, %v5479_v15  ;;  %v8478_v54 = vsel %vm4942_vm2, %v8326_v53, %v5002_v40  ;;  %v5412_v0 = vunpack.c.l.b16 %v6683_v19  ;;  %v4927_v38 = vunpack.c.l.b16 %v6691_v27  ;;  %v6597_v25 = vld [vmem:[#allocation4 + $0x28] ss:$0 sps:$4 sm:$0x22]   ;;  %v6605_v32 = vld [vmem:[#allocation4 + $0x2c] ss:$0 sps:$4 sm:$0x22]  }
 0x51e   : > { %v5538_v5 = vsel %vm4939_vm1, %v5537_v20, %v8364_v47  ;;  %v5062_v34 = vsel %vm4939_vm1, %v5061_v59, %v8392_v44  ;;  %v5597_v36 = vsel %vm4939_vm1, %v5587_v1, %v8396_v49  ;;  %v5122_v39 = vsel %vm4939_vm1, %v5112_v26, %v8400_v17  ;;  %v6613_v35 = vld [vmem:[#allocation4 + $0x28] ss:$0 sps:$4 sm:$0x22]   ;;  %v6621_v19 = vld [vmem:[#allocation4 + $0x2c] ss:$0 sps:$4 sm:$0x44]  }
 0x51f   : > { %v5657_v53 = vsel %vm4939_vm1, %v5656_v45, %v8407_v56  ;;  %v5183_v12 = vsel %vm4939_vm1, %v5182_v62, %v8411_v9  ;;  %v5242_v4 = vrot.slane %v5232_v61, 2  ;;  %v5774_v43 = vrot.slane %v5764_v10, 3  ;;  %v6629_v27 = vld [vmem:[#allocation4 + $0x28] ss:$0 sps:$4 sm:$0x44]   ;;  %v8865_v1 = vld [vmem:[#allocation11_spill] sm:$0xff] }
 0x520   : > { %v5716_v47 = vsel %vm4939_vm1, %v5715_v52, %v5714_v37  ;;  %v5302_v20 = vrot.slane %v5292_v24, 3  ;;  %v5833_v41 = vrot.slane %v5823_v60, 4  ;;  %v5362_v44 = vrot.slane %v5352_v42, 4  ;;  %v6653_v26 = vld [vmem:[#allocation4 + $0x2c] ss:$0 sps:$4 sm:$0x88]  }
 0x521   : > { %v5471_v28 = vunpack.c.l.b16 %v6573_v13  ;;  %v4994_v3 = vunpack.c.l.b16 %v6581_v30  ;;  %v5421_v49 = vrot.slane %v5412_v0, 5  ;;  %v4938_v48 = vrot.slane %v4927_v38, 5  ;;  %v6661_v45 = vld [vmem:[#allocation4 + $0x28] ss:$0 sps:$4 sm:$0x88]   ;;  %v8866_v30 = vld [vmem:[#allocation12_spill] sm:$0xff] }
 0x522   : > { %v5530_v63 = vunpack.c.l.b16 %v6589_v18  ;;  %v5540_v17 = vsel %vm4942_vm2, %v8328_v11, %v5538_v5  ;;  %v5054_v56 = vunpack.c.l.b16 %v6597_v25  ;;  %v8497_v9 = vsel %vm4942_vm2, %v8332_v7, %v5597_v36  ;;  %v6574_v62 = vld [vmem:[#allocation4 + $0x34] ss:$0 sps:$4 sm:$0x11]   ;;  %v6582_v61 = vld [vmem:[#allocation4 + $0x30] ss:$0 sps:$4 sm:$0x11]  }
 0x523   : > { %v5064_v37 = vsel %vm4942_vm2, %v8330_v14, %v5062_v34  ;;  %v8503_v15 = vsel %vm4942_vm2, %v8334_v46, %v5122_v39  ;;  %v5243_v40 = vsel %vm4939_vm1, %v5242_v4, %v8448_v23  ;;  %v5775_v11 = vsel %vm4939_vm1, %v5774_v43, %v5773_v33  ;;  %v6669_v52 = vld [vmem:[#allocation4 + $0x2c] ss:$0 sps:$4 sm:$0x88]   ;;  %v6590_v60 = vld [vmem:[#allocation4 + $0x34] ss:$0 sps:$4 sm:$0x22]  }
 0x524   : > { %v8864_v59 = vunpack.c.l.b16 %v8369_v50  ;;  %v8516_v14 = vsel %vm4942_vm2, %v5173_v8, %v5183_v12  ;;  %v8520_v46 = vsel %vm4942_vm2, %v8865_v1, %v5716_v47  ;;  %v5303_v23 = vsel %vm4939_vm1, %v5302_v20, %v8454_v58  ;;  %v8867_v58 = vld [vmem:[#allocation13_spill] sm:$0xff]  ;;  %v6598_v5 = vld [vmem:[#allocation4 + $0x30] ss:$0 sps:$4 sm:$0x22]  }
 0x525   : > { %v5482_v50 = vrot.slane %v5471_v28, 4  ;;  %v5005_v10 = vrot.slane %v4994_v3, 4  ;;  %v5422_v21 = vsel %vm4939_vm1, %v5421_v49, %v8465_v22  ;;  %v4940_v8 = vsel %vm4939_vm1, %v4938_v48, %v8468_v57  ;;  %v8868_v34 = vld [vmem:[#allocation14_spill] sm:$0xff]  ;;  %v6637_v28 = vld [vmem:[#allocation4 + $0x2c] ss:$0 sps:$4 sm:$0x44]  }
 0x526   : > { %v8511_v7 = vsel %vm4942_vm2, %v8864_v59, %v5657_v53  ;;  %v5541_v42 = vrot.slane %v5530_v63, 5  ;;  %v5065_v13 = vrot.slane %v5054_v56, 5  ;;  %v8530_v0 = vsel %vm4942_vm2, %v8866_v30, %v5243_v40  ;;  %v6606_v12 = vld [vmem:[#allocation4 + $0x34] ss:$0 sps:$4 sm:$0x22]  }
 0x527   : > { %v8534_v38 = vsel %vm4942_vm2, %v8867_v58, %v5775_v11  ;;  %v5589_v25 = vunpack.c.l.b16 %v6605_v32  ;;  %v8538_v22 = vsel %vm4942_vm2, %v8868_v34, %v5303_v23  ;;  %v8542_v57 = vsel %vm4939_vm1, %v5833_v41, %v8457_v51  ;;  %v6645_v49 = vld [vmem:[#allocation4 + $0x28] ss:$0 sps:$4 sm:$0x44]   ;;  %v6630_v32 = vld [vmem:[#allocation4 + $0x30] ss:$0 sps:$4 sm:$0x44]  }
 0x528   : > { %v8546_v36 = vsel %vm4939_vm1, %v5362_v44, %v8462_v31  ;;  %v5114_v4 = vunpack.c.l.b16 %v6613_v35  ;;  %v8550_v43 = vsel %vm4942_vm2, %v8430_v2, %v5422_v21  ;;  %v8554_v47 = vsel %vm4942_vm2, %v8442_v55, %v4940_v8  ;;  %v6614_v31 = vld [vmem:[#allocation4 + $0x30] ss:$0 sps:$4 sm:$0x22]   ;;  %v6622_v55 = vld [vmem:[#allocation4 + $0x34] ss:$0 sps:$4 sm:$0x44]  }
 0x529   : > { %v5483_v51 = vsel %vm4945_vm4, %v5482_v50, %v8474_v29  ;;  %v8560_v20 = vsel %vm4945_vm4, %v5005_v10, %v8478_v54  ;;  %v5648_v41 = vunpack.c.l.b16 %v6621_v19  ;;  %v5174_v44 = vunpack.c.l.b16 %v6629_v27  ;;  %v6638_v59 = vld [vmem:[#allocation4 + $0x34] ss:$0 sps:$4 sm:$0x44]   ;;  %v6646_v34 = vld [vmem:[#allocation4 + $0x30] ss:$0 sps:$4 sm:$0x44]  }
 0x52a   : > { %v5542_v2 = vsel %vm4945_vm4, %v5541_v42, %v5540_v17  ;;  %v8565_v3 = vsel %vm4945_vm4, %v5065_v13, %v5064_v37  ;;  %v5766_v48 = vunpack.c.l.b16 %v6653_v26  ;;  %v5294_v63 = vunpack.c.l.b16 %v6661_v45  ;;  %v8573_v13 = vld [vmem:[#allocation4 + $0x2c] ss:$0 sps:$4 sm:$0x11]  }
 0x52b   : > { %v5472_v29 = vunpack.c.l.b16 %v6574_v62  ;;  %v4995_v56 = vunpack.c.l.b16 %v6582_v61  ;;  %v5600_v54 = vrot.slane %v5589_v25, 6  ;;  %v5825_v35 = vunpack.c.l.b16 %v6669_v52  ;;  %v8571_v52 = vld [vmem:[#allocation4 + $0x28] ss:$0 sps:$4 sm:$0x88]  }
 0x52c   : > { %v5531_v19 = vunpack.c.l.b16 %v6590_v60  ;;  %v5055_v27 = vunpack.c.l.b16 %v6598_v5  ;;  %v5590_v40 = vunpack.c.l.b16 %v6606_v12  ;;  %v5125_v11 = vrot.slane %v5114_v4, 6 }
 0x52d   : > { %v5115_v1 = vunpack.c.l.b16 %v6614_v31  ;;  %v5659_v17 = vrot.slane %v5648_v41, 7  ;;  %v5185_v23 = vrot.slane %v5174_v44, 7  ;;  %v5707_v37 = vunpack.c.l.b16 %v6637_v28 }
 0x52e   : > { %v5234_v50 = vunpack.c.l.b16 %v6645_v49  ;;  %v5778_v26 = vrot.slane %v5766_v48, 1  ;;  %v8567_v45 = vrot.slane %v5294_v63, 1  ;;  %v5484_v62 = vrot.slane %v5472_v29, 3 }
 0x52f   : > { %v5007_v61 = vrot.slane %v4995_v56, 3  ;;  %v5175_v10 = vunpack.c.l.b16 %v6630_v32  ;;  %v8569_v21 = vrot.slane %v5825_v35, 2  ;;  %v5543_v8 = vrot.slane %v5531_v19, 4 }
 0x530   : > { %v5602_v60 = vrot.slane %v5590_v40, 5  ;;  %v5708_v42 = vunpack.c.l.b16 %v6638_v59  ;;  %v5601_v58 = vsel %vm4945_vm4, %v5600_v54, %v8497_v9  ;;  %v5127_v5 = vrot.slane %v5115_v1, 5  ;;  %v6686_v54 = vld [vmem:[#allocation4 + $0x34] ss:$0 sps:$4 sm:$0x11]  }
 0x531   : > { %v8581_v25 = vsel %vm4945_vm4, %v5707_v37, %v8520_v46  ;;  %v8587_v4 = vsel %vm4945_vm4, %v5185_v23, %v8516_v14  ;;  %v8591_v9 = vsel %vm4945_vm4, %v5234_v50, %v8530_v0  ;;  %v8593_v41 = vrot.slane %v5175_v10, 6  ;;  %v6693_v40 = vld [vmem:[#allocation4 + $0x28] ss:$0 sps:$4 sm:$0x11]  }
 0x532   : > { %v8597_v46 = vsel %vm4945_vm4, %v5778_v26, %v8534_v38  ;;  %v5354_v44 = vunpack.c.l.b16 %v8571_v52  ;;  %v8601_v14 = vrot.slane %v5708_v42, 7  ;;  %v5414_v49 = vunpack.c.l.b16 %v8573_v13  ;;  %v8607_v38 = vld [vmem:[#allocation4 + $0x34] ss:$0 sps:$4 sm:$0x88]  }
 0x533   : > { %v5008_v48 = vsel %vm4948_vm5, %v5007_v61, %v8560_v20  ;;  %v5544_v29 = vsel %vm4948_vm5, %v5543_v8, %v5542_v2  ;;  %v5603_v19 = vsel %vm4948_vm5, %v5602_v60, %v5601_v58  ;;  %v6694_v26 = vld [vmem:[#allocation4 + $0x30] ss:$0 sps:$4 sm:$0x11]   ;;  %vm5375_vm11 = vcmask 1044352  }
 0x534   : > { %vm8870_vm0 = vcmask 1043456   ;;  %vm8872_vm1 = vcmask 64512  }
 0x535   : > { %vm8871_vm3 = vmmov %vm8870_vm0 }
 0x538   : > { %v4869_v33 = vpop.f32.mrb[16].mxu1 }
 0x539   : > { %v6512_v24 = vpop.f32.mrb[17].mxu1 }
 0x53a   : > { %v4872_v18 = vpop.f32.mrb[18].mxu1  ;;  %v5067_v24 = vrot.slane %v5055_v27, 4 }
 0x53b   : > { %v4883_v39 = vpack.c.bf16 %v4872_v18, %v4869_v33  ;;  %v6513_v53 = vpop.f32.mrb[19].mxu1  ;;  %v5649_v33 = vunpack.c.l.b16 %v6622_v55  ;;  %v5126_v18 = vsel %vm4945_vm4, %v5125_v11, %v8503_v15 }
 0x53c   : > { %v5660_v53 = vsel %vm4945_vm4, %v5659_v17, %v8511_v7  ;;  %v5485_v7 = vsel %vm4948_vm5, %v5484_v62, %v5483_v51  ;;  %v5068_v51 = vsel %vm4948_vm5, %v5067_v24, %v8565_v3  ;;  %v5235_v17 = vunpack.c.l.b16 %v6646_v34  ;;  %v8615_v24 = vld [vmem:[#allocation4 + $0x30] ss:$0 sps:$4 sm:$0x88]  }
 0x53d   : > { %4891 = vst.msk [vmem:[#allocation4 + $0x38] sm:$0xff] %vm8869_vm10, %v4883_v39  ;;  %v5661_v12 = vrot.slane %v5649_v33, 6  ;;  %v5128_v42 = vsel %vm4948_vm5, %v5127_v5, %v5126_v18  ;;  %vm8878_vm10 = vmmov %vm8872_vm1 }
 0x53f   : > { %v5662_v34 = vsel %vm4948_vm5, %v5661_v12, %v5660_v53  ;;  %v5188_v53 = vsel %vm4948_vm5, %v8593_v41, %v8587_v4 }
 0x544   : > { %v6575_v30 = vld [vmem:[#allocation4 + $0x3c] ss:$0 sps:$4 sm:$0x11]   ;;  %v6583_v39 = vld [vmem:[#allocation4 + $0x38] ss:$0 sps:$4 sm:$0x11]  }
 0x545   : > { %v5473_v15 = vunpack.c.l.b16 %v6575_v30  ;;  %v6591_v31 = vld [vmem:[#allocation4 + $0x3c] ss:$0 sps:$4 sm:$0x22]   ;;  %v4996_v28 = vunpack.c.l.b16 %v6583_v39  ;;  %v6599_v55 = vld [vmem:[#allocation4 + $0x38] ss:$0 sps:$4 sm:$0x22]  }
 0x546   : > { %v5532_v63 = vunpack.c.l.b16 %v6591_v31  ;;  %v6607_v56 = vld [vmem:[#allocation4 + $0x3c] ss:$0 sps:$4 sm:$0x22]   ;;  %v5056_v35 = vunpack.c.l.b16 %v6599_v55  ;;  %v6615_v27 = vld [vmem:[#allocation4 + $0x38] ss:$0 sps:$4 sm:$0x22]  }
 0x547   : > { %v5486_v0 = vrot.slane %v5473_v15, 2  ;;  %v5009_v32 = vrot.slane %v4996_v28, 2  ;;  %v5591_v20 = vunpack.c.l.b16 %v6607_v56  ;;  %v6623_v1 = vld [vmem:[#allocation4 + $0x3c] ss:$0 sps:$4 sm:$0x44]   ;;  %v5116_v33 = vunpack.c.l.b16 %v6615_v27 }
 0x548   : > { %v5545_v59 = vrot.slane %v5532_v63, 3  ;;  %v5069_v37 = vrot.slane %v5056_v35, 3  ;;  %v6631_v50 = vld [vmem:[#allocation4 + $0x38] ss:$0 sps:$4 sm:$0x44]   ;;  %v5650_v10 = vunpack.c.l.b16 %v6623_v1  ;;  %v5247_v39 = vrot.slane %v5235_v17, 7 }
 0x549   : > { %v5487_v11 = vsel %vm4951_vm12, %v5486_v0, %v5485_v7  ;;  %v5010_v23 = vsel %vm4951_vm12, %v5009_v32, %v5008_v48  ;;  %v5604_v61 = vrot.slane %v5591_v20, 4  ;;  %v6639_v8 = vld [vmem:[#allocation4 + $0x3c] ss:$0 sps:$4 sm:$0x44]   ;;  %v5129_v13 = vrot.slane %v5116_v33, 4 }
 0x54a   : > { %v5488_v2 = vpack.c.b16 %v5487_v11, %v5487_v11  ;;  %v5011_v62 = vpack.c.b16 %v5010_v23, %v5010_v23  ;;  %v5546_v3 = vsel %vm4951_vm12, %v5545_v59, %v5544_v29  ;;  %v5070_v60 = vsel %vm4951_vm12, %v5069_v37, %v5068_v51  ;;  %v6647_v58 = vld [vmem:[#allocation4 + $0x38] ss:$0 sps:$4 sm:$0x44]   ;;  %v8623_v31 = vld [vmem:[#allocation4 + $0x34] ss:$0 sps:$4 sm:$0x88]  }
 0x54b   : > { %v5176_v30 = vunpack.c.l.b16 %v6631_v50  ;;  %v5767_v15 = vunpack.c.l.b16 %v8607_v38  ;;  %v5415_v7 = vunpack.c.l.b16 %v6686_v54  ;;  %v5547_v28 = vpack.c.b16 %v5546_v3, %v5546_v3  ;;  %v6655_v56 = vld [vmem:[#allocation4 + $0x3c] ss:$0 sps:$4 sm:$0x88]   ;;  %v6678_v32 = vld [vmem:[#allocation4 + $0x30] ss:$0 sps:$4 sm:$0x88]  }
 0x54c   : > { %5489 = vrot.lane.b32.xlu1 %v5488_v2, %s6821_s19  ;;  %5012 = vrot.lane.b32.xlu0 %v5011_v62, %s6821_s19  ;;  %v5071_v55 = vpack.c.b16 %v5070_v60, %v5070_v60  ;;  %v5663_v0 = vrot.slane %v5650_v10, 5  ;;  %v4929_v48 = vunpack.c.l.b16 %v6693_v40  ;;  %v5605_v63 = vsel %vm4951_vm12, %v5604_v61, %v5603_v19  ;;  %v6663_v38 = vld [vmem:[#allocation4 + $0x38] ss:$0 sps:$4 sm:$0x88]   ;;  %s6447_s19 = sshll.u32 %s6911_s25, 8 }
 0x54d   : > { %v5130_v18 = vsel %vm4951_vm12, %v5129_v13, %v5128_v42  ;;  %v5189_v5 = vrot.slane %v5176_v30, 5  ;;  %v5709_v29 = vunpack.c.l.b16 %v6639_v8  ;;  %v5236_v12 = vunpack.c.l.b16 %v6647_v58  ;;  %v6687_v11 = vld [vmem:[#allocation4 + $0x3c] ss:$0 sps:$4 sm:$0x11]  }
 0x54e   : > { %v5425_v54 = vrot.slane %v5414_v49, 3  ;;  %v4930_v35 = vunpack.c.l.b16 %v6694_v26  ;;  %v5721_v51 = vsel %vm4948_vm5, %v8601_v14, %v8581_v25  ;;  %v5295_v19 = vunpack.c.l.b16 %v8615_v24  ;;  %v6695_v1 = vld [vmem:[#allocation4 + $0x38] ss:$0 sps:$4 sm:$0x11]  }
 0x54f   : > { %v5826_v27 = vunpack.c.l.b16 %v8623_v31  ;;  %v5427_v40 = vrot.slane %v5415_v7, 2  ;;  %v5606_v59 = vpack.c.b16 %v5605_v63, %v5605_v63  ;;  %v5131_v20 = vpack.c.b16 %v5130_v18, %v5130_v18  ;;  %v6671_v42 = vld [vmem:[#allocation4 + $0x3c] ss:$0 sps:$4 sm:$0x88]  }
 0x550   : > { %5548 = vrot.lane.b32.xlu1 %v5547_v28, %s6817_s28  ;;  %5072 = vrot.lane.b32.xlu0 %v5071_v55, %s6817_s28  ;;  %v5664_v4 = vsel %vm4951_vm12, %v5663_v0, %v5662_v34  ;;  %v4944_v41 = vrot.slane %v4929_v48, 3  ;;  %v5190_v49 = vsel %vm4951_vm12, %v5189_v5, %v5188_v53  ;;  %v5722_v17 = vrot.slane %v5709_v29, 6  ;;  %v6679_v34 = vld [vmem:[#allocation4 + $0x38] ss:$0 sps:$4 sm:$0x88]   ;;  %s6824_s28 = smov [#allocation6]  }
 0x551   : > { %v5768_v2 = vunpack.c.l.b16 %v6655_v56  ;;  %v5416_v23 = vunpack.c.l.b16 %v6687_v11  ;;  %v5248_v25 = vsel %vm4948_vm5, %v5247_v39, %v8591_v9  ;;  %v5249_v14 = vrot.slane %v5236_v12, 6 }
 0x552   : > { %v5296_v37 = vunpack.c.l.b16 %v6663_v38  ;;  %v4947_v33 = vrot.slane %v4930_v35, 2  ;;  %v5355_v50 = vunpack.c.l.b16 %v6678_v32  ;;  %v5426_v26 = vsel %vm4945_vm4, %v5425_v54, %v8550_v43 }
 0x553   : > { %v5429_v62 = vrot.slane %v5416_v23, 1  ;;  %v4931_v3 = vunpack.c.l.b16 %v6695_v1  ;;  %v5665_v61 = vpack.c.b16 %v5664_v4, %v5664_v4  ;;  %v5191_v10 = vpack.c.b16 %v5190_v49, %v5190_v49 }
 0x554   : > { %5607 = vrot.lane.b32.xlu1 %v5606_v59, %s6820_s18  ;;  %5132 = vrot.lane.b32.xlu0 %v5131_v20, %s6820_s18  ;;  %v5428_v8 = vsel %vm4948_vm5, %v5427_v40, %v5426_v26  ;;  %v4946_v24 = vsel %vm4945_vm4, %v4944_v41, %v8554_v47  ;;  %v5723_v9 = vsel %vm4951_vm12, %v5722_v17, %v5721_v51  ;;  %v5781_v60 = vrot.slane %v5768_v2, 7  ;;  %v6014_v51 = vld [vmem:[%s8789_s11] sm:$0xff] }
 0x555   : > { %v5430_v13 = vsel %vm4951_vm12, %v5429_v62, %v5428_v8  ;;  %v4950_v30 = vrot.slane %v4931_v3, 1  ;;  %v5250_v43 = vsel %vm4951_vm12, %v5249_v14, %v5248_v25  ;;  %v5309_v58 = vrot.slane %v5296_v37, 7  ;;  %v5847_v62 = vld [vmem:[%s8784_s6] sm:$0xf] }
 0x556   : > { %v5431_v39 = vpack.c.b16 %v5430_v13, %v5430_v13  ;;  %v4949_v31 = vsel %vm4948_vm5, %v4947_v33, %v4946_v24  ;;  %v5780_v47 = vsel %vm4948_vm5, %v5767_v15, %v8597_v46  ;;  %v5307_v7 = vsel %vm4945_vm4, %v8567_v45, %v8538_v22 }
 0x557   : > { %v5366_v28 = vrot.slane %v5354_v44, 2  ;;  %v4952_v55 = vsel %vm4951_vm12, %v4950_v30, %v4949_v31  ;;  %v5724_v0 = vpack.c.b16 %v5723_v9, %v5723_v9  ;;  %v5308_v48 = vsel %vm4948_vm5, %v5295_v19, %v5307_v7  ;;  %v5919_v19 = vld [vmem:[%s8787_s9 + $0x8] sm:$0xff] }
 0x558   : > { %5666 = vrot.lane.b32.xlu1 %v5665_v61, %s6815_s17  ;;  %5192 = vrot.lane.b32.xlu0 %v5191_v10, %s6815_s17  ;;  %v5839_v63 = vrot.slane %v5826_v27, 1  ;;  %5433 = vst.msk [vmem:[#allocation5 + $0x4] sm:$0xf] %vm4955_vm8, %v5431_v39  ;;  %v4953_v18 = vpack.c.b16 %v4952_v55, %v4952_v55  ;;  %v5251_v5 = vpack.c.b16 %v5250_v43, %v5250_v43  ;;  %v5827_v46 = vunpack.c.l.b16 %v6671_v42  ;;  %v8874_v42 = vld [vmem:[#allocation9_spill] sm:$0xff]  ;;  %v8875_v43 = vld [vmem:[#allocation10_spill] sm:$0xff]  ;;  %s8736_s17 = scalar_lea.hbm %s8790_s12, %s6447_s19 }
 0x559   : > { %v5782_v29 = vsel %vm4951_vm12, %v5781_v60, %v5780_v47  ;;  %v5368_v15 = vrot.slane %v5355_v50, 1  ;;  %v5310_v22 = vsel %vm4951_vm12, %v5309_v58, %v5308_v48  ;;  %v5836_v45 = vsel %vm4942_vm2, %v8415_v6, %v8542_v57  ;;  %v6748_v31 = vld [vmem:[%s6956_s29 + $0x8] sm:$0xff] }
 0x55a   : > { %v5356_v52 = vunpack.c.l.b16 %v6679_v34  ;;  %4956 = vst.msk [vmem:[#allocation5] sm:$0xf] %vm4955_vm8, %v4953_v18  ;;  %v5838_v44 = vsel %vm4945_vm4, %v8569_v21, %v5836_v45  ;;  %v5365_v56 = vsel %vm4942_vm2, %v8417_v16, %v8546_v36  ;;  %v5783_v32 = vpack.c.b16 %v5782_v29, %v5782_v29  ;;  %v5918_v16 = vld [vmem:[%s8787_s9] sm:$0xff]  ;;  %vm8876_vm2 = vmmov %vm8870_vm0 }
 0x55b   : > { %v5840_v53 = vsel %vm4948_vm5, %v5839_v63, %v5838_v44  ;;  %v5367_v12 = vsel %vm4945_vm4, %v5366_v28, %v5365_v56  ;;  %v5311_v38 = vpack.c.b16 %v5310_v22, %v5310_v22  ;;  %v5849_v36 = vld [vmem:[%s8785_s7] sm:$0xff]  ;;  %v8873_v3 = vmov 0   ;;  %vm8877_vm4 = vmmov %vm8870_vm0 }
 0x55c   : > { %5725 = vrot.lane.b32.xlu1 %v5724_v0, %s6819_s16  ;;  %5252 = vrot.lane.b32.xlu0 %v5251_v5, %s6819_s16  ;;  %v5841_v6 = vsel %vm4951_vm12, %v5827_v46, %v5840_v53  ;;  %v5369_v57 = vsel %vm4948_vm5, %v5368_v15, %v5367_v12  ;;  %v6747_v34 = vld [vmem:[%s6956_s29] sm:$0xff]  ;;  %vm8879_vm5 = vcmask 130048   ;;  %s417_s16 = sand.u32 1, %s6803_s22  }
 0x55d   : > { %v5370_v54 = vsel %vm4951_vm12, %v5356_v52, %v5369_v57  ;;  %v5842_v21 = vpack.c.b16 %v5841_v6, %v5841_v6  ;;  %v6698_v0 = vld [vmem:[%s8786_s8] sm:$0xff]   ;;  %s6160_s18 = sshll.u32 %s417_s16, 4  ;;  %s6071_s25 = scalar_lea.sflag [#allocation7], %s417_s16 }
 0x55e   : > { %v5371_v35 = vpack.c.b16 %v5370_v54, %v5370_v54 }
 0x560   : > { %5784 = vrot.lane.b32.xlu1 %v5783_v32, %s6816_s26  ;;  %5312 = vrot.lane.b32.xlu0 %v5311_v38, %s6816_s26  ;;  %s419_s26 = scalar_lea.vmem [#allocation6], %s6160_s18  ;;  %s6753_s18 = sshll.u32 %s6824_s28, 4  ;;  %s6754_s18 = int_to_ptr.vmem [resolvable:$false] %s6753_s18 }
 0x561   : > { %s6085_s0 = sshll.u32 %s419_s26, 4  ;;  %s6755_s1 = scalar_lea.vmem %s6754_s18, 512  ;;  %s8738_s0 = int_to_ptr.vmem [resolvable:$true] %s6085_s0 }
 0x562   : > { %s6749_s29 = scalar_lea.vmem %s8738_s0, 256  ;;  %p6756_p0 = scmp.lt.s32.totalorder %s8738_s0, %s6754_s18 }
 0x563   : > { %p6750_p11 = scmp.ne.s32.totalorder %s8738_s0, %s6749_s29  ;;  %p6757_p1 = scmp.lt.s32.totalorder %s6755_s1, %s6749_s29 }
 0x564   : > { %5843 = vrot.lane.b32.xlu1 %v5842_v21, %s6818_s15  ;;  %5372 = vrot.lane.b32.xlu0 %v5371_v35, %s6818_s15 }
 0x565   : > { %p6751_p12 = pnand %p6750_p11, %p6928_p5  ;;  %p6758_p2 = por %p6757_p1, %p6756_p0 }
 0x567   : > { %p6752_p13 = pneg %p6751_p12 }
 0x568   : > { %5922 = vperm.xlu1 %6565, %v5918_v16   ;;  %5852 = vperm.xlu0 %6564, %v5849_v36  }
 0x569   : > { %p6759_p3 = pnand %p6758_p2, %p6752_p13 }
 0x56c   : > { %6017 = vperm.xlu1 %6565, %v6014_v51   ;;  %5927 = vperm.xlu0 %6564, %v5919_v19  }
 0x5be   : > { %v5490_v27 = vpop.permute.xlu1 %5489  ;;  %v5013_v40 = vpop.permute.xlu0 %5012 }
 0x5bf   : > { %5492 = vst.msk [vmem:[#allocation5 + $0x4] sm:$0xf] %vm5015_vm9, %v5490_v27  ;;  %5016 = vst.msk [vmem:[#allocation5] sm:$0xf] %vm5015_vm9, %v5013_v40 }
 0x5c2   : > { %v5549_v11 = vpop.permute.xlu1 %5548  ;;  %v5073_v59 = vpop.permute.xlu0 %5072 }
 0x5c3   : > { %5551 = vst.msk [vmem:[#allocation5 + $0x4] sm:$0xf] %vm5075_vm14, %v5549_v11  ;;  %5076 = vst.msk [vmem:[#allocation5] sm:$0xf] %vm5075_vm14, %v5073_v59 }
 0x5c6   : > { %v5608_v20 = vpop.permute.xlu1 %5607  ;;  %v5133_v4 = vpop.permute.xlu0 %5132 }
 0x5c7   : > { %5610 = vst.msk [vmem:[#allocation5 + $0x4] sm:$0xf] %vm5135_vm15, %v5608_v20  ;;  %5136 = vst.msk [vmem:[#allocation5] sm:$0xf] %vm5135_vm15, %v5133_v4 }
 0x5ca   : > { %v5667_v41 = vpop.permute.xlu1 %5666  ;;  %v5193_v1 = vpop.permute.xlu0 %5192 }
 0x5cb   : > { %5669 = vst.msk [vmem:[#allocation5 + $0x4] sm:$0xf] %vm5195_vm7, %v5667_v41  ;;  %5196 = vst.msk [vmem:[#allocation5] sm:$0xf] %vm5195_vm7, %v5193_v1 }
 0x5ce   : > { %v5726_v49 = vpop.permute.xlu1 %5725  ;;  %v5253_v17 = vpop.permute.xlu0 %5252 }
 0x5cf   : > { %5728 = vst.msk [vmem:[#allocation5 + $0x4] sm:$0xf] %vm5255_vm13, %v5726_v49  ;;  %5256 = vst.msk [vmem:[#allocation5] sm:$0xf] %vm5255_vm13, %v5253_v17 }
 0x5d2   : > { %v5785_v2 = vpop.permute.xlu1 %5784  ;;  %v5313_v23 = vpop.permute.xlu0 %5312 }
 0x5d3   : > { %5787 = vst.msk [vmem:[#allocation5 + $0x4] sm:$0xf] %vm5315_vm6, %v5785_v2  ;;  %5316 = vst.msk [vmem:[#allocation5] sm:$0xf] %vm5315_vm6, %v5313_v23  ;;  %v6011_v23 = vld [vmem:[%s8788_s10] sm:$0xf] }
 0x5d6   : > { %v5844_v25 = vpop.permute.xlu1 %5843  ;;  %v5373_v14 = vpop.permute.xlu0 %5372 }
 0x5d7   : > { %5846 = vst.msk [vmem:[#allocation5 + $0x4] sm:$0xf] %vm5375_vm11, %v5844_v25  ;;  %5376 = vst.msk [vmem:[#allocation5] sm:$0xf] %vm5375_vm11, %v5373_v14 }
 0x5de   : > { %v5848_v37 = vld [vmem:[#allocation5] sm:$0xff] }
 0x5df   : > { %v6434_v33 = vcombine.high %v5848_v37, %v5848_v37  ;;  %v6433_v50 = vcombine.low %v5848_v37, %v5848_v37 }
 0x5e1   : > { %6435 = vmatprep.subr.msk.bf16.mxu0 %vm8870_vm0, %v6434_v33  ;;  %v5864_v26 = vsel %vm8871_vm3, %v6433_v50, 0 }
 0x5e2   : > { %5870 = vmatpush1.bf16.msra.mxu0 %v5864_v26 }
 0x5e5   : > { %6436 = vmatmul.mubr.msk.bf16.vlgmr.msra.gmra.mrb[20].mxu0 %vm8872_vm1, %v5847_v62 }
 0x5e6   : > { %6055 = vmatprep.mubr.bf16.mxu0 %v8873_v3 }
 0x5e7   : > { %v5853_v61 = vpop.permute.xlu0 %5852  ;;  %v5923_v48 = vpop.permute.xlu1 %5922 }
 0x5eb   : > { %v5928_v29 = vpop.permute.xlu0 %5927  ;;  %v6018_v25 = vpop.permute.xlu1 %6017 }
 0x6b8   : > { %v5903_v10 = vpop.f32.mrb[20].mxu0 }
 0x6b9   : > { %v5904_v8 = vadd.f32 %v5903_v10, %v5853_v61  ;;  %v5905_v24 = vpop.f32.mrb[21].mxu0 }
 0x6ba   : > { %v5906_v9 = vadd.f32 %v5905_v24, %v5853_v61  ;;  %v5907_v60 = vpop.f32.mrb[22].mxu0 }
 0x6bb   : > { %v5910_v13 = vmul.f32 %v5904_v8, %v8874_v42  ;;  %v5908_v30 = vpop.f32.mrb[23].mxu0 }
 0x6bc   : > { %v5911_v58 = vmul.f32 %v5906_v9, %v8875_v43 }
 0x6bd   : > { %v8708_v39 = vadd.f32 %v6747_v34, %v5910_v13 }
 0x6be   : > { %v8711_v47 = vadd.f32 %v6748_v31, %v5911_v58 }
 0x6bf   : > { %v5916_v7 = vpack.c.bf16 %v8708_v39, %v8708_v39 }
 0x6c0   : > { %v5917_v28 = vpack.c.bf16 %v8711_v47, %v8711_v47 }
 0x6c1   : > { %v5939_v55 = vsel %vm8876_vm2, %v5916_v7, 0 }
 0x6c2   : > { %6438 = vmatprep.subr.msk.bf16.mxu1 %vm8877_vm4, %v5917_v28 }
 0x6c3   : > { %5945 = vmatpush1.bf16.msra.mxu1 %v5939_v55 }
 0x6c6   : > { %6439 = vmatmul.mubr.msk.bf16.vlgmr.msra.gmra.mrb[20].mxu1 %vm8878_vm10, %v6698_v0 }
 0x799   : > { %v5978_v63 = vpop.f32.mrb[20].mxu1 }
 0x79a   : > { %v5979_v18 = vadd.f32 %v5978_v63, %v5923_v48  ;;  %v5980_v5 = vpop.f32.mrb[21].mxu1 }
 0x79b   : > { %v5981_v46 = vadd.f32 %v5980_v5, %v5923_v48  ;;  %v5982_v15 = vpop.f32.mrb[22].mxu1 }
 0x79c   : > { %v5987_v22 = vsub.f32 0.0, %v5979_v18  ;;  %v5983_v45 = vadd.f32 %v5982_v15, %v5928_v29  ;;  %v5984_v52 = vpop.f32.mrb[23].mxu1 }
 0x79d   : > { %v5988_v44 = vsub.f32 0.0, %v5981_v46  ;;  %v5985_v56 = vadd.f32 %v5984_v52, %v5928_v29 }
 0x79e   : > { %v5991_v32 = vmul.f32 1.442695, %v5987_v22  ;;  %v5989_v53 = vsub.f32 0.0, %v5983_v45 }
 0x79f   : > { %v5993_v12 = vmul.f32 1.442695, %v5988_v44  ;;  %v5990_v38 = vsub.f32 0.0, %v5985_v56 }
 0x7a0   : > { %6731 = vpow2.f32 %v5991_v32  ;;  %v5995_v6 = vmul.f32 1.442695, %v5989_v53 }
 0x7a1   : > { %6733 = vpow2.f32 %v5993_v12  ;;  %v5997_v57 = vmul.f32 1.442695, %v5990_v38 }
 0x7a2   : > { %6735 = vpow2.f32 %v5995_v6 }
 0x7a3   : > { %6737 = vpow2.f32 %v5997_v57 }
 0x7aa   : > { %v6732_v54 = vpop.eup %6731 }
 0x7ab   : > { %v6734_v21 = vpop.eup %6733  ;;  %v5999_v35 = vadd.f32 1.0, %v6732_v54 }
 0x7ac   : > { %v6736_v16 = vpop.eup %6735  ;;  %v6000_v36 = vadd.f32 1.0, %v6734_v21 }
 0x7ad   : > { %v6738_v51 = vpop.eup %6737  ;;  %6739 = vrcp.f32 %v5999_v35  ;;  %v6001_v19 = vadd.f32 1.0, %v6736_v16 }
 0x7ae   : > { %6741 = vrcp.f32 %v6000_v36  ;;  %v6002_v27 = vadd.f32 1.0, %v6738_v51 }
 0x7af   : > { %6743 = vrcp.f32 %v6001_v19 }
 0x7b0   : > { %6745 = vrcp.f32 %v6002_v27 }
 0x7b7   : > { %v6740_v40 = vpop.eup %6739 }
 0x7b8   : > { %v6742_v11 = vpop.eup %6741  ;;  %v6007_v4 = vmul.f32 %v6740_v40, %v5979_v18 }
 0x7b9   : > { %v6744_v59 = vpop.eup %6743  ;;  %v6008_v1 = vmul.f32 %v6742_v11, %v5981_v46 }
 0x7ba   : > { %v6746_v20 = vpop.eup %6745  ;;  %v6009_v41 = vmul.f32 %v6744_v59, %v5983_v45 }
 0x7bb   : > { %v6010_v49 = vmul.f32 %v6746_v20, %v5985_v56 }
 0x7bc   : > { %v6012_v17 = vpack.c.bf16 %v6009_v41, %v6007_v4 }
 0x7bd   : > { %v6013_v2 = vpack.c.bf16 %v6010_v49, %v6008_v1 }
 0x7bf   : > { %6023 = vmatprep.subr.bf16.mxu0 %v6013_v2 }
 0x7c0   : > { %6024 = vmatpush1.bf16.msra.mxu0 %v6012_v17 }
 0x7c3   : > { %6440 = vmatmul.mubr.msk.bf16.vlgmr.msra.gmra.mrb[24].mxu0 %vm8879_vm5, %v6011_v23 }
 0x896   : > { %v6057_v14 = vpop.f32.mrb[24].mxu0 }
 0x897   : > { %v6058_v37 = vadd.f32 %v6057_v14, %v6018_v25  ;;  %v6059_v33 = vpop.f32.mrb[25].mxu0 }
 0x898   : > { %v6060_v50 = vadd.f32 %v6059_v33, %v6018_v25  ;;  %v6061_v26 = vpop.f32.mrb[26].mxu0 }
 0x899   : > { %v6064_v62 = vmul.f32 %v6058_v37, %v8874_v42  ;;  %v6062_v3 = vpop.f32.mrb[27].mxu0 }
 0x89a   : > { %v6065_v61 = vmul.f32 %v6060_v50, %v8875_v43 }
 0x89b   : > { %v6066_v10 = vadd.f32 %v6064_v62, %v8708_v39 }
 0x89c   : > { %v6067_v8 = vadd.f32 %v6065_v61, %v8711_v47 }
 0x89d   : > { %6068 = vst [vmem:[%s419_s26] sm:$0xff] %v6066_v10 }
 0x89e   : > { %6069 = vst [vmem:[%s419_s26 + $0x8] sm:$0xff] %v6067_v8 }
 0x89f   : > { %6762 = shalt.err (!%p6759_p3)
}
 0x8a0   : > { %s6763_s16 = scalar_lea.hbm %s8736_s17, 256  ;;  %s6767_s15 = scalar_lea.hbm %s8790_s12, 512 }
 0x8a1   : > { %p6764_p4 = scmp.ne.s32.totalorder %s8736_s17, %s6763_s16  ;;  %p6768_p9 = scmp.lt.u32.totalorder %s8736_s17, %s8790_s12 }
 0x8a2   : > { %p6769_p10 = scmp.lt.u32.totalorder %s6767_s15, %s6763_s16  ;;  %p6771_p12 = scmp.lt.u32.totalorder %s6763_s16, %s8736_s17 }
 0x8a3   : > { %p6765_p7 = pnand %p6764_p4, %p6928_p5 }
 0x8a4   : > { %p6770_p11 = por %p6769_p10, %p6768_p9 }
 0x8a5   : > { %p6766_p8 = pneg %p6765_p7 }
 0x8a6   : > { %p6772_p13 = por %p6771_p12, %p6770_p11 }
 0x8a8   : > { %p6773_p0 = pnand %p6772_p13, %p6766_p8 }
 0x8aa   : > { %6776 = shalt.err (!%p6773_p0)
}
 0x8ab   : > { %6514 = dma.vmem_to_hbm [thread:$0]  (%p6928_p5), %s8738_s0, 256, %s8736_s17, %s6071_s25  }
 0x8ac PF: > { %p6520_p1 = scmp.ge.s32.totalorder %s6811_s24, 2  ;;  %s6097_s1 = sand.u32 1, %s6799_s21  }
 0x8ad   : > { %s6098_s29 = scalar_lea.sflag [#allocation7], %s6097_s1 }
 0x8ae   : > { %p6517_p2 = pnand %p6520_p1, %p6932_p6 }
 0x8b0   : > { %6794 = dma.done.wait (!%p6517_p2), %s6098_s29, 256  }
 0x8b1   : > { %6796 = vsyncadd (!%p6517_p2), %s6098_s29, 4294967040  ;;  %p22_p3 = scmp.ge.s32.totalorder %s6915_s27, 4   ;;  %s8880_s21 = smov %s6803_s22 }
 0x8b2   : > { %s8881_s22 = smov %s6807_s23  ;;  %s8882_s23 = smov %s6926_s30 }
 0x8b3   : > { %s8883_s24 = smov %s6915_s27  ;;  %24 = sbr.rel (!%p22_p3) target bundleno = 6 (0x6), region = 107 }
 0x8ba   :  { %6103 = vsyncpa [#allocation7], 1 }
 0x8bb   :  { %6105 = vsyncpa [#allocation7 + $0x1], 1 }

</bundles_post_ra>
